<compile_context>
chip_gen: v5e
topology: v5e:2x2
jax: 0.10.0
libtpu: 0.0.40
codegen_flags: <defaults>
</compile_context>

<pallas_src>
import jax
import jax.numpy as jnp
import numpy as np
from jax.experimental import pallas as pl
from jax.experimental.pallas import tpu as pltpu

NUM_PLANES = 9            # num_planes - 1 must equal 8 (see header)
EMBED_DIM = 8             # 'd' axis
ANT_DIM = 16              # anticipation_dim (free choice)
H = W = 8                 # chess board
CP = NUM_PLANES - 1       # piece planes == size of the 'e' axis
K_HID = EMBED_DIM // 2    # relationship-encoder hidden width
CIN_PAD = ANT_DIM         # conv input channels padded to 16 (== ANT_DIM so the
                          # im2col scratch is reused for both convs)
PAD = 16                  # lane padding on each side of the flattened board
                          # axis (must be >= 9 so every 3x3 tap slice is in bounds)

TAPS = tuple((dh, dw) for dh in (-1, 0, 1) for dw in (-1, 0, 1))

_VMEM = pltpu.MemorySpace.VMEM
_SMEM = pltpu.MemorySpace.SMEM


def _vspec():
    return pl.BlockSpec(memory_space=_VMEM)


def _sspec():
    return pl.BlockSpec(memory_space=_SMEM)


# ---------------------------------------------------------------------------
# Fused kernel: spatial embedding + piece relationships + anticipation head
# ---------------------------------------------------------------------------
def chess_ssea_kernel(x_ref, pos_ref, p_ref, qb_ref, sel_ref, masks_ref,
                      w1c_ref, b1c_ref, w2c_ref, b2c_ref,
                      pe_ref, a_ref, w2r_ref, b2r_ref,
                      se_ref, rel_ref, ant_ref,
                      pad_ref, col_ref):
    # VMEM inputs
    #   x_ref     (CIN_PAD, G)       x[b,c,h,w] at [c, g], g = b*64 + h*8 + w,
    #                                channels 0..8 real, 9..15 zero
    #   pos_ref   (D, E, G)          pos_emb[w*8+d, e] broadcast over (b, h)
    #   p_ref     (K, CP, G)         P_k[g]            (pre-broadcast over c)
    #   qb_ref    (K, CP, G)         Q_k[g] + b1[k]    (pre-broadcast over c)
    #   sel_ref   (G, B*W)           0/1 matrix summing over h for every (b, w)
    #   masks_ref (9, G)             off-board masks per 3x3 tap
    #   w1c_ref   (ANT_DIM, 9*CIN_PAD)   conv1 weights, (cout, tap*cin)
    #   b1c_ref   (ANT_DIM, 1)
    #   w2c_ref   (ANT_DIM, 9*ANT_DIM)   conv2 weights
    #   b2c_ref   (ANT_DIM, 1)
    # SMEM inputs
    #   pe_ref    (E, D)             piece embeddings (scalars)
    #   a_ref     (K,)               A_k = sum_e w1[k,e] * sum_d pe[e,d]^2
    #   w2r_ref   (K,)               relationship-encoder Linear(K -> 1) row
    #   b2r_ref   (1,)
    # Outputs
    #   se_ref    (D, E, CP, G)      spatial embeddings (lane-dense tiles)
    #   rel_ref   (CP, B*W)          relationships (pre batch/channel reorder)
    #   ant_ref   (ANT_DIM, G)       anticipation head output
    # Scratch
    #   pad_ref   (CIN_PAD, G+2*PAD) zero-padded conv input row buffer (reused)
    #   col_ref   (9*CIN_PAD, G)     im2col buffer (reused for both convs)
    g_len = x_ref.shape[1]
    x8 = x_ref[0:CP, :]                                        # (CP, G), 1 vreg

    # --- spatial embedding: se[d,e,c,g] = pe[e,d] * x[c,g] + pos[d,e,g] -----
    # Exact f32 (multiply + add), bit-matching the reference path.
    for d in range(EMBED_DIM):
        for e in range(CP):
            se_ref[d, e, :, :] = pe_ref[e, d] * x8 + pos_ref[d, e:e + 1, :]

    # --- piece relationships, d/e contractions collapsed algebraically ------
    #   hid[c,s,g,k] = A_k*x[c]*x[s] + P_k[g]*(x[c]+x[s]) + (Q_k[g]+b1[k])
    #   o[c,g]       = sum_{s,k} w2[k] * relu(hid)
    a_k = [a_ref[k] for k in range(K_HID)]                     # SMEM scalars
    w2_k = [w2r_ref[k] for k in range(K_HID)]
    p_k = [p_ref[k] for k in range(K_HID)]                     # (CP, G) each
    q_k = [qb_ref[k] for k in range(K_HID)]
    o = jnp.zeros((CP, g_len), jnp.float32)
    for s in range(CP):
        xs = x8[s:s + 1, :]                                    # row s, bcast over c
        xx = x8 * xs
        xp = x8 + xs
        for k in range(K_HID):
            hid = a_k[k] * xx + p_k[k] * xp + q_k[k]
            o = o + w2_k[k] * jnp.maximum(hid, 0.0)
    # sum over h with a tiny MXU matmul; the encoder bias appears once per (s,h)
    rel_ref[...] = (jnp.dot(o, sel_ref[...], preferred_element_type=jnp.float32)
                    + (CP * H) * b2r_ref[0])

    # --- anticipation head: conv3x3 -> ReLU -> conv3x3 ----------------------
    # Each conv = im2col into a (9*16, G) VMEM scratch + ONE MXU matmul.
    pad_ref[...] = jnp.zeros(pad_ref.shape, jnp.float32)       # pad lanes stay 0

    def conv3x3(w_flat_ref, bias_ref):
        # pad_ref holds the conv input on lanes [PAD, PAD+G), zeros outside.
        for t, (dh, dw) in enumerate(TAPS):
            start = PAD + dh * W + dw
            patch = pad_ref[:, start:start + g_len]            # shifted neighbours
            if (dh, dw) != (0, 0):
                patch = patch * masks_ref[t:t + 1, :]          # zero off-board taps
            col_ref[t * CIN_PAD:(t + 1) * CIN_PAD, :] = patch
        return (jnp.dot(w_flat_ref[...], col_ref[...],
                        preferred_element_type=jnp.float32) + bias_ref[...])

    pad_ref[:, PAD:PAD + g_len] = x_ref[...]
    h1 = jnp.maximum(conv3x3(w1c_ref, b1c_ref), 0.0)           # (ANT_DIM, G) in vregs
    pad_ref[:, PAD:PAD + g_len] = h1
    ant_ref[...] = conv3x3(w2c_ref, b2c_ref)


# ---------------------------------------------------------------------------
# Parameters (deterministic, synthetic)
# ---------------------------------------------------------------------------
def init_params(key):
    ks = jax.random.split(key, 10)
    return {
        "piece_emb": jax.random.normal(ks[0], (CP, EMBED_DIM), jnp.float32),
        "pos_emb":   jax.random.normal(ks[1], (64, EMBED_DIM), jnp.float32),
        "rel_w1":    0.3 * jax.random.normal(ks[2], (K_HID, EMBED_DIM), jnp.float32),
        "rel_b1":    0.1 * jax.random.normal(ks[3], (K_HID,), jnp.float32),
        "rel_w2":    0.3 * jax.random.normal(ks[4], (1, K_HID), jnp.float32),
        "rel_b2":    0.1 * jax.random.normal(ks[5], (1,), jnp.float32),
        "conv_w1":   0.2 * jax.random.normal(ks[6], (3, 3, NUM_PLANES, ANT_DIM), jnp.float32),  # HWIO
        "conv_b1":   0.1 * jax.random.normal(ks[7], (ANT_DIM,), jnp.float32),
        "conv_w2":   0.15 * jax.random.normal(ks[8], (3, 3, ANT_DIM, ANT_DIM), jnp.float32),
        "conv_b2":   0.1 * jax.random.normal(ks[9], (ANT_DIM,), jnp.float32),
    }


# ---------------------------------------------------------------------------
# Forward pass (wrapper = layout glue + tiny exact precomputes; kernel = compute)
# ---------------------------------------------------------------------------
def chess_ssea_forward(x, p):
    # x: (B, NUM_PLANES, 8, 8) float32, NCHW like the PyTorch module.
    B = x.shape[0]
    G = B * H * W
    f32 = jnp.float32
    hp = jax.lax.Precision.HIGHEST

    # x[b,c,h,w] -> [c, g], channels zero-padded to CIN_PAD for the conv im2col.
    xg = x.transpose(1, 0, 2, 3).reshape(NUM_PLANES, G)
    x16 = jnp.pad(xg, ((0, CIN_PAD - NUM_PLANES), (0, 0)))

    # pos_emb[w*8+d, e] -> (d, e, w) -> broadcast over (b, h) along g (32 KiB).
    pos_dew = p["pos_emb"].reshape(W, EMBED_DIM, CP).transpose(1, 2, 0)
    pos_deg = jnp.broadcast_to(pos_dew[:, :, None, :],
                               (EMBED_DIM, CP, B * H, W)).reshape(EMBED_DIM, CP, G)

    # Algebraic collapse of the d/e contractions (tiny, exact-f32 einsums):
    #   A_k        = sum_e w1[k,e] * sum_d pe[e,d]^2
    #   P_k[g]     = sum_{d,e} w1[k,e] * pe[e,d] * pos[d,e,g]
    #   Q_k[g]     = sum_{d,e} w1[k,e] * pos[d,e,g]^2   (+ b1[k] folded in)
    w1 = p["rel_w1"]
    pe = p["piece_emb"]
    a_k = jnp.einsum('ke,e->k', w1, (pe * pe).sum(axis=1), precision=hp)
    pw = jnp.einsum('ke,ed,dew->kw', w1, pe, pos_dew, precision=hp)          # (K, W)
    qw = jnp.einsum('ke,dew->kw', w1, pos_dew * pos_dew, precision=hp)       # (K, W)
    p_g = jnp.broadcast_to(pw[:, None, :], (K_HID, B * H, W)).reshape(K_HID, G)
    q_g = jnp.broadcast_to(qw[:, None, :], (K_HID, B * H, W)).reshape(K_HID, G)
    qb_g = q_g + p["rel_b1"][:, None]
    p_bc = jnp.broadcast_to(p_g[:, None, :], (K_HID, CP, G))                 # 16 KiB
    qb_bc = jnp.broadcast_to(qb_g[:, None, :], (K_HID, CP, G))               # 16 KiB

    # Selection matrix summing over h for every (b, w), and off-board tap masks.
    g_idx = jnp.arange(G)
    bw_idx = jnp.arange(B * W)
    sel = ((g_idx[:, None] // (H * W) == bw_idx[None, :] // W)
           & (g_idx[:, None] % W == bw_idx[None, :] % W)).astype(f32)        # (G, B*W)
    hh = (g_idx % (H * W)) // W
    ww = g_idx % W
    masks = jnp.stack([((hh + dh >= 0) & (hh + dh < H)
                        & (ww + dw >= 0) & (ww + dw < W)).astype(f32)
                       for dh, dw in TAPS])                                   # (9, G)

    # Conv weights flattened to (cout, tap*cin) for the single im2col matmul.
    w1c = jnp.pad(p["conv_w1"], ((0, 0), (0, 0), (0, CIN_PAD - NUM_PLANES), (0, 0)))
    w1c = w1c.transpose(3, 0, 1, 2).reshape(ANT_DIM, 9 * CIN_PAD)
    w2c = p["conv_w2"].transpose(3, 0, 1, 2).reshape(ANT_DIM, 9 * ANT_DIM)
    b1c = p["conv_b1"].reshape(ANT_DIM, 1)
    b2c = p["conv_b2"].reshape(ANT_DIM, 1)

    se_k, rel_cw, ant_g = pl.pallas_call(
        chess_ssea_kernel,
        out_shape=(jax.ShapeDtypeStruct((EMBED_DIM, CP, CP, G), f32),
                   jax.ShapeDtypeStruct((CP, B * W), f32),
                   jax.ShapeDtypeStruct((ANT_DIM, G), f32)),
        in_specs=[_vspec()] * 10 + [_sspec()] * 4,
        out_specs=(_vspec(), _vspec(), _vspec()),
        scratch_shapes=[pltpu.VMEM((CIN_PAD, G + 2 * PAD), f32),
                        pltpu.VMEM((9 * CIN_PAD, G), f32)],
        compiler_params=pltpu.CompilerParams(vmem_limit_bytes=16 * 1024 * 1024),
        cost_estimate=pl.CostEstimate(flops=1_700_000, transcendentals=0,
                                      bytes_accessed=400_000),
    )(x16, pos_deg, p_bc, qb_bc, sel, masks, w1c, b1c, w2c, b2c,
      p["piece_emb"], a_k, p["rel_w2"][0], p["rel_b2"])

    # (d, e, c, b, h, w) -> (b, c, h, w, d, e): module contract; drop if a fused
    # consumer can take the kernel layout directly (halves HBM traffic).
    spatial_embeddings = (
        se_k.reshape(EMBED_DIM, CP, CP, B, H, W).transpose(3, 2, 4, 5, 0, 1))
    relationships = rel_cw.reshape(CP, B, W).transpose(1, 0, 2)              # (B, C, W)
    anticipation = ant_g.reshape(ANT_DIM, B, H, W).transpose(1, 0, 2, 3)     # NCHW
    return spatial_embeddings, relationships, anticipation


# ---------------------------------------------------------------------------
# Pure-JAX reference (mirrors the PyTorch forward exactly) for verification
# ---------------------------------------------------------------------------
def reference_forward(x, p):
    hp = jax.lax.Precision.HIGHEST
    piecewise = jnp.einsum('bchw,ed->bchwde', x[:, :CP], p["piece_emb"], precision=hp)
    pos_b = jnp.broadcast_to(p["pos_emb"].reshape(1, 1, 1, 8, 8, EMBED_DIM), piecewise.shape)
    se = piecewise + pos_b

    rel = jnp.einsum('bchwde,bshwde->bcshwe', se, se, precision=hp)
    hid = jnp.maximum(jnp.einsum('bcshwe,ke->bcshwk', rel, p["rel_w1"], precision=hp)
                      + p["rel_b1"], 0.0)
    enc = jnp.einsum('bcshwk,ok->bcshwo', hid, p["rel_w2"], precision=hp) + p["rel_b2"]
    rel_out = enc.sum(axis=(2, 3, 5))

    def conv3x3(z_nhwc, w, b, relu):
        zp = jnp.pad(z_nhwc, ((0, 0), (1, 1), (1, 1), (0, 0)))
        acc = jnp.zeros(z_nhwc.shape[:3] + (w.shape[-1],), jnp.float32) + b.reshape(1, 1, 1, -1)
        for kh in range(3):
            for kw in range(3):
                acc = acc + jnp.einsum('bhwi,io->bhwo',
                                       zp[:, kh:kh + H, kw:kw + W, :], w[kh, kw], precision=hp)
        return jnp.maximum(acc, 0.0) if relu else acc

    h1 = conv3x3(x.transpose(0, 2, 3, 1), p["conv_w1"], p["conv_b1"], True)
    y = conv3x3(h1, p["conv_w2"], p["conv_b2"], False)
    return se, rel_out, y.transpose(0, 3, 1, 2)


if __name__ == "__main__":
    key = jax.random.PRNGKey(0)
    pkey, xkey = jax.random.split(key)
    params = init_params(pkey)
    x = jax.random.normal(xkey, (2, NUM_PLANES, H, W), jnp.float32)

    fwd = jax.jit(chess_ssea_forward)
    se, rel, ant = fwd(x, params)
    jax.block_until_ready((se, rel, ant))

    assert se.shape == (2, CP, H, W, EMBED_DIM, CP)
    assert rel.shape == (2, CP, W)
    assert ant.shape == (2, ANT_DIM, H, W)

    se_ref, rel_ref, ant_ref = reference_forward(x, params)
    # se is computed with the exact same f32 VPU ops as the reference.
    np.testing.assert_allclose(np.asarray(se), np.asarray(se_ref), rtol=1e-5, atol=1e-5)
    # rel / ant tolerances allow for (a) the algebraically collapsed—but
    # mathematically exact—summation order and (b) multi-pass MXU rounding of
    # the f32 matmuls; structural bugs would produce O(value) errors.
    np.testing.assert_allclose(np.asarray(rel), np.asarray(rel_ref), rtol=2e-2, atol=5e-1)
    np.testing.assert_allclose(np.asarray(ant), np.asarray(ant_ref), rtol=1e-2, atol=5e-2)

    print("KERNEL_OK")
</pallas_src>

<mosaic_0001>
module attributes {stable_mosaic.version = 11 : i64} {
  func.func @chess_ssea_kernel(%arg0: memref<16x128xf32, #tpu.memory_space<vmem>>, %arg1: memref<8x8x128xf32, #tpu.memory_space<vmem>>, %arg2: memref<4x8x128xf32, #tpu.memory_space<vmem>>, %arg3: memref<4x8x128xf32, #tpu.memory_space<vmem>>, %arg4: memref<128x16xf32, #tpu.memory_space<vmem>>, %arg5: memref<9x128xf32, #tpu.memory_space<vmem>>, %arg6: memref<16x144xf32, #tpu.memory_space<vmem>>, %arg7: memref<16x1xf32, #tpu.memory_space<vmem>>, %arg8: memref<16x144xf32, #tpu.memory_space<vmem>>, %arg9: memref<16x1xf32, #tpu.memory_space<vmem>>, %arg10: memref<8x8xf32, #tpu.memory_space<smem>>, %arg11: memref<4xf32, #tpu.memory_space<smem>>, %arg12: memref<4xf32, #tpu.memory_space<smem>>, %arg13: memref<1xf32, #tpu.memory_space<smem>>, %arg14: memref<8x8x8x128xf32, #tpu.memory_space<vmem>>, %arg15: memref<8x16xf32, #tpu.memory_space<vmem>>, %arg16: memref<16x128xf32, #tpu.memory_space<vmem>>, %arg17: memref<16x160xf32, #tpu.memory_space<vmem>>, %arg18: memref<144x128xf32, #tpu.memory_space<vmem>>) attributes {dimension_semantics = [], scalar_prefetch = 0 : i64, scratch_operands = 2 : i64, tpu.core_type = #tpu.core_type<tc>} {
    %c0 = arith.constant 0 : index
    %c0_0 = arith.constant 0 : index
    %0 = vector.load %arg0[%c0, %c0_0] : memref<16x128xf32, #tpu.memory_space<vmem>>, vector<8x128xf32>
    %c0_1 = arith.constant 0 : index
    %c0_2 = arith.constant 0 : index
    %1 = memref.load %arg10[%c0_1, %c0_2] : memref<8x8xf32, #tpu.memory_space<smem>>
    %2 = vector.broadcast %1 : f32 to vector<8x128xf32>
    %3 = arith.mulf %2, %0 : vector<8x128xf32>
    %c0_3 = arith.constant 0 : index
    %c0_4 = arith.constant 0 : index
    %c0_5 = arith.constant 0 : index
    %4 = vector.load %arg1[%c0_3, %c0_4, %c0_5] : memref<8x8x128xf32, #tpu.memory_space<vmem>>, vector<1x1x128xf32>
    %5 = vector.shape_cast %4 : vector<1x1x128xf32> to vector<1x128xf32>
    %6 = vector.broadcast %5 : vector<1x128xf32> to vector<8x128xf32>
    %7 = arith.addf %3, %6 : vector<8x128xf32>
    %c0_6 = arith.constant 0 : index
    %c0_7 = arith.constant 0 : index
    %c0_8 = arith.constant 0 : index
    %c0_9 = arith.constant 0 : index
    %8 = vector.load %arg14[%c0_6, %c0_7, %c0_8, %c0_9] : memref<8x8x8x128xf32, #tpu.memory_space<vmem>>, vector<1x1x8x128xf32>
    %9 = vector.shape_cast %8 : vector<1x1x8x128xf32> to vector<8x128xf32>
    %10 = vector.shape_cast %7 : vector<8x128xf32> to vector<1x1x8x128xf32>
    tpu.vector_store %arg14[%c0_6, %c0_7, %c0_8, %c0_9], %10 {strides = array<i32>} : memref<8x8x8x128xf32, #tpu.memory_space<vmem>>, vector<1x1x8x128xf32>,
    %c1 = arith.constant 1 : index
    %c0_10 = arith.constant 0 : index
    %11 = memref.load %arg10[%c1, %c0_10] : memref<8x8xf32, #tpu.memory_space<smem>>
    %12 = vector.broadcast %11 : f32 to vector<8x128xf32>
    %13 = arith.mulf %12, %0 : vector<8x128xf32>
    %c0_11 = arith.constant 0 : index
    %c1_12 = arith.constant 1 : index
    %c0_13 = arith.constant 0 : index
    %14 = vector.load %arg1[%c0_11, %c1_12, %c0_13] : memref<8x8x128xf32, #tpu.memory_space<vmem>>, vector<1x1x128xf32>
    %15 = vector.shape_cast %14 : vector<1x1x128xf32> to vector<1x128xf32>
    %16 = vector.broadcast %15 : vector<1x128xf32> to vector<8x128xf32>
    %17 = arith.addf %13, %16 : vector<8x128xf32>
    %c0_14 = arith.constant 0 : index
    %c1_15 = arith.constant 1 : index
    %c0_16 = arith.constant 0 : index
    %c0_17 = arith.constant 0 : index
    %18 = vector.load %arg14[%c0_14, %c1_15, %c0_16, %c0_17] : memref<8x8x8x128xf32, #tpu.memory_space<vmem>>, vector<1x1x8x128xf32>
    %19 = vector.shape_cast %18 : vector<1x1x8x128xf32> to vector<8x128xf32>
    %20 = vector.shape_cast %17 : vector<8x128xf32> to vector<1x1x8x128xf32>
    tpu.vector_store %arg14[%c0_14, %c1_15, %c0_16, %c0_17], %20 {strides = array<i32>} : memref<8x8x8x128xf32, #tpu.memory_space<vmem>>, vector<1x1x8x128xf32>,
    %c2 = arith.constant 2 : index
    %c0_18 = arith.constant 0 : index
    %21 = memref.load %arg10[%c2, %c0_18] : memref<8x8xf32, #tpu.memory_space<smem>>
    %22 = vector.broadcast %21 : f32 to vector<8x128xf32>
    %23 = arith.mulf %22, %0 : vector<8x128xf32>
    %c0_19 = arith.constant 0 : index
    %c2_20 = arith.constant 2 : index
    %c0_21 = arith.constant 0 : index
    %24 = vector.load %arg1[%c0_19, %c2_20, %c0_21] : memref<8x8x128xf32, #tpu.memory_space<vmem>>, vector<1x1x128xf32>
    %25 = vector.shape_cast %24 : vector<1x1x128xf32> to vector<1x128xf32>
    %26 = vector.broadcast %25 : vector<1x128xf32> to vector<8x128xf32>
    %27 = arith.addf %23, %26 : vector<8x128xf32>
    %c0_22 = arith.constant 0 : index
    %c2_23 = arith.constant 2 : index
    %c0_24 = arith.constant 0 : index
    %c0_25 = arith.constant 0 : index
    %28 = vector.load %arg14[%c0_22, %c2_23, %c0_24, %c0_25] : memref<8x8x8x128xf32, #tpu.memory_space<vmem>>, vector<1x1x8x128xf32>
    %29 = vector.shape_cast %28 : vector<1x1x8x128xf32> to vector<8x128xf32>
    %30 = vector.shape_cast %27 : vector<8x128xf32> to vector<1x1x8x128xf32>
    tpu.vector_store %arg14[%c0_22, %c2_23, %c0_24, %c0_25], %30 {strides = array<i32>} : memref<8x8x8x128xf32, #tpu.memory_space<vmem>>, vector<1x1x8x128xf32>,
    %c3 = arith.constant 3 : index
    %c0_26 = arith.constant 0 : index
    %31 = memref.load %arg10[%c3, %c0_26] : memref<8x8xf32, #tpu.memory_space<smem>>
    %32 = vector.broadcast %31 : f32 to vector<8x128xf32>
    %33 = arith.mulf %32, %0 : vector<8x128xf32>
    %c0_27 = arith.constant 0 : index
    %c3_28 = arith.constant 3 : index
    %c0_29 = arith.constant 0 : index
    %34 = vector.load %arg1[%c0_27, %c3_28, %c0_29] : memref<8x8x128xf32, #tpu.memory_space<vmem>>, vector<1x1x128xf32>
    %35 = vector.shape_cast %34 : vector<1x1x128xf32> to vector<1x128xf32>
    %36 = vector.broadcast %35 : vector<1x128xf32> to vector<8x128xf32>
    %37 = arith.addf %33, %36 : vector<8x128xf32>
    %c0_30 = arith.constant 0 : index
    %c3_31 = arith.constant 3 : index
    %c0_32 = arith.constant 0 : index
    %c0_33 = arith.constant 0 : index
    %38 = vector.load %arg14[%c0_30, %c3_31, %c0_32, %c0_33] : memref<8x8x8x128xf32, #tpu.memory_space<vmem>>, vector<1x1x8x128xf32>
    %39 = vector.shape_cast %38 : vector<1x1x8x128xf32> to vector<8x128xf32>
    %40 = vector.shape_cast %37 : vector<8x128xf32> to vector<1x1x8x128xf32>
    tpu.vector_store %arg14[%c0_30, %c3_31, %c0_32, %c0_33], %40 {strides = array<i32>} : memref<8x8x8x128xf32, #tpu.memory_space<vmem>>, vector<1x1x8x128xf32>,
    %c4 = arith.constant 4 : index
    %c0_34 = arith.constant 0 : index
    %41 = memref.load %arg10[%c4, %c0_34] : memref<8x8xf32, #tpu.memory_space<smem>>
    %42 = vector.broadcast %41 : f32 to vector<8x128xf32>
    %43 = arith.mulf %42, %0 : vector<8x128xf32>
    %c0_35 = arith.constant 0 : index
    %c4_36 = arith.constant 4 : index
    %c0_37 = arith.constant 0 : index
    %44 = vector.load %arg1[%c0_35, %c4_36, %c0_37] : memref<8x8x128xf32, #tpu.memory_space<vmem>>, vector<1x1x128xf32>
    %45 = vector.shape_cast %44 : vector<1x1x128xf32> to vector<1x128xf32>
    %46 = vector.broadcast %45 : vector<1x128xf32> to vector<8x128xf32>
    %47 = arith.addf %43, %46 : vector<8x128xf32>
    %c0_38 = arith.constant 0 : index
    %c4_39 = arith.constant 4 : index
    %c0_40 = arith.constant 0 : index
    %c0_41 = arith.constant 0 : index
    %48 = vector.load %arg14[%c0_38, %c4_39, %c0_40, %c0_41] : memref<8x8x8x128xf32, #tpu.memory_space<vmem>>, vector<1x1x8x128xf32>
    %49 = vector.shape_cast %48 : vector<1x1x8x128xf32> to vector<8x128xf32>
    %50 = vector.shape_cast %47 : vector<8x128xf32> to vector<1x1x8x128xf32>
    tpu.vector_store %arg14[%c0_38, %c4_39, %c0_40, %c0_41], %50 {strides = array<i32>} : memref<8x8x8x128xf32, #tpu.memory_space<vmem>>, vector<1x1x8x128xf32>,
    %c5 = arith.constant 5 : index
    %c0_42 = arith.constant 0 : index
    %51 = memref.load %arg10[%c5, %c0_42] : memref<8x8xf32, #tpu.memory_space<smem>>
    %52 = vector.broadcast %51 : f32 to vector<8x128xf32>
    %53 = arith.mulf %52, %0 : vector<8x128xf32>
    %c0_43 = arith.constant 0 : index
    %c5_44 = arith.constant 5 : index
    %c0_45 = arith.constant 0 : index
    %54 = vector.load %arg1[%c0_43, %c5_44, %c0_45] : memref<8x8x128xf32, #tpu.memory_space<vmem>>, vector<1x1x128xf32>
    %55 = vector.shape_cast %54 : vector<1x1x128xf32> to vector<1x128xf32>
    %56 = vector.broadcast %55 : vector<1x128xf32> to vector<8x128xf32>
    %57 = arith.addf %53, %56 : vector<8x128xf32>
    %c0_46 = arith.constant 0 : index
    %c5_47 = arith.constant 5 : index
    %c0_48 = arith.constant 0 : index
    %c0_49 = arith.constant 0 : index
    %58 = vector.load %arg14[%c0_46, %c5_47, %c0_48, %c0_49] : memref<8x8x8x128xf32, #tpu.memory_space<vmem>>, vector<1x1x8x128xf32>
    %59 = vector.shape_cast %58 : vector<1x1x8x128xf32> to vector<8x128xf32>
    %60 = vector.shape_cast %57 : vector<8x128xf32> to vector<1x1x8x128xf32>
    tpu.vector_store %arg14[%c0_46, %c5_47, %c0_48, %c0_49], %60 {strides = array<i32>} : memref<8x8x8x128xf32, #tpu.memory_space<vmem>>, vector<1x1x8x128xf32>,
    %c6 = arith.constant 6 : index
    %c0_50 = arith.constant 0 : index
    %61 = memref.load %arg10[%c6, %c0_50] : memref<8x8xf32, #tpu.memory_space<smem>>
    %62 = vector.broadcast %61 : f32 to vector<8x128xf32>
    %63 = arith.mulf %62, %0 : vector<8x128xf32>
    %c0_51 = arith.constant 0 : index
    %c6_52 = arith.constant 6 : index
    %c0_53 = arith.constant 0 : index
    %64 = vector.load %arg1[%c0_51, %c6_52, %c0_53] : memref<8x8x128xf32, #tpu.memory_space<vmem>>, vector<1x1x128xf32>
    %65 = vector.shape_cast %64 : vector<1x1x128xf32> to vector<1x128xf32>
    %66 = vector.broadcast %65 : vector<1x128xf32> to vector<8x128xf32>
    %67 = arith.addf %63, %66 : vector<8x128xf32>
    %c0_54 = arith.constant 0 : index
    %c6_55 = arith.constant 6 : index
    %c0_56 = arith.constant 0 : index
    %c0_57 = arith.constant 0 : index
    %68 = vector.load %arg14[%c0_54, %c6_55, %c0_56, %c0_57] : memref<8x8x8x128xf32, #tpu.memory_space<vmem>>, vector<1x1x8x128xf32>
    %69 = vector.shape_cast %68 : vector<1x1x8x128xf32> to vector<8x128xf32>
    %70 = vector.shape_cast %67 : vector<8x128xf32> to vector<1x1x8x128xf32>
    tpu.vector_store %arg14[%c0_54, %c6_55, %c0_56, %c0_57], %70 {strides = array<i32>} : memref<8x8x8x128xf32, #tpu.memory_space<vmem>>, vector<1x1x8x128xf32>,
    %c7 = arith.constant 7 : index
    %c0_58 = arith.constant 0 : index
    %71 = memref.load %arg10[%c7, %c0_58] : memref<8x8xf32, #tpu.memory_space<smem>>
    %72 = vector.broadcast %71 : f32 to vector<8x128xf32>
    %73 = arith.mulf %72, %0 : vector<8x128xf32>
    %c0_59 = arith.constant 0 : index
    %c7_60 = arith.constant 7 : index
    %c0_61 = arith.constant 0 : index
    %74 = vector.load %arg1[%c0_59, %c7_60, %c0_61] : memref<8x8x128xf32, #tpu.memory_space<vmem>>, vector<1x1x128xf32>
    %75 = vector.shape_cast %74 : vector<1x1x128xf32> to vector<1x128xf32>
    %76 = vector.broadcast %75 : vector<1x128xf32> to vector<8x128xf32>
    %77 = arith.addf %73, %76 : vector<8x128xf32>
    %c0_62 = arith.constant 0 : index
    %c7_63 = arith.constant 7 : index
    %c0_64 = arith.constant 0 : index
    %c0_65 = arith.constant 0 : index
    %78 = vector.load %arg14[%c0_62, %c7_63, %c0_64, %c0_65] : memref<8x8x8x128xf32, #tpu.memory_space<vmem>>, vector<1x1x8x128xf32>
    %79 = vector.shape_cast %78 : vector<1x1x8x128xf32> to vector<8x128xf32>
    %80 = vector.shape_cast %77 : vector<8x128xf32> to vector<1x1x8x128xf32>
    tpu.vector_store %arg14[%c0_62, %c7_63, %c0_64, %c0_65], %80 {strides = array<i32>} : memref<8x8x8x128xf32, #tpu.memory_space<vmem>>, vector<1x1x8x128xf32>,
    %c0_66 = arith.constant 0 : index
    %c1_67 = arith.constant 1 : index
    %81 = memref.load %arg10[%c0_66, %c1_67] : memref<8x8xf32, #tpu.memory_space<smem>>
    %82 = vector.broadcast %81 : f32 to vector<8x128xf32>
    %83 = arith.mulf %82, %0 : vector<8x128xf32>
    %c1_68 = arith.constant 1 : index
    %c0_69 = arith.constant 0 : index
    %c0_70 = arith.constant 0 : index
    %84 = vector.load %arg1[%c1_68, %c0_69, %c0_70] : memref<8x8x128xf32, #tpu.memory_space<vmem>>, vector<1x1x128xf32>
    %85 = vector.shape_cast %84 : vector<1x1x128xf32> to vector<1x128xf32>
    %86 = vector.broadcast %85 : vector<1x128xf32> to vector<8x128xf32>
    %87 = arith.addf %83, %86 : vector<8x128xf32>
    %c1_71 = arith.constant 1 : index
    %c0_72 = arith.constant 0 : index
    %c0_73 = arith.constant 0 : index
    %c0_74 = arith.constant 0 : index
    %88 = vector.load %arg14[%c1_71, %c0_72, %c0_73, %c0_74] : memref<8x8x8x128xf32, #tpu.memory_space<vmem>>, vector<1x1x8x128xf32>
    %89 = vector.shape_cast %88 : vector<1x1x8x128xf32> to vector<8x128xf32>
    %90 = vector.shape_cast %87 : vector<8x128xf32> to vector<1x1x8x128xf32>
    tpu.vector_store %arg14[%c1_71, %c0_72, %c0_73, %c0_74], %90 {strides = array<i32>} : memref<8x8x8x128xf32, #tpu.memory_space<vmem>>, vector<1x1x8x128xf32>,
    %c1_75 = arith.constant 1 : index
    %c1_76 = arith.constant 1 : index
    %91 = memref.load %arg10[%c1_75, %c1_76] : memref<8x8xf32, #tpu.memory_space<smem>>
    %92 = vector.broadcast %91 : f32 to vector<8x128xf32>
    %93 = arith.mulf %92, %0 : vector<8x128xf32>
    %c1_77 = arith.constant 1 : index
    %c1_78 = arith.constant 1 : index
    %c0_79 = arith.constant 0 : index
    %94 = vector.load %arg1[%c1_77, %c1_78, %c0_79] : memref<8x8x128xf32, #tpu.memory_space<vmem>>, vector<1x1x128xf32>
    %95 = vector.shape_cast %94 : vector<1x1x128xf32> to vector<1x128xf32>
    %96 = vector.broadcast %95 : vector<1x128xf32> to vector<8x128xf32>
    %97 = arith.addf %93, %96 : vector<8x128xf32>
    %c1_80 = arith.constant 1 : index
    %c1_81 = arith.constant 1 : index
    %c0_82 = arith.constant 0 : index
    %c0_83 = arith.constant 0 : index
    %98 = vector.load %arg14[%c1_80, %c1_81, %c0_82, %c0_83] : memref<8x8x8x128xf32, #tpu.memory_space<vmem>>, vector<1x1x8x128xf32>
    %99 = vector.shape_cast %98 : vector<1x1x8x128xf32> to vector<8x128xf32>
    %100 = vector.shape_cast %97 : vector<8x128xf32> to vector<1x1x8x128xf32>
    tpu.vector_store %arg14[%c1_80, %c1_81, %c0_82, %c0_83], %100 {strides = array<i32>} : memref<8x8x8x128xf32, #tpu.memory_space<vmem>>, vector<1x1x8x128xf32>,
    %c2_84 = arith.constant 2 : index
    %c1_85 = arith.constant 1 : index
    %101 = memref.load %arg10[%c2_84, %c1_85] : memref<8x8xf32, #tpu.memory_space<smem>>
    %102 = vector.broadcast %101 : f32 to vector<8x128xf32>
    %103 = arith.mulf %102, %0 : vector<8x128xf32>
    %c1_86 = arith.constant 1 : index
    %c2_87 = arith.constant 2 : index
    %c0_88 = arith.constant 0 : index
    %104 = vector.load %arg1[%c1_86, %c2_87, %c0_88] : memref<8x8x128xf32, #tpu.memory_space<vmem>>, vector<1x1x128xf32>
    %105 = vector.shape_cast %104 : vector<1x1x128xf32> to vector<1x128xf32>
    %106 = vector.broadcast %105 : vector<1x128xf32> to vector<8x128xf32>
    %107 = arith.addf %103, %106 : vector<8x128xf32>
    %c1_89 = arith.constant 1 : index
    %c2_90 = arith.constant 2 : index
    %c0_91 = arith.constant 0 : index
    %c0_92 = arith.constant 0 : index
    %108 = vector.load %arg14[%c1_89, %c2_90, %c0_91, %c0_92] : memref<8x8x8x128xf32, #tpu.memory_space<vmem>>, vector<1x1x8x128xf32>
    %109 = vector.shape_cast %108 : vector<1x1x8x128xf32> to vector<8x128xf32>
    %110 = vector.shape_cast %107 : vector<8x128xf32> to vector<1x1x8x128xf32>
    tpu.vector_store %arg14[%c1_89, %c2_90, %c0_91, %c0_92], %110 {strides = array<i32>} : memref<8x8x8x128xf32, #tpu.memory_space<vmem>>, vector<1x1x8x128xf32>,
    %c3_93 = arith.constant 3 : index
    %c1_94 = arith.constant 1 : index
    %111 = memref.load %arg10[%c3_93, %c1_94] : memref<8x8xf32, #tpu.memory_space<smem>>
    %112 = vector.broadcast %111 : f32 to vector<8x128xf32>
    %113 = arith.mulf %112, %0 : vector<8x128xf32>
    %c1_95 = arith.constant 1 : index
    %c3_96 = arith.constant 3 : index
    %c0_97 = arith.constant 0 : index
    %114 = vector.load %arg1[%c1_95, %c3_96, %c0_97] : memref<8x8x128xf32, #tpu.memory_space<vmem>>, vector<1x1x128xf32>
    %115 = vector.shape_cast %114 : vector<1x1x128xf32> to vector<1x128xf32>
    %116 = vector.broadcast %115 : vector<1x128xf32> to vector<8x128xf32>
    %117 = arith.addf %113, %116 : vector<8x128xf32>
    %c1_98 = arith.constant 1 : index
    %c3_99 = arith.constant 3 : index
    %c0_100 = arith.constant 0 : index
    %c0_101 = arith.constant 0 : index
    %118 = vector.load %arg14[%c1_98, %c3_99, %c0_100, %c0_101] : memref<8x8x8x128xf32, #tpu.memory_space<vmem>>, vector<1x1x8x128xf32>
    %119 = vector.shape_cast %118 : vector<1x1x8x128xf32> to vector<8x128xf32>
    %120 = vector.shape_cast %117 : vector<8x128xf32> to vector<1x1x8x128xf32>
    tpu.vector_store %arg14[%c1_98, %c3_99, %c0_100, %c0_101], %120 {strides = array<i32>} : memref<8x8x8x128xf32, #tpu.memory_space<vmem>>, vector<1x1x8x128xf32>,
    %c4_102 = arith.constant 4 : index
    %c1_103 = arith.constant 1 : index
    %121 = memref.load %arg10[%c4_102, %c1_103] : memref<8x8xf32, #tpu.memory_space<smem>>
    %122 = vector.broadcast %121 : f32 to vector<8x128xf32>
    %123 = arith.mulf %122, %0 : vector<8x128xf32>
    %c1_104 = arith.constant 1 : index
    %c4_105 = arith.constant 4 : index
    %c0_106 = arith.constant 0 : index
    %124 = vector.load %arg1[%c1_104, %c4_105, %c0_106] : memref<8x8x128xf32, #tpu.memory_space<vmem>>, vector<1x1x128xf32>
    %125 = vector.shape_cast %124 : vector<1x1x128xf32> to vector<1x128xf32>
    %126 = vector.broadcast %125 : vector<1x128xf32> to vector<8x128xf32>
    %127 = arith.addf %123, %126 : vector<8x128xf32>
    %c1_107 = arith.constant 1 : index
    %c4_108 = arith.constant 4 : index
    %c0_109 = arith.constant 0 : index
    %c0_110 = arith.constant 0 : index
    %128 = vector.load %arg14[%c1_107, %c4_108, %c0_109, %c0_110] : memref<8x8x8x128xf32, #tpu.memory_space<vmem>>, vector<1x1x8x128xf32>
    %129 = vector.shape_cast %128 : vector<1x1x8x128xf32> to vector<8x128xf32>
    %130 = vector.shape_cast %127 : vector<8x128xf32> to vector<1x1x8x128xf32>
    tpu.vector_store %arg14[%c1_107, %c4_108, %c0_109, %c0_110], %130 {strides = array<i32>} : memref<8x8x8x128xf32, #tpu.memory_space<vmem>>, vector<1x1x8x128xf32>,
    %c5_111 = arith.constant 5 : index
    %c1_112 = arith.constant 1 : index
    %131 = memref.load %arg10[%c5_111, %c1_112] : memref<8x8xf32, #tpu.memory_space<smem>>
    %132 = vector.broadcast %131 : f32 to vector<8x128xf32>
    %133 = arith.mulf %132, %0 : vector<8x128xf32>
    %c1_113 = arith.constant 1 : index
    %c5_114 = arith.constant 5 : index
    %c0_115 = arith.constant 0 : index
    %134 = vector.load %arg1[%c1_113, %c5_114, %c0_115] : memref<8x8x128xf32, #tpu.memory_space<vmem>>, vector<1x1x128xf32>
    %135 = vector.shape_cast %134 : vector<1x1x128xf32> to vector<1x128xf32>
    %136 = vector.broadcast %135 : vector<1x128xf32> to vector<8x128xf32>
    %137 = arith.addf %133, %136 : vector<8x128xf32>
    %c1_116 = arith.constant 1 : index
    %c5_117 = arith.constant 5 : index
    %c0_118 = arith.constant 0 : index
    %c0_119 = arith.constant 0 : index
    %138 = vector.load %arg14[%c1_116, %c5_117, %c0_118, %c0_119] : memref<8x8x8x128xf32, #tpu.memory_space<vmem>>, vector<1x1x8x128xf32>
    %139 = vector.shape_cast %138 : vector<1x1x8x128xf32> to vector<8x128xf32>
    %140 = vector.shape_cast %137 : vector<8x128xf32> to vector<1x1x8x128xf32>
    tpu.vector_store %arg14[%c1_116, %c5_117, %c0_118, %c0_119], %140 {strides = array<i32>} : memref<8x8x8x128xf32, #tpu.memory_space<vmem>>, vector<1x1x8x128xf32>,
    %c6_120 = arith.constant 6 : index
    %c1_121 = arith.constant 1 : index
    %141 = memref.load %arg10[%c6_120, %c1_121] : memref<8x8xf32, #tpu.memory_space<smem>>
    %142 = vector.broadcast %141 : f32 to vector<8x128xf32>
    %143 = arith.mulf %142, %0 : vector<8x128xf32>
    %c1_122 = arith.constant 1 : index
    %c6_123 = arith.constant 6 : index
    %c0_124 = arith.constant 0 : index
    %144 = vector.load %arg1[%c1_122, %c6_123, %c0_124] : memref<8x8x128xf32, #tpu.memory_space<vmem>>, vector<1x1x128xf32>
    %145 = vector.shape_cast %144 : vector<1x1x128xf32> to vector<1x128xf32>
    %146 = vector.broadcast %145 : vector<1x128xf32> to vector<8x128xf32>
    %147 = arith.addf %143, %146 : vector<8x128xf32>
    %c1_125 = arith.constant 1 : index
    %c6_126 = arith.constant 6 : index
    %c0_127 = arith.constant 0 : index
    %c0_128 = arith.constant 0 : index
    %148 = vector.load %arg14[%c1_125, %c6_126, %c0_127, %c0_128] : memref<8x8x8x128xf32, #tpu.memory_space<vmem>>, vector<1x1x8x128xf32>
    %149 = vector.shape_cast %148 : vector<1x1x8x128xf32> to vector<8x128xf32>
    %150 = vector.shape_cast %147 : vector<8x128xf32> to vector<1x1x8x128xf32>
    tpu.vector_store %arg14[%c1_125, %c6_126, %c0_127, %c0_128], %150 {strides = array<i32>} : memref<8x8x8x128xf32, #tpu.memory_space<vmem>>, vector<1x1x8x128xf32>,
    %c7_129 = arith.constant 7 : index
    %c1_130 = arith.constant 1 : index
    %151 = memref.load %arg10[%c7_129, %c1_130] : memref<8x8xf32, #tpu.memory_space<smem>>
    %152 = vector.broadcast %151 : f32 to vector<8x128xf32>
    %153 = arith.mulf %152, %0 : vector<8x128xf32>
    %c1_131 = arith.constant 1 : index
    %c7_132 = arith.constant 7 : index
    %c0_133 = arith.constant 0 : index
    %154 = vector.load %arg1[%c1_131, %c7_132, %c0_133] : memref<8x8x128xf32, #tpu.memory_space<vmem>>, vector<1x1x128xf32>
    %155 = vector.shape_cast %154 : vector<1x1x128xf32> to vector<1x128xf32>
    %156 = vector.broadcast %155 : vector<1x128xf32> to vector<8x128xf32>
    %157 = arith.addf %153, %156 : vector<8x128xf32>
    %c1_134 = arith.constant 1 : index
    %c7_135 = arith.constant 7 : index
    %c0_136 = arith.constant 0 : index
    %c0_137 = arith.constant 0 : index
    %158 = vector.load %arg14[%c1_134, %c7_135, %c0_136, %c0_137] : memref<8x8x8x128xf32, #tpu.memory_space<vmem>>, vector<1x1x8x128xf32>
    %159 = vector.shape_cast %158 : vector<1x1x8x128xf32> to vector<8x128xf32>
    %160 = vector.shape_cast %157 : vector<8x128xf32> to vector<1x1x8x128xf32>
    tpu.vector_store %arg14[%c1_134, %c7_135, %c0_136, %c0_137], %160 {strides = array<i32>} : memref<8x8x8x128xf32, #tpu.memory_space<vmem>>, vector<1x1x8x128xf32>,
    %c0_138 = arith.constant 0 : index
    %c2_139 = arith.constant 2 : index
    %161 = memref.load %arg10[%c0_138, %c2_139] : memref<8x8xf32, #tpu.memory_space<smem>>
    %162 = vector.broadcast %161 : f32 to vector<8x128xf32>
    %163 = arith.mulf %162, %0 : vector<8x128xf32>
    %c2_140 = arith.constant 2 : index
    %c0_141 = arith.constant 0 : index
    %c0_142 = arith.constant 0 : index
    %164 = vector.load %arg1[%c2_140, %c0_141, %c0_142] : memref<8x8x128xf32, #tpu.memory_space<vmem>>, vector<1x1x128xf32>
    %165 = vector.shape_cast %164 : vector<1x1x128xf32> to vector<1x128xf32>
    %166 = vector.broadcast %165 : vector<1x128xf32> to vector<8x128xf32>
    %167 = arith.addf %163, %166 : vector<8x128xf32>
    %c2_143 = arith.constant 2 : index
    %c0_144 = arith.constant 0 : index
    %c0_145 = arith.constant 0 : index
    %c0_146 = arith.constant 0 : index
    %168 = vector.load %arg14[%c2_143, %c0_144, %c0_145, %c0_146] : memref<8x8x8x128xf32, #tpu.memory_space<vmem>>, vector<1x1x8x128xf32>
    %169 = vector.shape_cast %168 : vector<1x1x8x128xf32> to vector<8x128xf32>
    %170 = vector.shape_cast %167 : vector<8x128xf32> to vector<1x1x8x128xf32>
    tpu.vector_store %arg14[%c2_143, %c0_144, %c0_145, %c0_146], %170 {strides = array<i32>} : memref<8x8x8x128xf32, #tpu.memory_space<vmem>>, vector<1x1x8x128xf32>,
    %c1_147 = arith.constant 1 : index
    %c2_148 = arith.constant 2 : index
    %171 = memref.load %arg10[%c1_147, %c2_148] : memref<8x8xf32, #tpu.memory_space<smem>>
    %172 = vector.broadcast %171 : f32 to vector<8x128xf32>
    %173 = arith.mulf %172, %0 : vector<8x128xf32>
    %c2_149 = arith.constant 2 : index
    %c1_150 = arith.constant 1 : index
    %c0_151 = arith.constant 0 : index
    %174 = vector.load %arg1[%c2_149, %c1_150, %c0_151] : memref<8x8x128xf32, #tpu.memory_space<vmem>>, vector<1x1x128xf32>
    %175 = vector.shape_cast %174 : vector<1x1x128xf32> to vector<1x128xf32>
    %176 = vector.broadcast %175 : vector<1x128xf32> to vector<8x128xf32>
    %177 = arith.addf %173, %176 : vector<8x128xf32>
    %c2_152 = arith.constant 2 : index
    %c1_153 = arith.constant 1 : index
    %c0_154 = arith.constant 0 : index
    %c0_155 = arith.constant 0 : index
    %178 = vector.load %arg14[%c2_152, %c1_153, %c0_154, %c0_155] : memref<8x8x8x128xf32, #tpu.memory_space<vmem>>, vector<1x1x8x128xf32>
    %179 = vector.shape_cast %178 : vector<1x1x8x128xf32> to vector<8x128xf32>
    %180 = vector.shape_cast %177 : vector<8x128xf32> to vector<1x1x8x128xf32>
    tpu.vector_store %arg14[%c2_152, %c1_153, %c0_154, %c0_155], %180 {strides = array<i32>} : memref<8x8x8x128xf32, #tpu.memory_space<vmem>>, vector<1x1x8x128xf32>,
    %c2_156 = arith.constant 2 : index
    %c2_157 = arith.constant 2 : index
    %181 = memref.load %arg10[%c2_156, %c2_157] : memref<8x8xf32, #tpu.memory_space<smem>>
    %182 = vector.broadcast %181 : f32 to vector<8x128xf32>
    %183 = arith.mulf %182, %0 : vector<8x128xf32>
    %c2_158 = arith.constant 2 : index
    %c2_159 = arith.constant 2 : index
    %c0_160 = arith.constant 0 : index
    %184 = vector.load %arg1[%c2_158, %c2_159, %c0_160] : memref<8x8x128xf32, #tpu.memory_space<vmem>>, vector<1x1x128xf32>
    %185 = vector.shape_cast %184 : vector<1x1x128xf32> to vector<1x128xf32>
    %186 = vector.broadcast %185 : vector<1x128xf32> to vector<8x128xf32>
    %187 = arith.addf %183, %186 : vector<8x128xf32>
    %c2_161 = arith.constant 2 : index
    %c2_162 = arith.constant 2 : index
    %c0_163 = arith.constant 0 : index
    %c0_164 = arith.constant 0 : index
    %188 = vector.load %arg14[%c2_161, %c2_162, %c0_163, %c0_164] : memref<8x8x8x128xf32, #tpu.memory_space<vmem>>, vector<1x1x8x128xf32>
    %189 = vector.shape_cast %188 : vector<1x1x8x128xf32> to vector<8x128xf32>
    %190 = vector.shape_cast %187 : vector<8x128xf32> to vector<1x1x8x128xf32>
    tpu.vector_store %arg14[%c2_161, %c2_162, %c0_163, %c0_164], %190 {strides = array<i32>} : memref<8x8x8x128xf32, #tpu.memory_space<vmem>>, vector<1x1x8x128xf32>,
    %c3_165 = arith.constant 3 : index
    %c2_166 = arith.constant 2 : index
    %191 = memref.load %arg10[%c3_165, %c2_166] : memref<8x8xf32, #tpu.memory_space<smem>>
    %192 = vector.broadcast %191 : f32 to vector<8x128xf32>
    %193 = arith.mulf %192, %0 : vector<8x128xf32>
    %c2_167 = arith.constant 2 : index
    %c3_168 = arith.constant 3 : index
    %c0_169 = arith.constant 0 : index
    %194 = vector.load %arg1[%c2_167, %c3_168, %c0_169] : memref<8x8x128xf32, #tpu.memory_space<vmem>>, vector<1x1x128xf32>
    %195 = vector.shape_cast %194 : vector<1x1x128xf32> to vector<1x128xf32>
    %196 = vector.broadcast %195 : vector<1x128xf32> to vector<8x128xf32>
    %197 = arith.addf %193, %196 : vector<8x128xf32>
    %c2_170 = arith.constant 2 : index
    %c3_171 = arith.constant 3 : index
    %c0_172 = arith.constant 0 : index
    %c0_173 = arith.constant 0 : index
    %198 = vector.load %arg14[%c2_170, %c3_171, %c0_172, %c0_173] : memref<8x8x8x128xf32, #tpu.memory_space<vmem>>, vector<1x1x8x128xf32>
    %199 = vector.shape_cast %198 : vector<1x1x8x128xf32> to vector<8x128xf32>
    %200 = vector.shape_cast %197 : vector<8x128xf32> to vector<1x1x8x128xf32>
    tpu.vector_store %arg14[%c2_170, %c3_171, %c0_172, %c0_173], %200 {strides = array<i32>} : memref<8x8x8x128xf32, #tpu.memory_space<vmem>>, vector<1x1x8x128xf32>,
    %c4_174 = arith.constant 4 : index
    %c2_175 = arith.constant 2 : index
    %201 = memref.load %arg10[%c4_174, %c2_175] : memref<8x8xf32, #tpu.memory_space<smem>>
    %202 = vector.broadcast %201 : f32 to vector<8x128xf32>
    %203 = arith.mulf %202, %0 : vector<8x128xf32>
    %c2_176 = arith.constant 2 : index
    %c4_177 = arith.constant 4 : index
    %c0_178 = arith.constant 0 : index
    %204 = vector.load %arg1[%c2_176, %c4_177, %c0_178] : memref<8x8x128xf32, #tpu.memory_space<vmem>>, vector<1x1x128xf32>
    %205 = vector.shape_cast %204 : vector<1x1x128xf32> to vector<1x128xf32>
    %206 = vector.broadcast %205 : vector<1x128xf32> to vector<8x128xf32>
    %207 = arith.addf %203, %206 : vector<8x128xf32>
    %c2_179 = arith.constant 2 : index
    %c4_180 = arith.constant 4 : index
    %c0_181 = arith.constant 0 : index
    %c0_182 = arith.constant 0 : index
    %208 = vector.load %arg14[%c2_179, %c4_180, %c0_181, %c0_182] : memref<8x8x8x128xf32, #tpu.memory_space<vmem>>, vector<1x1x8x128xf32>
    %209 = vector.shape_cast %208 : vector<1x1x8x128xf32> to vector<8x128xf32>
    %210 = vector.shape_cast %207 : vector<8x128xf32> to vector<1x1x8x128xf32>
    tpu.vector_store %arg14[%c2_179, %c4_180, %c0_181, %c0_182], %210 {strides = array<i32>} : memref<8x8x8x128xf32, #tpu.memory_space<vmem>>, vector<1x1x8x128xf32>,
    %c5_183 = arith.constant 5 : index
    %c2_184 = arith.constant 2 : index
    %211 = memref.load %arg10[%c5_183, %c2_184] : memref<8x8xf32, #tpu.memory_space<smem>>
    %212 = vector.broadcast %211 : f32 to vector<8x128xf32>
    %213 = arith.mulf %212, %0 : vector<8x128xf32>
    %c2_185 = arith.constant 2 : index
    %c5_186 = arith.constant 5 : index
    %c0_187 = arith.constant 0 : index
    %214 = vector.load %arg1[%c2_185, %c5_186, %c0_187] : memref<8x8x128xf32, #tpu.memory_space<vmem>>, vector<1x1x128xf32>
    %215 = vector.shape_cast %214 : vector<1x1x128xf32> to vector<1x128xf32>
    %216 = vector.broadcast %215 : vector<1x128xf32> to vector<8x128xf32>
    %217 = arith.addf %213, %216 : vector<8x128xf32>
    %c2_188 = arith.constant 2 : index
    %c5_189 = arith.constant 5 : index
    %c0_190 = arith.constant 0 : index
    %c0_191 = arith.constant 0 : index
    %218 = vector.load %arg14[%c2_188, %c5_189, %c0_190, %c0_191] : memref<8x8x8x128xf32, #tpu.memory_space<vmem>>, vector<1x1x8x128xf32>
    %219 = vector.shape_cast %218 : vector<1x1x8x128xf32> to vector<8x128xf32>
    %220 = vector.shape_cast %217 : vector<8x128xf32> to vector<1x1x8x128xf32>
    tpu.vector_store %arg14[%c2_188, %c5_189, %c0_190, %c0_191], %220 {strides = array<i32>} : memref<8x8x8x128xf32, #tpu.memory_space<vmem>>, vector<1x1x8x128xf32>,
    %c6_192 = arith.constant 6 : index
    %c2_193 = arith.constant 2 : index
    %221 = memref.load %arg10[%c6_192, %c2_193] : memref<8x8xf32, #tpu.memory_space<smem>>
    %222 = vector.broadcast %221 : f32 to vector<8x128xf32>
    %223 = arith.mulf %222, %0 : vector<8x128xf32>
    %c2_194 = arith.constant 2 : index
    %c6_195 = arith.constant 6 : index
    %c0_196 = arith.constant 0 : index
    %224 = vector.load %arg1[%c2_194, %c6_195, %c0_196] : memref<8x8x128xf32, #tpu.memory_space<vmem>>, vector<1x1x128xf32>
    %225 = vector.shape_cast %224 : vector<1x1x128xf32> to vector<1x128xf32>
    %226 = vector.broadcast %225 : vector<1x128xf32> to vector<8x128xf32>
    %227 = arith.addf %223, %226 : vector<8x128xf32>
    %c2_197 = arith.constant 2 : index
    %c6_198 = arith.constant 6 : index
    %c0_199 = arith.constant 0 : index
    %c0_200 = arith.constant 0 : index
    %228 = vector.load %arg14[%c2_197, %c6_198, %c0_199, %c0_200] : memref<8x8x8x128xf32, #tpu.memory_space<vmem>>, vector<1x1x8x128xf32>
    %229 = vector.shape_cast %228 : vector<1x1x8x128xf32> to vector<8x128xf32>
    %230 = vector.shape_cast %227 : vector<8x128xf32> to vector<1x1x8x128xf32>
    tpu.vector_store %arg14[%c2_197, %c6_198, %c0_199, %c0_200], %230 {strides = array<i32>} : memref<8x8x8x128xf32, #tpu.memory_space<vmem>>, vector<1x1x8x128xf32>,
    %c7_201 = arith.constant 7 : index
    %c2_202 = arith.constant 2 : index
    %231 = memref.load %arg10[%c7_201, %c2_202] : memref<8x8xf32, #tpu.memory_space<smem>>
    %232 = vector.broadcast %231 : f32 to vector<8x128xf32>
    %233 = arith.mulf %232, %0 : vector<8x128xf32>
    %c2_203 = arith.constant 2 : index
    %c7_204 = arith.constant 7 : index
    %c0_205 = arith.constant 0 : index
    %234 = vector.load %arg1[%c2_203, %c7_204, %c0_205] : memref<8x8x128xf32, #tpu.memory_space<vmem>>, vector<1x1x128xf32>
    %235 = vector.shape_cast %234 : vector<1x1x128xf32> to vector<1x128xf32>
    %236 = vector.broadcast %235 : vector<1x128xf32> to vector<8x128xf32>
    %237 = arith.addf %233, %236 : vector<8x128xf32>
    %c2_206 = arith.constant 2 : index
    %c7_207 = arith.constant 7 : index
    %c0_208 = arith.constant 0 : index
    %c0_209 = arith.constant 0 : index
    %238 = vector.load %arg14[%c2_206, %c7_207, %c0_208, %c0_209] : memref<8x8x8x128xf32, #tpu.memory_space<vmem>>, vector<1x1x8x128xf32>
    %239 = vector.shape_cast %238 : vector<1x1x8x128xf32> to vector<8x128xf32>
    %240 = vector.shape_cast %237 : vector<8x128xf32> to vector<1x1x8x128xf32>
    tpu.vector_store %arg14[%c2_206, %c7_207, %c0_208, %c0_209], %240 {strides = array<i32>} : memref<8x8x8x128xf32, #tpu.memory_space<vmem>>, vector<1x1x8x128xf32>,
    %c0_210 = arith.constant 0 : index
    %c3_211 = arith.constant 3 : index
    %241 = memref.load %arg10[%c0_210, %c3_211] : memref<8x8xf32, #tpu.memory_space<smem>>
    %242 = vector.broadcast %241 : f32 to vector<8x128xf32>
    %243 = arith.mulf %242, %0 : vector<8x128xf32>
    %c3_212 = arith.constant 3 : index
    %c0_213 = arith.constant 0 : index
    %c0_214 = arith.constant 0 : index
    %244 = vector.load %arg1[%c3_212, %c0_213, %c0_214] : memref<8x8x128xf32, #tpu.memory_space<vmem>>, vector<1x1x128xf32>
    %245 = vector.shape_cast %244 : vector<1x1x128xf32> to vector<1x128xf32>
    %246 = vector.broadcast %245 : vector<1x128xf32> to vector<8x128xf32>
    %247 = arith.addf %243, %246 : vector<8x128xf32>
    %c3_215 = arith.constant 3 : index
    %c0_216 = arith.constant 0 : index
    %c0_217 = arith.constant 0 : index
    %c0_218 = arith.constant 0 : index
    %248 = vector.load %arg14[%c3_215, %c0_216, %c0_217, %c0_218] : memref<8x8x8x128xf32, #tpu.memory_space<vmem>>, vector<1x1x8x128xf32>
    %249 = vector.shape_cast %248 : vector<1x1x8x128xf32> to vector<8x128xf32>
    %250 = vector.shape_cast %247 : vector<8x128xf32> to vector<1x1x8x128xf32>
    tpu.vector_store %arg14[%c3_215, %c0_216, %c0_217, %c0_218], %250 {strides = array<i32>} : memref<8x8x8x128xf32, #tpu.memory_space<vmem>>, vector<1x1x8x128xf32>,
    %c1_219 = arith.constant 1 : index
    %c3_220 = arith.constant 3 : index
    %251 = memref.load %arg10[%c1_219, %c3_220] : memref<8x8xf32, #tpu.memory_space<smem>>
    %252 = vector.broadcast %251 : f32 to vector<8x128xf32>
    %253 = arith.mulf %252, %0 : vector<8x128xf32>
    %c3_221 = arith.constant 3 : index
    %c1_222 = arith.constant 1 : index
    %c0_223 = arith.constant 0 : index
    %254 = vector.load %arg1[%c3_221, %c1_222, %c0_223] : memref<8x8x128xf32, #tpu.memory_space<vmem>>, vector<1x1x128xf32>
    %255 = vector.shape_cast %254 : vector<1x1x128xf32> to vector<1x128xf32>
    %256 = vector.broadcast %255 : vector<1x128xf32> to vector<8x128xf32>
    %257 = arith.addf %253, %256 : vector<8x128xf32>
    %c3_224 = arith.constant 3 : index
    %c1_225 = arith.constant 1 : index
    %c0_226 = arith.constant 0 : index
    %c0_227 = arith.constant 0 : index
    %258 = vector.load %arg14[%c3_224, %c1_225, %c0_226, %c0_227] : memref<8x8x8x128xf32, #tpu.memory_space<vmem>>, vector<1x1x8x128xf32>
    %259 = vector.shape_cast %258 : vector<1x1x8x128xf32> to vector<8x128xf32>
    %260 = vector.shape_cast %257 : vector<8x128xf32> to vector<1x1x8x128xf32>
    tpu.vector_store %arg14[%c3_224, %c1_225, %c0_226, %c0_227], %260 {strides = array<i32>} : memref<8x8x8x128xf32, #tpu.memory_space<vmem>>, vector<1x1x8x128xf32>,
    %c2_228 = arith.constant 2 : index
    %c3_229 = arith.constant 3 : index
    %261 = memref.load %arg10[%c2_228, %c3_229] : memref<8x8xf32, #tpu.memory_space<smem>>
    %262 = vector.broadcast %261 : f32 to vector<8x128xf32>
    %263 = arith.mulf %262, %0 : vector<8x128xf32>
    %c3_230 = arith.constant 3 : index
    %c2_231 = arith.constant 2 : index
    %c0_232 = arith.constant 0 : index
    %264 = vector.load %arg1[%c3_230, %c2_231, %c0_232] : memref<8x8x128xf32, #tpu.memory_space<vmem>>, vector<1x1x128xf32>
    %265 = vector.shape_cast %264 : vector<1x1x128xf32> to vector<1x128xf32>
    %266 = vector.broadcast %265 : vector<1x128xf32> to vector<8x128xf32>
    %267 = arith.addf %263, %266 : vector<8x128xf32>
    %c3_233 = arith.constant 3 : index
    %c2_234 = arith.constant 2 : index
    %c0_235 = arith.constant 0 : index
    %c0_236 = arith.constant 0 : index
    %268 = vector.load %arg14[%c3_233, %c2_234, %c0_235, %c0_236] : memref<8x8x8x128xf32, #tpu.memory_space<vmem>>, vector<1x1x8x128xf32>
    %269 = vector.shape_cast %268 : vector<1x1x8x128xf32> to vector<8x128xf32>
    %270 = vector.shape_cast %267 : vector<8x128xf32> to vector<1x1x8x128xf32>
    tpu.vector_store %arg14[%c3_233, %c2_234, %c0_235, %c0_236], %270 {strides = array<i32>} : memref<8x8x8x128xf32, #tpu.memory_space<vmem>>, vector<1x1x8x128xf32>,
    %c3_237 = arith.constant 3 : index
    %c3_238 = arith.constant 3 : index
    %271 = memref.load %arg10[%c3_237, %c3_238] : memref<8x8xf32, #tpu.memory_space<smem>>
    %272 = vector.broadcast %271 : f32 to vector<8x128xf32>
    %273 = arith.mulf %272, %0 : vector<8x128xf32>
    %c3_239 = arith.constant 3 : index
    %c3_240 = arith.constant 3 : index
    %c0_241 = arith.constant 0 : index
    %274 = vector.load %arg1[%c3_239, %c3_240, %c0_241] : memref<8x8x128xf32, #tpu.memory_space<vmem>>, vector<1x1x128xf32>
    %275 = vector.shape_cast %274 : vector<1x1x128xf32> to vector<1x128xf32>
    %276 = vector.broadcast %275 : vector<1x128xf32> to vector<8x128xf32>
    %277 = arith.addf %273, %276 : vector<8x128xf32>
    %c3_242 = arith.constant 3 : index
    %c3_243 = arith.constant 3 : index
    %c0_244 = arith.constant 0 : index
    %c0_245 = arith.constant 0 : index
    %278 = vector.load %arg14[%c3_242, %c3_243, %c0_244, %c0_245] : memref<8x8x8x128xf32, #tpu.memory_space<vmem>>, vector<1x1x8x128xf32>
    %279 = vector.shape_cast %278 : vector<1x1x8x128xf32> to vector<8x128xf32>
    %280 = vector.shape_cast %277 : vector<8x128xf32> to vector<1x1x8x128xf32>
    tpu.vector_store %arg14[%c3_242, %c3_243, %c0_244, %c0_245], %280 {strides = array<i32>} : memref<8x8x8x128xf32, #tpu.memory_space<vmem>>, vector<1x1x8x128xf32>,
    %c4_246 = arith.constant 4 : index
    %c3_247 = arith.constant 3 : index
    %281 = memref.load %arg10[%c4_246, %c3_247] : memref<8x8xf32, #tpu.memory_space<smem>>
    %282 = vector.broadcast %281 : f32 to vector<8x128xf32>
    %283 = arith.mulf %282, %0 : vector<8x128xf32>
    %c3_248 = arith.constant 3 : index
    %c4_249 = arith.constant 4 : index
    %c0_250 = arith.constant 0 : index
    %284 = vector.load %arg1[%c3_248, %c4_249, %c0_250] : memref<8x8x128xf32, #tpu.memory_space<vmem>>, vector<1x1x128xf32>
    %285 = vector.shape_cast %284 : vector<1x1x128xf32> to vector<1x128xf32>
    %286 = vector.broadcast %285 : vector<1x128xf32> to vector<8x128xf32>
    %287 = arith.addf %283, %286 : vector<8x128xf32>
    %c3_251 = arith.constant 3 : index
    %c4_252 = arith.constant 4 : index
    %c0_253 = arith.constant 0 : index
    %c0_254 = arith.constant 0 : index
    %288 = vector.load %arg14[%c3_251, %c4_252, %c0_253, %c0_254] : memref<8x8x8x128xf32, #tpu.memory_space<vmem>>, vector<1x1x8x128xf32>
    %289 = vector.shape_cast %288 : vector<1x1x8x128xf32> to vector<8x128xf32>
    %290 = vector.shape_cast %287 : vector<8x128xf32> to vector<1x1x8x128xf32>
    tpu.vector_store %arg14[%c3_251, %c4_252, %c0_253, %c0_254], %290 {strides = array<i32>} : memref<8x8x8x128xf32, #tpu.memory_space<vmem>>, vector<1x1x8x128xf32>,
    %c5_255 = arith.constant 5 : index
    %c3_256 = arith.constant 3 : index
    %291 = memref.load %arg10[%c5_255, %c3_256] : memref<8x8xf32, #tpu.memory_space<smem>>
    %292 = vector.broadcast %291 : f32 to vector<8x128xf32>
    %293 = arith.mulf %292, %0 : vector<8x128xf32>
    %c3_257 = arith.constant 3 : index
    %c5_258 = arith.constant 5 : index
    %c0_259 = arith.constant 0 : index
    %294 = vector.load %arg1[%c3_257, %c5_258, %c0_259] : memref<8x8x128xf32, #tpu.memory_space<vmem>>, vector<1x1x128xf32>
    %295 = vector.shape_cast %294 : vector<1x1x128xf32> to vector<1x128xf32>
    %296 = vector.broadcast %295 : vector<1x128xf32> to vector<8x128xf32>
    %297 = arith.addf %293, %296 : vector<8x128xf32>
    %c3_260 = arith.constant 3 : index
    %c5_261 = arith.constant 5 : index
    %c0_262 = arith.constant 0 : index
    %c0_263 = arith.constant 0 : index
    %298 = vector.load %arg14[%c3_260, %c5_261, %c0_262, %c0_263] : memref<8x8x8x128xf32, #tpu.memory_space<vmem>>, vector<1x1x8x128xf32>
    %299 = vector.shape_cast %298 : vector<1x1x8x128xf32> to vector<8x128xf32>
    %300 = vector.shape_cast %297 : vector<8x128xf32> to vector<1x1x8x128xf32>
    tpu.vector_store %arg14[%c3_260, %c5_261, %c0_262, %c0_263], %300 {strides = array<i32>} : memref<8x8x8x128xf32, #tpu.memory_space<vmem>>, vector<1x1x8x128xf32>,
    %c6_264 = arith.constant 6 : index
    %c3_265 = arith.constant 3 : index
    %301 = memref.load %arg10[%c6_264, %c3_265] : memref<8x8xf32, #tpu.memory_space<smem>>
    %302 = vector.broadcast %301 : f32 to vector<8x128xf32>
    %303 = arith.mulf %302, %0 : vector<8x128xf32>
    %c3_266 = arith.constant 3 : index
    %c6_267 = arith.constant 6 : index
    %c0_268 = arith.constant 0 : index
    %304 = vector.load %arg1[%c3_266, %c6_267, %c0_268] : memref<8x8x128xf32, #tpu.memory_space<vmem>>, vector<1x1x128xf32>
    %305 = vector.shape_cast %304 : vector<1x1x128xf32> to vector<1x128xf32>
    %306 = vector.broadcast %305 : vector<1x128xf32> to vector<8x128xf32>
    %307 = arith.addf %303, %306 : vector<8x128xf32>
    %c3_269 = arith.constant 3 : index
    %c6_270 = arith.constant 6 : index
    %c0_271 = arith.constant 0 : index
    %c0_272 = arith.constant 0 : index
    %308 = vector.load %arg14[%c3_269, %c6_270, %c0_271, %c0_272] : memref<8x8x8x128xf32, #tpu.memory_space<vmem>>, vector<1x1x8x128xf32>
    %309 = vector.shape_cast %308 : vector<1x1x8x128xf32> to vector<8x128xf32>
    %310 = vector.shape_cast %307 : vector<8x128xf32> to vector<1x1x8x128xf32>
    tpu.vector_store %arg14[%c3_269, %c6_270, %c0_271, %c0_272], %310 {strides = array<i32>} : memref<8x8x8x128xf32, #tpu.memory_space<vmem>>, vector<1x1x8x128xf32>,
    %c7_273 = arith.constant 7 : index
    %c3_274 = arith.constant 3 : index
    %311 = memref.load %arg10[%c7_273, %c3_274] : memref<8x8xf32, #tpu.memory_space<smem>>
    %312 = vector.broadcast %311 : f32 to vector<8x128xf32>
    %313 = arith.mulf %312, %0 : vector<8x128xf32>
    %c3_275 = arith.constant 3 : index
    %c7_276 = arith.constant 7 : index
    %c0_277 = arith.constant 0 : index
    %314 = vector.load %arg1[%c3_275, %c7_276, %c0_277] : memref<8x8x128xf32, #tpu.memory_space<vmem>>, vector<1x1x128xf32>
    %315 = vector.shape_cast %314 : vector<1x1x128xf32> to vector<1x128xf32>
    %316 = vector.broadcast %315 : vector<1x128xf32> to vector<8x128xf32>
    %317 = arith.addf %313, %316 : vector<8x128xf32>
    %c3_278 = arith.constant 3 : index
    %c7_279 = arith.constant 7 : index
    %c0_280 = arith.constant 0 : index
    %c0_281 = arith.constant 0 : index
    %318 = vector.load %arg14[%c3_278, %c7_279, %c0_280, %c0_281] : memref<8x8x8x128xf32, #tpu.memory_space<vmem>>, vector<1x1x8x128xf32>
    %319 = vector.shape_cast %318 : vector<1x1x8x128xf32> to vector<8x128xf32>
    %320 = vector.shape_cast %317 : vector<8x128xf32> to vector<1x1x8x128xf32>
    tpu.vector_store %arg14[%c3_278, %c7_279, %c0_280, %c0_281], %320 {strides = array<i32>} : memref<8x8x8x128xf32, #tpu.memory_space<vmem>>, vector<1x1x8x128xf32>,
    %c0_282 = arith.constant 0 : index
    %c4_283 = arith.constant 4 : index
    %321 = memref.load %arg10[%c0_282, %c4_283] : memref<8x8xf32, #tpu.memory_space<smem>>
    %322 = vector.broadcast %321 : f32 to vector<8x128xf32>
    %323 = arith.mulf %322, %0 : vector<8x128xf32>
    %c4_284 = arith.constant 4 : index
    %c0_285 = arith.constant 0 : index
    %c0_286 = arith.constant 0 : index
    %324 = vector.load %arg1[%c4_284, %c0_285, %c0_286] : memref<8x8x128xf32, #tpu.memory_space<vmem>>, vector<1x1x128xf32>
    %325 = vector.shape_cast %324 : vector<1x1x128xf32> to vector<1x128xf32>
    %326 = vector.broadcast %325 : vector<1x128xf32> to vector<8x128xf32>
    %327 = arith.addf %323, %326 : vector<8x128xf32>
    %c4_287 = arith.constant 4 : index
    %c0_288 = arith.constant 0 : index
    %c0_289 = arith.constant 0 : index
    %c0_290 = arith.constant 0 : index
    %328 = vector.load %arg14[%c4_287, %c0_288, %c0_289, %c0_290] : memref<8x8x8x128xf32, #tpu.memory_space<vmem>>, vector<1x1x8x128xf32>
    %329 = vector.shape_cast %328 : vector<1x1x8x128xf32> to vector<8x128xf32>
    %330 = vector.shape_cast %327 : vector<8x128xf32> to vector<1x1x8x128xf32>
    tpu.vector_store %arg14[%c4_287, %c0_288, %c0_289, %c0_290], %330 {strides = array<i32>} : memref<8x8x8x128xf32, #tpu.memory_space<vmem>>, vector<1x1x8x128xf32>,
    %c1_291 = arith.constant 1 : index
    %c4_292 = arith.constant 4 : index
    %331 = memref.load %arg10[%c1_291, %c4_292] : memref<8x8xf32, #tpu.memory_space<smem>>
    %332 = vector.broadcast %331 : f32 to vector<8x128xf32>
    %333 = arith.mulf %332, %0 : vector<8x128xf32>
    %c4_293 = arith.constant 4 : index
    %c1_294 = arith.constant 1 : index
    %c0_295 = arith.constant 0 : index
    %334 = vector.load %arg1[%c4_293, %c1_294, %c0_295] : memref<8x8x128xf32, #tpu.memory_space<vmem>>, vector<1x1x128xf32>
    %335 = vector.shape_cast %334 : vector<1x1x128xf32> to vector<1x128xf32>
    %336 = vector.broadcast %335 : vector<1x128xf32> to vector<8x128xf32>
    %337 = arith.addf %333, %336 : vector<8x128xf32>
    %c4_296 = arith.constant 4 : index
    %c1_297 = arith.constant 1 : index
    %c0_298 = arith.constant 0 : index
    %c0_299 = arith.constant 0 : index
    %338 = vector.load %arg14[%c4_296, %c1_297, %c0_298, %c0_299] : memref<8x8x8x128xf32, #tpu.memory_space<vmem>>, vector<1x1x8x128xf32>
    %339 = vector.shape_cast %338 : vector<1x1x8x128xf32> to vector<8x128xf32>
    %340 = vector.shape_cast %337 : vector<8x128xf32> to vector<1x1x8x128xf32>
    tpu.vector_store %arg14[%c4_296, %c1_297, %c0_298, %c0_299], %340 {strides = array<i32>} : memref<8x8x8x128xf32, #tpu.memory_space<vmem>>, vector<1x1x8x128xf32>,
    %c2_300 = arith.constant 2 : index
    %c4_301 = arith.constant 4 : index
    %341 = memref.load %arg10[%c2_300, %c4_301] : memref<8x8xf32, #tpu.memory_space<smem>>
    %342 = vector.broadcast %341 : f32 to vector<8x128xf32>
    %343 = arith.mulf %342, %0 : vector<8x128xf32>
    %c4_302 = arith.constant 4 : index
    %c2_303 = arith.constant 2 : index
    %c0_304 = arith.constant 0 : index
    %344 = vector.load %arg1[%c4_302, %c2_303, %c0_304] : memref<8x8x128xf32, #tpu.memory_space<vmem>>, vector<1x1x128xf32>
    %345 = vector.shape_cast %344 : vector<1x1x128xf32> to vector<1x128xf32>
    %346 = vector.broadcast %345 : vector<1x128xf32> to vector<8x128xf32>
    %347 = arith.addf %343, %346 : vector<8x128xf32>
    %c4_305 = arith.constant 4 : index
    %c2_306 = arith.constant 2 : index
    %c0_307 = arith.constant 0 : index
    %c0_308 = arith.constant 0 : index
    %348 = vector.load %arg14[%c4_305, %c2_306, %c0_307, %c0_308] : memref<8x8x8x128xf32, #tpu.memory_space<vmem>>, vector<1x1x8x128xf32>
    %349 = vector.shape_cast %348 : vector<1x1x8x128xf32> to vector<8x128xf32>
    %350 = vector.shape_cast %347 : vector<8x128xf32> to vector<1x1x8x128xf32>
    tpu.vector_store %arg14[%c4_305, %c2_306, %c0_307, %c0_308], %350 {strides = array<i32>} : memref<8x8x8x128xf32, #tpu.memory_space<vmem>>, vector<1x1x8x128xf32>,
    %c3_309 = arith.constant 3 : index
    %c4_310 = arith.constant 4 : index
    %351 = memref.load %arg10[%c3_309, %c4_310] : memref<8x8xf32, #tpu.memory_space<smem>>
    %352 = vector.broadcast %351 : f32 to vector<8x128xf32>
    %353 = arith.mulf %352, %0 : vector<8x128xf32>
    %c4_311 = arith.constant 4 : index
    %c3_312 = arith.constant 3 : index
    %c0_313 = arith.constant 0 : index
    %354 = vector.load %arg1[%c4_311, %c3_312, %c0_313] : memref<8x8x128xf32, #tpu.memory_space<vmem>>, vector<1x1x128xf32>
    %355 = vector.shape_cast %354 : vector<1x1x128xf32> to vector<1x128xf32>
    %356 = vector.broadcast %355 : vector<1x128xf32> to vector<8x128xf32>
    %357 = arith.addf %353, %356 : vector<8x128xf32>
    %c4_314 = arith.constant 4 : index
    %c3_315 = arith.constant 3 : index
    %c0_316 = arith.constant 0 : index
    %c0_317 = arith.constant 0 : index
    %358 = vector.load %arg14[%c4_314, %c3_315, %c0_316, %c0_317] : memref<8x8x8x128xf32, #tpu.memory_space<vmem>>, vector<1x1x8x128xf32>
    %359 = vector.shape_cast %358 : vector<1x1x8x128xf32> to vector<8x128xf32>
    %360 = vector.shape_cast %357 : vector<8x128xf32> to vector<1x1x8x128xf32>
    tpu.vector_store %arg14[%c4_314, %c3_315, %c0_316, %c0_317], %360 {strides = array<i32>} : memref<8x8x8x128xf32, #tpu.memory_space<vmem>>, vector<1x1x8x128xf32>,
    %c4_318 = arith.constant 4 : index
    %c4_319 = arith.constant 4 : index
    %361 = memref.load %arg10[%c4_318, %c4_319] : memref<8x8xf32, #tpu.memory_space<smem>>
    %362 = vector.broadcast %361 : f32 to vector<8x128xf32>
    %363 = arith.mulf %362, %0 : vector<8x128xf32>
    %c4_320 = arith.constant 4 : index
    %c4_321 = arith.constant 4 : index
    %c0_322 = arith.constant 0 : index
    %364 = vector.load %arg1[%c4_320, %c4_321, %c0_322] : memref<8x8x128xf32, #tpu.memory_space<vmem>>, vector<1x1x128xf32>
    %365 = vector.shape_cast %364 : vector<1x1x128xf32> to vector<1x128xf32>
    %366 = vector.broadcast %365 : vector<1x128xf32> to vector<8x128xf32>
    %367 = arith.addf %363, %366 : vector<8x128xf32>
    %c4_323 = arith.constant 4 : index
    %c4_324 = arith.constant 4 : index
    %c0_325 = arith.constant 0 : index
    %c0_326 = arith.constant 0 : index
    %368 = vector.load %arg14[%c4_323, %c4_324, %c0_325, %c0_326] : memref<8x8x8x128xf32, #tpu.memory_space<vmem>>, vector<1x1x8x128xf32>
    %369 = vector.shape_cast %368 : vector<1x1x8x128xf32> to vector<8x128xf32>
    %370 = vector.shape_cast %367 : vector<8x128xf32> to vector<1x1x8x128xf32>
    tpu.vector_store %arg14[%c4_323, %c4_324, %c0_325, %c0_326], %370 {strides = array<i32>} : memref<8x8x8x128xf32, #tpu.memory_space<vmem>>, vector<1x1x8x128xf32>,
    %c5_327 = arith.constant 5 : index
    %c4_328 = arith.constant 4 : index
    %371 = memref.load %arg10[%c5_327, %c4_328] : memref<8x8xf32, #tpu.memory_space<smem>>
    %372 = vector.broadcast %371 : f32 to vector<8x128xf32>
    %373 = arith.mulf %372, %0 : vector<8x128xf32>
    %c4_329 = arith.constant 4 : index
    %c5_330 = arith.constant 5 : index
    %c0_331 = arith.constant 0 : index
    %374 = vector.load %arg1[%c4_329, %c5_330, %c0_331] : memref<8x8x128xf32, #tpu.memory_space<vmem>>, vector<1x1x128xf32>
    %375 = vector.shape_cast %374 : vector<1x1x128xf32> to vector<1x128xf32>
    %376 = vector.broadcast %375 : vector<1x128xf32> to vector<8x128xf32>
    %377 = arith.addf %373, %376 : vector<8x128xf32>
    %c4_332 = arith.constant 4 : index
    %c5_333 = arith.constant 5 : index
    %c0_334 = arith.constant 0 : index
    %c0_335 = arith.constant 0 : index
    %378 = vector.load %arg14[%c4_332, %c5_333, %c0_334, %c0_335] : memref<8x8x8x128xf32, #tpu.memory_space<vmem>>, vector<1x1x8x128xf32>
    %379 = vector.shape_cast %378 : vector<1x1x8x128xf32> to vector<8x128xf32>
    %380 = vector.shape_cast %377 : vector<8x128xf32> to vector<1x1x8x128xf32>
    tpu.vector_store %arg14[%c4_332, %c5_333, %c0_334, %c0_335], %380 {strides = array<i32>} : memref<8x8x8x128xf32, #tpu.memory_space<vmem>>, vector<1x1x8x128xf32>,
    %c6_336 = arith.constant 6 : index
    %c4_337 = arith.constant 4 : index
    %381 = memref.load %arg10[%c6_336, %c4_337] : memref<8x8xf32, #tpu.memory_space<smem>>
    %382 = vector.broadcast %381 : f32 to vector<8x128xf32>
    %383 = arith.mulf %382, %0 : vector<8x128xf32>
    %c4_338 = arith.constant 4 : index
    %c6_339 = arith.constant 6 : index
    %c0_340 = arith.constant 0 : index
    %384 = vector.load %arg1[%c4_338, %c6_339, %c0_340] : memref<8x8x128xf32, #tpu.memory_space<vmem>>, vector<1x1x128xf32>
    %385 = vector.shape_cast %384 : vector<1x1x128xf32> to vector<1x128xf32>
    %386 = vector.broadcast %385 : vector<1x128xf32> to vector<8x128xf32>
    %387 = arith.addf %383, %386 : vector<8x128xf32>
    %c4_341 = arith.constant 4 : index
    %c6_342 = arith.constant 6 : index
    %c0_343 = arith.constant 0 : index
    %c0_344 = arith.constant 0 : index
    %388 = vector.load %arg14[%c4_341, %c6_342, %c0_343, %c0_344] : memref<8x8x8x128xf32, #tpu.memory_space<vmem>>, vector<1x1x8x128xf32>
    %389 = vector.shape_cast %388 : vector<1x1x8x128xf32> to vector<8x128xf32>
    %390 = vector.shape_cast %387 : vector<8x128xf32> to vector<1x1x8x128xf32>
    tpu.vector_store %arg14[%c4_341, %c6_342, %c0_343, %c0_344], %390 {strides = array<i32>} : memref<8x8x8x128xf32, #tpu.memory_space<vmem>>, vector<1x1x8x128xf32>,
    %c7_345 = arith.constant 7 : index
    %c4_346 = arith.constant 4 : index
    %391 = memref.load %arg10[%c7_345, %c4_346] : memref<8x8xf32, #tpu.memory_space<smem>>
    %392 = vector.broadcast %391 : f32 to vector<8x128xf32>
    %393 = arith.mulf %392, %0 : vector<8x128xf32>
    %c4_347 = arith.constant 4 : index
    %c7_348 = arith.constant 7 : index
    %c0_349 = arith.constant 0 : index
    %394 = vector.load %arg1[%c4_347, %c7_348, %c0_349] : memref<8x8x128xf32, #tpu.memory_space<vmem>>, vector<1x1x128xf32>
    %395 = vector.shape_cast %394 : vector<1x1x128xf32> to vector<1x128xf32>
    %396 = vector.broadcast %395 : vector<1x128xf32> to vector<8x128xf32>
    %397 = arith.addf %393, %396 : vector<8x128xf32>
    %c4_350 = arith.constant 4 : index
    %c7_351 = arith.constant 7 : index
    %c0_352 = arith.constant 0 : index
    %c0_353 = arith.constant 0 : index
    %398 = vector.load %arg14[%c4_350, %c7_351, %c0_352, %c0_353] : memref<8x8x8x128xf32, #tpu.memory_space<vmem>>, vector<1x1x8x128xf32>
    %399 = vector.shape_cast %398 : vector<1x1x8x128xf32> to vector<8x128xf32>
    %400 = vector.shape_cast %397 : vector<8x128xf32> to vector<1x1x8x128xf32>
    tpu.vector_store %arg14[%c4_350, %c7_351, %c0_352, %c0_353], %400 {strides = array<i32>} : memref<8x8x8x128xf32, #tpu.memory_space<vmem>>, vector<1x1x8x128xf32>,
    %c0_354 = arith.constant 0 : index
    %c5_355 = arith.constant 5 : index
    %401 = memref.load %arg10[%c0_354, %c5_355] : memref<8x8xf32, #tpu.memory_space<smem>>
    %402 = vector.broadcast %401 : f32 to vector<8x128xf32>
    %403 = arith.mulf %402, %0 : vector<8x128xf32>
    %c5_356 = arith.constant 5 : index
    %c0_357 = arith.constant 0 : index
    %c0_358 = arith.constant 0 : index
    %404 = vector.load %arg1[%c5_356, %c0_357, %c0_358] : memref<8x8x128xf32, #tpu.memory_space<vmem>>, vector<1x1x128xf32>
    %405 = vector.shape_cast %404 : vector<1x1x128xf32> to vector<1x128xf32>
    %406 = vector.broadcast %405 : vector<1x128xf32> to vector<8x128xf32>
    %407 = arith.addf %403, %406 : vector<8x128xf32>
    %c5_359 = arith.constant 5 : index
    %c0_360 = arith.constant 0 : index
    %c0_361 = arith.constant 0 : index
    %c0_362 = arith.constant 0 : index
    %408 = vector.load %arg14[%c5_359, %c0_360, %c0_361, %c0_362] : memref<8x8x8x128xf32, #tpu.memory_space<vmem>>, vector<1x1x8x128xf32>
    %409 = vector.shape_cast %408 : vector<1x1x8x128xf32> to vector<8x128xf32>
    %410 = vector.shape_cast %407 : vector<8x128xf32> to vector<1x1x8x128xf32>
    tpu.vector_store %arg14[%c5_359, %c0_360, %c0_361, %c0_362], %410 {strides = array<i32>} : memref<8x8x8x128xf32, #tpu.memory_space<vmem>>, vector<1x1x8x128xf32>,
    %c1_363 = arith.constant 1 : index
    %c5_364 = arith.constant 5 : index
    %411 = memref.load %arg10[%c1_363, %c5_364] : memref<8x8xf32, #tpu.memory_space<smem>>
    %412 = vector.broadcast %411 : f32 to vector<8x128xf32>
    %413 = arith.mulf %412, %0 : vector<8x128xf32>
    %c5_365 = arith.constant 5 : index
    %c1_366 = arith.constant 1 : index
    %c0_367 = arith.constant 0 : index
    %414 = vector.load %arg1[%c5_365, %c1_366, %c0_367] : memref<8x8x128xf32, #tpu.memory_space<vmem>>, vector<1x1x128xf32>
    %415 = vector.shape_cast %414 : vector<1x1x128xf32> to vector<1x128xf32>
    %416 = vector.broadcast %415 : vector<1x128xf32> to vector<8x128xf32>
    %417 = arith.addf %413, %416 : vector<8x128xf32>
    %c5_368 = arith.constant 5 : index
    %c1_369 = arith.constant 1 : index
    %c0_370 = arith.constant 0 : index
    %c0_371 = arith.constant 0 : index
    %418 = vector.load %arg14[%c5_368, %c1_369, %c0_370, %c0_371] : memref<8x8x8x128xf32, #tpu.memory_space<vmem>>, vector<1x1x8x128xf32>
    %419 = vector.shape_cast %418 : vector<1x1x8x128xf32> to vector<8x128xf32>
    %420 = vector.shape_cast %417 : vector<8x128xf32> to vector<1x1x8x128xf32>
    tpu.vector_store %arg14[%c5_368, %c1_369, %c0_370, %c0_371], %420 {strides = array<i32>} : memref<8x8x8x128xf32, #tpu.memory_space<vmem>>, vector<1x1x8x128xf32>,
    %c2_372 = arith.constant 2 : index
    %c5_373 = arith.constant 5 : index
    %421 = memref.load %arg10[%c2_372, %c5_373] : memref<8x8xf32, #tpu.memory_space<smem>>
    %422 = vector.broadcast %421 : f32 to vector<8x128xf32>
    %423 = arith.mulf %422, %0 : vector<8x128xf32>
    %c5_374 = arith.constant 5 : index
    %c2_375 = arith.constant 2 : index
    %c0_376 = arith.constant 0 : index
    %424 = vector.load %arg1[%c5_374, %c2_375, %c0_376] : memref<8x8x128xf32, #tpu.memory_space<vmem>>, vector<1x1x128xf32>
    %425 = vector.shape_cast %424 : vector<1x1x128xf32> to vector<1x128xf32>
    %426 = vector.broadcast %425 : vector<1x128xf32> to vector<8x128xf32>
    %427 = arith.addf %423, %426 : vector<8x128xf32>
    %c5_377 = arith.constant 5 : index
    %c2_378 = arith.constant 2 : index
    %c0_379 = arith.constant 0 : index
    %c0_380 = arith.constant 0 : index
    %428 = vector.load %arg14[%c5_377, %c2_378, %c0_379, %c0_380] : memref<8x8x8x128xf32, #tpu.memory_space<vmem>>, vector<1x1x8x128xf32>
    %429 = vector.shape_cast %428 : vector<1x1x8x128xf32> to vector<8x128xf32>
    %430 = vector.shape_cast %427 : vector<8x128xf32> to vector<1x1x8x128xf32>
    tpu.vector_store %arg14[%c5_377, %c2_378, %c0_379, %c0_380], %430 {strides = array<i32>} : memref<8x8x8x128xf32, #tpu.memory_space<vmem>>, vector<1x1x8x128xf32>,
    %c3_381 = arith.constant 3 : index
    %c5_382 = arith.constant 5 : index
    %431 = memref.load %arg10[%c3_381, %c5_382] : memref<8x8xf32, #tpu.memory_space<smem>>
    %432 = vector.broadcast %431 : f32 to vector<8x128xf32>
    %433 = arith.mulf %432, %0 : vector<8x128xf32>
    %c5_383 = arith.constant 5 : index
    %c3_384 = arith.constant 3 : index
    %c0_385 = arith.constant 0 : index
    %434 = vector.load %arg1[%c5_383, %c3_384, %c0_385] : memref<8x8x128xf32, #tpu.memory_space<vmem>>, vector<1x1x128xf32>
    %435 = vector.shape_cast %434 : vector<1x1x128xf32> to vector<1x128xf32>
    %436 = vector.broadcast %435 : vector<1x128xf32> to vector<8x128xf32>
    %437 = arith.addf %433, %436 : vector<8x128xf32>
    %c5_386 = arith.constant 5 : index
    %c3_387 = arith.constant 3 : index
    %c0_388 = arith.constant 0 : index
    %c0_389 = arith.constant 0 : index
    %438 = vector.load %arg14[%c5_386, %c3_387, %c0_388, %c0_389] : memref<8x8x8x128xf32, #tpu.memory_space<vmem>>, vector<1x1x8x128xf32>
    %439 = vector.shape_cast %438 : vector<1x1x8x128xf32> to vector<8x128xf32>
    %440 = vector.shape_cast %437 : vector<8x128xf32> to vector<1x1x8x128xf32>
    tpu.vector_store %arg14[%c5_386, %c3_387, %c0_388, %c0_389], %440 {strides = array<i32>} : memref<8x8x8x128xf32, #tpu.memory_space<vmem>>, vector<1x1x8x128xf32>,
    %c4_390 = arith.constant 4 : index
    %c5_391 = arith.constant 5 : index
    %441 = memref.load %arg10[%c4_390, %c5_391] : memref<8x8xf32, #tpu.memory_space<smem>>
    %442 = vector.broadcast %441 : f32 to vector<8x128xf32>
    %443 = arith.mulf %442, %0 : vector<8x128xf32>
    %c5_392 = arith.constant 5 : index
    %c4_393 = arith.constant 4 : index
    %c0_394 = arith.constant 0 : index
    %444 = vector.load %arg1[%c5_392, %c4_393, %c0_394] : memref<8x8x128xf32, #tpu.memory_space<vmem>>, vector<1x1x128xf32>
    %445 = vector.shape_cast %444 : vector<1x1x128xf32> to vector<1x128xf32>
    %446 = vector.broadcast %445 : vector<1x128xf32> to vector<8x128xf32>
    %447 = arith.addf %443, %446 : vector<8x128xf32>
    %c5_395 = arith.constant 5 : index
    %c4_396 = arith.constant 4 : index
    %c0_397 = arith.constant 0 : index
    %c0_398 = arith.constant 0 : index
    %448 = vector.load %arg14[%c5_395, %c4_396, %c0_397, %c0_398] : memref<8x8x8x128xf32, #tpu.memory_space<vmem>>, vector<1x1x8x128xf32>
    %449 = vector.shape_cast %448 : vector<1x1x8x128xf32> to vector<8x128xf32>
    %450 = vector.shape_cast %447 : vector<8x128xf32> to vector<1x1x8x128xf32>
    tpu.vector_store %arg14[%c5_395, %c4_396, %c0_397, %c0_398], %450 {strides = array<i32>} : memref<8x8x8x128xf32, #tpu.memory_space<vmem>>, vector<1x1x8x128xf32>,
    %c5_399 = arith.constant 5 : index
    %c5_400 = arith.constant 5 : index
    %451 = memref.load %arg10[%c5_399, %c5_400] : memref<8x8xf32, #tpu.memory_space<smem>>
    %452 = vector.broadcast %451 : f32 to vector<8x128xf32>
    %453 = arith.mulf %452, %0 : vector<8x128xf32>
    %c5_401 = arith.constant 5 : index
    %c5_402 = arith.constant 5 : index
    %c0_403 = arith.constant 0 : index
    %454 = vector.load %arg1[%c5_401, %c5_402, %c0_403] : memref<8x8x128xf32, #tpu.memory_space<vmem>>, vector<1x1x128xf32>
    %455 = vector.shape_cast %454 : vector<1x1x128xf32> to vector<1x128xf32>
    %456 = vector.broadcast %455 : vector<1x128xf32> to vector<8x128xf32>
    %457 = arith.addf %453, %456 : vector<8x128xf32>
    %c5_404 = arith.constant 5 : index
    %c5_405 = arith.constant 5 : index
    %c0_406 = arith.constant 0 : index
    %c0_407 = arith.constant 0 : index
    %458 = vector.load %arg14[%c5_404, %c5_405, %c0_406, %c0_407] : memref<8x8x8x128xf32, #tpu.memory_space<vmem>>, vector<1x1x8x128xf32>
    %459 = vector.shape_cast %458 : vector<1x1x8x128xf32> to vector<8x128xf32>
    %460 = vector.shape_cast %457 : vector<8x128xf32> to vector<1x1x8x128xf32>
    tpu.vector_store %arg14[%c5_404, %c5_405, %c0_406, %c0_407], %460 {strides = array<i32>} : memref<8x8x8x128xf32, #tpu.memory_space<vmem>>, vector<1x1x8x128xf32>,
    %c6_408 = arith.constant 6 : index
    %c5_409 = arith.constant 5 : index
    %461 = memref.load %arg10[%c6_408, %c5_409] : memref<8x8xf32, #tpu.memory_space<smem>>
    %462 = vector.broadcast %461 : f32 to vector<8x128xf32>
    %463 = arith.mulf %462, %0 : vector<8x128xf32>
    %c5_410 = arith.constant 5 : index
    %c6_411 = arith.constant 6 : index
    %c0_412 = arith.constant 0 : index
    %464 = vector.load %arg1[%c5_410, %c6_411, %c0_412] : memref<8x8x128xf32, #tpu.memory_space<vmem>>, vector<1x1x128xf32>
    %465 = vector.shape_cast %464 : vector<1x1x128xf32> to vector<1x128xf32>
    %466 = vector.broadcast %465 : vector<1x128xf32> to vector<8x128xf32>
    %467 = arith.addf %463, %466 : vector<8x128xf32>
    %c5_413 = arith.constant 5 : index
    %c6_414 = arith.constant 6 : index
    %c0_415 = arith.constant 0 : index
    %c0_416 = arith.constant 0 : index
    %468 = vector.load %arg14[%c5_413, %c6_414, %c0_415, %c0_416] : memref<8x8x8x128xf32, #tpu.memory_space<vmem>>, vector<1x1x8x128xf32>
    %469 = vector.shape_cast %468 : vector<1x1x8x128xf32> to vector<8x128xf32>
    %470 = vector.shape_cast %467 : vector<8x128xf32> to vector<1x1x8x128xf32>
    tpu.vector_store %arg14[%c5_413, %c6_414, %c0_415, %c0_416], %470 {strides = array<i32>} : memref<8x8x8x128xf32, #tpu.memory_space<vmem>>, vector<1x1x8x128xf32>,
    %c7_417 = arith.constant 7 : index
    %c5_418 = arith.constant 5 : index
    %471 = memref.load %arg10[%c7_417, %c5_418] : memref<8x8xf32, #tpu.memory_space<smem>>
    %472 = vector.broadcast %471 : f32 to vector<8x128xf32>
    %473 = arith.mulf %472, %0 : vector<8x128xf32>
    %c5_419 = arith.constant 5 : index
    %c7_420 = arith.constant 7 : index
    %c0_421 = arith.constant 0 : index
    %474 = vector.load %arg1[%c5_419, %c7_420, %c0_421] : memref<8x8x128xf32, #tpu.memory_space<vmem>>, vector<1x1x128xf32>
    %475 = vector.shape_cast %474 : vector<1x1x128xf32> to vector<1x128xf32>
    %476 = vector.broadcast %475 : vector<1x128xf32> to vector<8x128xf32>
    %477 = arith.addf %473, %476 : vector<8x128xf32>
    %c5_422 = arith.constant 5 : index
    %c7_423 = arith.constant 7 : index
    %c0_424 = arith.constant 0 : index
    %c0_425 = arith.constant 0 : index
    %478 = vector.load %arg14[%c5_422, %c7_423, %c0_424, %c0_425] : memref<8x8x8x128xf32, #tpu.memory_space<vmem>>, vector<1x1x8x128xf32>
    %479 = vector.shape_cast %478 : vector<1x1x8x128xf32> to vector<8x128xf32>
    %480 = vector.shape_cast %477 : vector<8x128xf32> to vector<1x1x8x128xf32>
    tpu.vector_store %arg14[%c5_422, %c7_423, %c0_424, %c0_425], %480 {strides = array<i32>} : memref<8x8x8x128xf32, #tpu.memory_space<vmem>>, vector<1x1x8x128xf32>,
    %c0_426 = arith.constant 0 : index
    %c6_427 = arith.constant 6 : index
    %481 = memref.load %arg10[%c0_426, %c6_427] : memref<8x8xf32, #tpu.memory_space<smem>>
    %482 = vector.broadcast %481 : f32 to vector<8x128xf32>
    %483 = arith.mulf %482, %0 : vector<8x128xf32>
    %c6_428 = arith.constant 6 : index
    %c0_429 = arith.constant 0 : index
    %c0_430 = arith.constant 0 : index
    %484 = vector.load %arg1[%c6_428, %c0_429, %c0_430] : memref<8x8x128xf32, #tpu.memory_space<vmem>>, vector<1x1x128xf32>
    %485 = vector.shape_cast %484 : vector<1x1x128xf32> to vector<1x128xf32>
    %486 = vector.broadcast %485 : vector<1x128xf32> to vector<8x128xf32>
    %487 = arith.addf %483, %486 : vector<8x128xf32>
    %c6_431 = arith.constant 6 : index
    %c0_432 = arith.constant 0 : index
    %c0_433 = arith.constant 0 : index
    %c0_434 = arith.constant 0 : index
    %488 = vector.load %arg14[%c6_431, %c0_432, %c0_433, %c0_434] : memref<8x8x8x128xf32, #tpu.memory_space<vmem>>, vector<1x1x8x128xf32>
    %489 = vector.shape_cast %488 : vector<1x1x8x128xf32> to vector<8x128xf32>
    %490 = vector.shape_cast %487 : vector<8x128xf32> to vector<1x1x8x128xf32>
    tpu.vector_store %arg14[%c6_431, %c0_432, %c0_433, %c0_434], %490 {strides = array<i32>} : memref<8x8x8x128xf32, #tpu.memory_space<vmem>>, vector<1x1x8x128xf32>,
    %c1_435 = arith.constant 1 : index
    %c6_436 = arith.constant 6 : index
    %491 = memref.load %arg10[%c1_435, %c6_436] : memref<8x8xf32, #tpu.memory_space<smem>>
    %492 = vector.broadcast %491 : f32 to vector<8x128xf32>
    %493 = arith.mulf %492, %0 : vector<8x128xf32>
    %c6_437 = arith.constant 6 : index
    %c1_438 = arith.constant 1 : index
    %c0_439 = arith.constant 0 : index
    %494 = vector.load %arg1[%c6_437, %c1_438, %c0_439] : memref<8x8x128xf32, #tpu.memory_space<vmem>>, vector<1x1x128xf32>
    %495 = vector.shape_cast %494 : vector<1x1x128xf32> to vector<1x128xf32>
    %496 = vector.broadcast %495 : vector<1x128xf32> to vector<8x128xf32>
    %497 = arith.addf %493, %496 : vector<8x128xf32>
    %c6_440 = arith.constant 6 : index
    %c1_441 = arith.constant 1 : index
    %c0_442 = arith.constant 0 : index
    %c0_443 = arith.constant 0 : index
    %498 = vector.load %arg14[%c6_440, %c1_441, %c0_442, %c0_443] : memref<8x8x8x128xf32, #tpu.memory_space<vmem>>, vector<1x1x8x128xf32>
    %499 = vector.shape_cast %498 : vector<1x1x8x128xf32> to vector<8x128xf32>
    %500 = vector.shape_cast %497 : vector<8x128xf32> to vector<1x1x8x128xf32>
    tpu.vector_store %arg14[%c6_440, %c1_441, %c0_442, %c0_443], %500 {strides = array<i32>} : memref<8x8x8x128xf32, #tpu.memory_space<vmem>>, vector<1x1x8x128xf32>,
    %c2_444 = arith.constant 2 : index
    %c6_445 = arith.constant 6 : index
    %501 = memref.load %arg10[%c2_444, %c6_445] : memref<8x8xf32, #tpu.memory_space<smem>>
    %502 = vector.broadcast %501 : f32 to vector<8x128xf32>
    %503 = arith.mulf %502, %0 : vector<8x128xf32>
    %c6_446 = arith.constant 6 : index
    %c2_447 = arith.constant 2 : index
    %c0_448 = arith.constant 0 : index
    %504 = vector.load %arg1[%c6_446, %c2_447, %c0_448] : memref<8x8x128xf32, #tpu.memory_space<vmem>>, vector<1x1x128xf32>
    %505 = vector.shape_cast %504 : vector<1x1x128xf32> to vector<1x128xf32>
    %506 = vector.broadcast %505 : vector<1x128xf32> to vector<8x128xf32>
    %507 = arith.addf %503, %506 : vector<8x128xf32>
    %c6_449 = arith.constant 6 : index
    %c2_450 = arith.constant 2 : index
    %c0_451 = arith.constant 0 : index
    %c0_452 = arith.constant 0 : index
    %508 = vector.load %arg14[%c6_449, %c2_450, %c0_451, %c0_452] : memref<8x8x8x128xf32, #tpu.memory_space<vmem>>, vector<1x1x8x128xf32>
    %509 = vector.shape_cast %508 : vector<1x1x8x128xf32> to vector<8x128xf32>
    %510 = vector.shape_cast %507 : vector<8x128xf32> to vector<1x1x8x128xf32>
    tpu.vector_store %arg14[%c6_449, %c2_450, %c0_451, %c0_452], %510 {strides = array<i32>} : memref<8x8x8x128xf32, #tpu.memory_space<vmem>>, vector<1x1x8x128xf32>,
    %c3_453 = arith.constant 3 : index
    %c6_454 = arith.constant 6 : index
    %511 = memref.load %arg10[%c3_453, %c6_454] : memref<8x8xf32, #tpu.memory_space<smem>>
    %512 = vector.broadcast %511 : f32 to vector<8x128xf32>
    %513 = arith.mulf %512, %0 : vector<8x128xf32>
    %c6_455 = arith.constant 6 : index
    %c3_456 = arith.constant 3 : index
    %c0_457 = arith.constant 0 : index
    %514 = vector.load %arg1[%c6_455, %c3_456, %c0_457] : memref<8x8x128xf32, #tpu.memory_space<vmem>>, vector<1x1x128xf32>
    %515 = vector.shape_cast %514 : vector<1x1x128xf32> to vector<1x128xf32>
    %516 = vector.broadcast %515 : vector<1x128xf32> to vector<8x128xf32>
    %517 = arith.addf %513, %516 : vector<8x128xf32>
    %c6_458 = arith.constant 6 : index
    %c3_459 = arith.constant 3 : index
    %c0_460 = arith.constant 0 : index
    %c0_461 = arith.constant 0 : index
    %518 = vector.load %arg14[%c6_458, %c3_459, %c0_460, %c0_461] : memref<8x8x8x128xf32, #tpu.memory_space<vmem>>, vector<1x1x8x128xf32>
    %519 = vector.shape_cast %518 : vector<1x1x8x128xf32> to vector<8x128xf32>
    %520 = vector.shape_cast %517 : vector<8x128xf32> to vector<1x1x8x128xf32>
    tpu.vector_store %arg14[%c6_458, %c3_459, %c0_460, %c0_461], %520 {strides = array<i32>} : memref<8x8x8x128xf32, #tpu.memory_space<vmem>>, vector<1x1x8x128xf32>,
    %c4_462 = arith.constant 4 : index
    %c6_463 = arith.constant 6 : index
    %521 = memref.load %arg10[%c4_462, %c6_463] : memref<8x8xf32, #tpu.memory_space<smem>>
    %522 = vector.broadcast %521 : f32 to vector<8x128xf32>
    %523 = arith.mulf %522, %0 : vector<8x128xf32>
    %c6_464 = arith.constant 6 : index
    %c4_465 = arith.constant 4 : index
    %c0_466 = arith.constant 0 : index
    %524 = vector.load %arg1[%c6_464, %c4_465, %c0_466] : memref<8x8x128xf32, #tpu.memory_space<vmem>>, vector<1x1x128xf32>
    %525 = vector.shape_cast %524 : vector<1x1x128xf32> to vector<1x128xf32>
    %526 = vector.broadcast %525 : vector<1x128xf32> to vector<8x128xf32>
    %527 = arith.addf %523, %526 : vector<8x128xf32>
    %c6_467 = arith.constant 6 : index
    %c4_468 = arith.constant 4 : index
    %c0_469 = arith.constant 0 : index
    %c0_470 = arith.constant 0 : index
    %528 = vector.load %arg14[%c6_467, %c4_468, %c0_469, %c0_470] : memref<8x8x8x128xf32, #tpu.memory_space<vmem>>, vector<1x1x8x128xf32>
    %529 = vector.shape_cast %528 : vector<1x1x8x128xf32> to vector<8x128xf32>
    %530 = vector.shape_cast %527 : vector<8x128xf32> to vector<1x1x8x128xf32>
    tpu.vector_store %arg14[%c6_467, %c4_468, %c0_469, %c0_470], %530 {strides = array<i32>} : memref<8x8x8x128xf32, #tpu.memory_space<vmem>>, vector<1x1x8x128xf32>,
    %c5_471 = arith.constant 5 : index
    %c6_472 = arith.constant 6 : index
    %531 = memref.load %arg10[%c5_471, %c6_472] : memref<8x8xf32, #tpu.memory_space<smem>>
    %532 = vector.broadcast %531 : f32 to vector<8x128xf32>
    %533 = arith.mulf %532, %0 : vector<8x128xf32>
    %c6_473 = arith.constant 6 : index
    %c5_474 = arith.constant 5 : index
    %c0_475 = arith.constant 0 : index
    %534 = vector.load %arg1[%c6_473, %c5_474, %c0_475] : memref<8x8x128xf32, #tpu.memory_space<vmem>>, vector<1x1x128xf32>
    %535 = vector.shape_cast %534 : vector<1x1x128xf32> to vector<1x128xf32>
    %536 = vector.broadcast %535 : vector<1x128xf32> to vector<8x128xf32>
    %537 = arith.addf %533, %536 : vector<8x128xf32>
    %c6_476 = arith.constant 6 : index
    %c5_477 = arith.constant 5 : index
    %c0_478 = arith.constant 0 : index
    %c0_479 = arith.constant 0 : index
    %538 = vector.load %arg14[%c6_476, %c5_477, %c0_478, %c0_479] : memref<8x8x8x128xf32, #tpu.memory_space<vmem>>, vector<1x1x8x128xf32>
    %539 = vector.shape_cast %538 : vector<1x1x8x128xf32> to vector<8x128xf32>
    %540 = vector.shape_cast %537 : vector<8x128xf32> to vector<1x1x8x128xf32>
    tpu.vector_store %arg14[%c6_476, %c5_477, %c0_478, %c0_479], %540 {strides = array<i32>} : memref<8x8x8x128xf32, #tpu.memory_space<vmem>>, vector<1x1x8x128xf32>,
    %c6_480 = arith.constant 6 : index
    %c6_481 = arith.constant 6 : index
    %541 = memref.load %arg10[%c6_480, %c6_481] : memref<8x8xf32, #tpu.memory_space<smem>>
    %542 = vector.broadcast %541 : f32 to vector<8x128xf32>
    %543 = arith.mulf %542, %0 : vector<8x128xf32>
    %c6_482 = arith.constant 6 : index
    %c6_483 = arith.constant 6 : index
    %c0_484 = arith.constant 0 : index
    %544 = vector.load %arg1[%c6_482, %c6_483, %c0_484] : memref<8x8x128xf32, #tpu.memory_space<vmem>>, vector<1x1x128xf32>
    %545 = vector.shape_cast %544 : vector<1x1x128xf32> to vector<1x128xf32>
    %546 = vector.broadcast %545 : vector<1x128xf32> to vector<8x128xf32>
    %547 = arith.addf %543, %546 : vector<8x128xf32>
    %c6_485 = arith.constant 6 : index
    %c6_486 = arith.constant 6 : index
    %c0_487 = arith.constant 0 : index
    %c0_488 = arith.constant 0 : index
    %548 = vector.load %arg14[%c6_485, %c6_486, %c0_487, %c0_488] : memref<8x8x8x128xf32, #tpu.memory_space<vmem>>, vector<1x1x8x128xf32>
    %549 = vector.shape_cast %548 : vector<1x1x8x128xf32> to vector<8x128xf32>
    %550 = vector.shape_cast %547 : vector<8x128xf32> to vector<1x1x8x128xf32>
    tpu.vector_store %arg14[%c6_485, %c6_486, %c0_487, %c0_488], %550 {strides = array<i32>} : memref<8x8x8x128xf32, #tpu.memory_space<vmem>>, vector<1x1x8x128xf32>,
    %c7_489 = arith.constant 7 : index
    %c6_490 = arith.constant 6 : index
    %551 = memref.load %arg10[%c7_489, %c6_490] : memref<8x8xf32, #tpu.memory_space<smem>>
    %552 = vector.broadcast %551 : f32 to vector<8x128xf32>
    %553 = arith.mulf %552, %0 : vector<8x128xf32>
    %c6_491 = arith.constant 6 : index
    %c7_492 = arith.constant 7 : index
    %c0_493 = arith.constant 0 : index
    %554 = vector.load %arg1[%c6_491, %c7_492, %c0_493] : memref<8x8x128xf32, #tpu.memory_space<vmem>>, vector<1x1x128xf32>
    %555 = vector.shape_cast %554 : vector<1x1x128xf32> to vector<1x128xf32>
    %556 = vector.broadcast %555 : vector<1x128xf32> to vector<8x128xf32>
    %557 = arith.addf %553, %556 : vector<8x128xf32>
    %c6_494 = arith.constant 6 : index
    %c7_495 = arith.constant 7 : index
    %c0_496 = arith.constant 0 : index
    %c0_497 = arith.constant 0 : index
    %558 = vector.load %arg14[%c6_494, %c7_495, %c0_496, %c0_497] : memref<8x8x8x128xf32, #tpu.memory_space<vmem>>, vector<1x1x8x128xf32>
    %559 = vector.shape_cast %558 : vector<1x1x8x128xf32> to vector<8x128xf32>
    %560 = vector.shape_cast %557 : vector<8x128xf32> to vector<1x1x8x128xf32>
    tpu.vector_store %arg14[%c6_494, %c7_495, %c0_496, %c0_497], %560 {strides = array<i32>} : memref<8x8x8x128xf32, #tpu.memory_space<vmem>>, vector<1x1x8x128xf32>,
    %c0_498 = arith.constant 0 : index
    %c7_499 = arith.constant 7 : index
    %561 = memref.load %arg10[%c0_498, %c7_499] : memref<8x8xf32, #tpu.memory_space<smem>>
    %562 = vector.broadcast %561 : f32 to vector<8x128xf32>
    %563 = arith.mulf %562, %0 : vector<8x128xf32>
    %c7_500 = arith.constant 7 : index
    %c0_501 = arith.constant 0 : index
    %c0_502 = arith.constant 0 : index
    %564 = vector.load %arg1[%c7_500, %c0_501, %c0_502] : memref<8x8x128xf32, #tpu.memory_space<vmem>>, vector<1x1x128xf32>
    %565 = vector.shape_cast %564 : vector<1x1x128xf32> to vector<1x128xf32>
    %566 = vector.broadcast %565 : vector<1x128xf32> to vector<8x128xf32>
    %567 = arith.addf %563, %566 : vector<8x128xf32>
    %c7_503 = arith.constant 7 : index
    %c0_504 = arith.constant 0 : index
    %c0_505 = arith.constant 0 : index
    %c0_506 = arith.constant 0 : index
    %568 = vector.load %arg14[%c7_503, %c0_504, %c0_505, %c0_506] : memref<8x8x8x128xf32, #tpu.memory_space<vmem>>, vector<1x1x8x128xf32>
    %569 = vector.shape_cast %568 : vector<1x1x8x128xf32> to vector<8x128xf32>
    %570 = vector.shape_cast %567 : vector<8x128xf32> to vector<1x1x8x128xf32>
    tpu.vector_store %arg14[%c7_503, %c0_504, %c0_505, %c0_506], %570 {strides = array<i32>} : memref<8x8x8x128xf32, #tpu.memory_space<vmem>>, vector<1x1x8x128xf32>,
    %c1_507 = arith.constant 1 : index
    %c7_508 = arith.constant 7 : index
    %571 = memref.load %arg10[%c1_507, %c7_508] : memref<8x8xf32, #tpu.memory_space<smem>>
    %572 = vector.broadcast %571 : f32 to vector<8x128xf32>
    %573 = arith.mulf %572, %0 : vector<8x128xf32>
    %c7_509 = arith.constant 7 : index
    %c1_510 = arith.constant 1 : index
    %c0_511 = arith.constant 0 : index
    %574 = vector.load %arg1[%c7_509, %c1_510, %c0_511] : memref<8x8x128xf32, #tpu.memory_space<vmem>>, vector<1x1x128xf32>
    %575 = vector.shape_cast %574 : vector<1x1x128xf32> to vector<1x128xf32>
    %576 = vector.broadcast %575 : vector<1x128xf32> to vector<8x128xf32>
    %577 = arith.addf %573, %576 : vector<8x128xf32>
    %c7_512 = arith.constant 7 : index
    %c1_513 = arith.constant 1 : index
    %c0_514 = arith.constant 0 : index
    %c0_515 = arith.constant 0 : index
    %578 = vector.load %arg14[%c7_512, %c1_513, %c0_514, %c0_515] : memref<8x8x8x128xf32, #tpu.memory_space<vmem>>, vector<1x1x8x128xf32>
    %579 = vector.shape_cast %578 : vector<1x1x8x128xf32> to vector<8x128xf32>
    %580 = vector.shape_cast %577 : vector<8x128xf32> to vector<1x1x8x128xf32>
    tpu.vector_store %arg14[%c7_512, %c1_513, %c0_514, %c0_515], %580 {strides = array<i32>} : memref<8x8x8x128xf32, #tpu.memory_space<vmem>>, vector<1x1x8x128xf32>,
    %c2_516 = arith.constant 2 : index
    %c7_517 = arith.constant 7 : index
    %581 = memref.load %arg10[%c2_516, %c7_517] : memref<8x8xf32, #tpu.memory_space<smem>>
    %582 = vector.broadcast %581 : f32 to vector<8x128xf32>
    %583 = arith.mulf %582, %0 : vector<8x128xf32>
    %c7_518 = arith.constant 7 : index
    %c2_519 = arith.constant 2 : index
    %c0_520 = arith.constant 0 : index
    %584 = vector.load %arg1[%c7_518, %c2_519, %c0_520] : memref<8x8x128xf32, #tpu.memory_space<vmem>>, vector<1x1x128xf32>
    %585 = vector.shape_cast %584 : vector<1x1x128xf32> to vector<1x128xf32>
    %586 = vector.broadcast %585 : vector<1x128xf32> to vector<8x128xf32>
    %587 = arith.addf %583, %586 : vector<8x128xf32>
    %c7_521 = arith.constant 7 : index
    %c2_522 = arith.constant 2 : index
    %c0_523 = arith.constant 0 : index
    %c0_524 = arith.constant 0 : index
    %588 = vector.load %arg14[%c7_521, %c2_522, %c0_523, %c0_524] : memref<8x8x8x128xf32, #tpu.memory_space<vmem>>, vector<1x1x8x128xf32>
    %589 = vector.shape_cast %588 : vector<1x1x8x128xf32> to vector<8x128xf32>
    %590 = vector.shape_cast %587 : vector<8x128xf32> to vector<1x1x8x128xf32>
    tpu.vector_store %arg14[%c7_521, %c2_522, %c0_523, %c0_524], %590 {strides = array<i32>} : memref<8x8x8x128xf32, #tpu.memory_space<vmem>>, vector<1x1x8x128xf32>,
    %c3_525 = arith.constant 3 : index
    %c7_526 = arith.constant 7 : index
    %591 = memref.load %arg10[%c3_525, %c7_526] : memref<8x8xf32, #tpu.memory_space<smem>>
    %592 = vector.broadcast %591 : f32 to vector<8x128xf32>
    %593 = arith.mulf %592, %0 : vector<8x128xf32>
    %c7_527 = arith.constant 7 : index
    %c3_528 = arith.constant 3 : index
    %c0_529 = arith.constant 0 : index
    %594 = vector.load %arg1[%c7_527, %c3_528, %c0_529] : memref<8x8x128xf32, #tpu.memory_space<vmem>>, vector<1x1x128xf32>
    %595 = vector.shape_cast %594 : vector<1x1x128xf32> to vector<1x128xf32>
    %596 = vector.broadcast %595 : vector<1x128xf32> to vector<8x128xf32>
    %597 = arith.addf %593, %596 : vector<8x128xf32>
    %c7_530 = arith.constant 7 : index
    %c3_531 = arith.constant 3 : index
    %c0_532 = arith.constant 0 : index
    %c0_533 = arith.constant 0 : index
    %598 = vector.load %arg14[%c7_530, %c3_531, %c0_532, %c0_533] : memref<8x8x8x128xf32, #tpu.memory_space<vmem>>, vector<1x1x8x128xf32>
    %599 = vector.shape_cast %598 : vector<1x1x8x128xf32> to vector<8x128xf32>
    %600 = vector.shape_cast %597 : vector<8x128xf32> to vector<1x1x8x128xf32>
    tpu.vector_store %arg14[%c7_530, %c3_531, %c0_532, %c0_533], %600 {strides = array<i32>} : memref<8x8x8x128xf32, #tpu.memory_space<vmem>>, vector<1x1x8x128xf32>,
    %c4_534 = arith.constant 4 : index
    %c7_535 = arith.constant 7 : index
    %601 = memref.load %arg10[%c4_534, %c7_535] : memref<8x8xf32, #tpu.memory_space<smem>>
    %602 = vector.broadcast %601 : f32 to vector<8x128xf32>
    %603 = arith.mulf %602, %0 : vector<8x128xf32>
    %c7_536 = arith.constant 7 : index
    %c4_537 = arith.constant 4 : index
    %c0_538 = arith.constant 0 : index
    %604 = vector.load %arg1[%c7_536, %c4_537, %c0_538] : memref<8x8x128xf32, #tpu.memory_space<vmem>>, vector<1x1x128xf32>
    %605 = vector.shape_cast %604 : vector<1x1x128xf32> to vector<1x128xf32>
    %606 = vector.broadcast %605 : vector<1x128xf32> to vector<8x128xf32>
    %607 = arith.addf %603, %606 : vector<8x128xf32>
    %c7_539 = arith.constant 7 : index
    %c4_540 = arith.constant 4 : index
    %c0_541 = arith.constant 0 : index
    %c0_542 = arith.constant 0 : index
    %608 = vector.load %arg14[%c7_539, %c4_540, %c0_541, %c0_542] : memref<8x8x8x128xf32, #tpu.memory_space<vmem>>, vector<1x1x8x128xf32>
    %609 = vector.shape_cast %608 : vector<1x1x8x128xf32> to vector<8x128xf32>
    %610 = vector.shape_cast %607 : vector<8x128xf32> to vector<1x1x8x128xf32>
    tpu.vector_store %arg14[%c7_539, %c4_540, %c0_541, %c0_542], %610 {strides = array<i32>} : memref<8x8x8x128xf32, #tpu.memory_space<vmem>>, vector<1x1x8x128xf32>,
    %c5_543 = arith.constant 5 : index
    %c7_544 = arith.constant 7 : index
    %611 = memref.load %arg10[%c5_543, %c7_544] : memref<8x8xf32, #tpu.memory_space<smem>>
    %612 = vector.broadcast %611 : f32 to vector<8x128xf32>
    %613 = arith.mulf %612, %0 : vector<8x128xf32>
    %c7_545 = arith.constant 7 : index
    %c5_546 = arith.constant 5 : index
    %c0_547 = arith.constant 0 : index
    %614 = vector.load %arg1[%c7_545, %c5_546, %c0_547] : memref<8x8x128xf32, #tpu.memory_space<vmem>>, vector<1x1x128xf32>
    %615 = vector.shape_cast %614 : vector<1x1x128xf32> to vector<1x128xf32>
    %616 = vector.broadcast %615 : vector<1x128xf32> to vector<8x128xf32>
    %617 = arith.addf %613, %616 : vector<8x128xf32>
    %c7_548 = arith.constant 7 : index
    %c5_549 = arith.constant 5 : index
    %c0_550 = arith.constant 0 : index
    %c0_551 = arith.constant 0 : index
    %618 = vector.load %arg14[%c7_548, %c5_549, %c0_550, %c0_551] : memref<8x8x8x128xf32, #tpu.memory_space<vmem>>, vector<1x1x8x128xf32>
    %619 = vector.shape_cast %618 : vector<1x1x8x128xf32> to vector<8x128xf32>
    %620 = vector.shape_cast %617 : vector<8x128xf32> to vector<1x1x8x128xf32>
    tpu.vector_store %arg14[%c7_548, %c5_549, %c0_550, %c0_551], %620 {strides = array<i32>} : memref<8x8x8x128xf32, #tpu.memory_space<vmem>>, vector<1x1x8x128xf32>,
    %c6_552 = arith.constant 6 : index
    %c7_553 = arith.constant 7 : index
    %621 = memref.load %arg10[%c6_552, %c7_553] : memref<8x8xf32, #tpu.memory_space<smem>>
    %622 = vector.broadcast %621 : f32 to vector<8x128xf32>
    %623 = arith.mulf %622, %0 : vector<8x128xf32>
    %c7_554 = arith.constant 7 : index
    %c6_555 = arith.constant 6 : index
    %c0_556 = arith.constant 0 : index
    %624 = vector.load %arg1[%c7_554, %c6_555, %c0_556] : memref<8x8x128xf32, #tpu.memory_space<vmem>>, vector<1x1x128xf32>
    %625 = vector.shape_cast %624 : vector<1x1x128xf32> to vector<1x128xf32>
    %626 = vector.broadcast %625 : vector<1x128xf32> to vector<8x128xf32>
    %627 = arith.addf %623, %626 : vector<8x128xf32>
    %c7_557 = arith.constant 7 : index
    %c6_558 = arith.constant 6 : index
    %c0_559 = arith.constant 0 : index
    %c0_560 = arith.constant 0 : index
    %628 = vector.load %arg14[%c7_557, %c6_558, %c0_559, %c0_560] : memref<8x8x8x128xf32, #tpu.memory_space<vmem>>, vector<1x1x8x128xf32>
    %629 = vector.shape_cast %628 : vector<1x1x8x128xf32> to vector<8x128xf32>
    %630 = vector.shape_cast %627 : vector<8x128xf32> to vector<1x1x8x128xf32>
    tpu.vector_store %arg14[%c7_557, %c6_558, %c0_559, %c0_560], %630 {strides = array<i32>} : memref<8x8x8x128xf32, #tpu.memory_space<vmem>>, vector<1x1x8x128xf32>,
    %c7_561 = arith.constant 7 : index
    %c7_562 = arith.constant 7 : index
    %631 = memref.load %arg10[%c7_561, %c7_562] : memref<8x8xf32, #tpu.memory_space<smem>>
    %632 = vector.broadcast %631 : f32 to vector<8x128xf32>
    %633 = arith.mulf %632, %0 : vector<8x128xf32>
    %c7_563 = arith.constant 7 : index
    %c7_564 = arith.constant 7 : index
    %c0_565 = arith.constant 0 : index
    %634 = vector.load %arg1[%c7_563, %c7_564, %c0_565] : memref<8x8x128xf32, #tpu.memory_space<vmem>>, vector<1x1x128xf32>
    %635 = vector.shape_cast %634 : vector<1x1x128xf32> to vector<1x128xf32>
    %636 = vector.broadcast %635 : vector<1x128xf32> to vector<8x128xf32>
    %637 = arith.addf %633, %636 : vector<8x128xf32>
    %c7_566 = arith.constant 7 : index
    %c7_567 = arith.constant 7 : index
    %c0_568 = arith.constant 0 : index
    %c0_569 = arith.constant 0 : index
    %638 = vector.load %arg14[%c7_566, %c7_567, %c0_568, %c0_569] : memref<8x8x8x128xf32, #tpu.memory_space<vmem>>, vector<1x1x8x128xf32>
    %639 = vector.shape_cast %638 : vector<1x1x8x128xf32> to vector<8x128xf32>
    %640 = vector.shape_cast %637 : vector<8x128xf32> to vector<1x1x8x128xf32>
    tpu.vector_store %arg14[%c7_566, %c7_567, %c0_568, %c0_569], %640 {strides = array<i32>} : memref<8x8x8x128xf32, #tpu.memory_space<vmem>>, vector<1x1x8x128xf32>,
    %c0_570 = arith.constant 0 : index
    %641 = memref.load %arg11[%c0_570] : memref<4xf32, #tpu.memory_space<smem>>
    %c1_571 = arith.constant 1 : index
    %642 = memref.load %arg11[%c1_571] : memref<4xf32, #tpu.memory_space<smem>>
    %c2_572 = arith.constant 2 : index
    %643 = memref.load %arg11[%c2_572] : memref<4xf32, #tpu.memory_space<smem>>
    %c3_573 = arith.constant 3 : index
    %644 = memref.load %arg11[%c3_573] : memref<4xf32, #tpu.memory_space<smem>>
    %c0_574 = arith.constant 0 : index
    %645 = memref.load %arg12[%c0_574] : memref<4xf32, #tpu.memory_space<smem>>
    %c1_575 = arith.constant 1 : index
    %646 = memref.load %arg12[%c1_575] : memref<4xf32, #tpu.memory_space<smem>>
    %c2_576 = arith.constant 2 : index
    %647 = memref.load %arg12[%c2_576] : memref<4xf32, #tpu.memory_space<smem>>
    %c3_577 = arith.constant 3 : index
    %648 = memref.load %arg12[%c3_577] : memref<4xf32, #tpu.memory_space<smem>>
    %c0_578 = arith.constant 0 : index
    %c0_579 = arith.constant 0 : index
    %c0_580 = arith.constant 0 : index
    %649 = vector.load %arg2[%c0_578, %c0_579, %c0_580] : memref<4x8x128xf32, #tpu.memory_space<vmem>>, vector<1x8x128xf32>
    %650 = vector.shape_cast %649 : vector<1x8x128xf32> to vector<8x128xf32>
    %c1_581 = arith.constant 1 : index
    %c0_582 = arith.constant 0 : index
    %c0_583 = arith.constant 0 : index
    %651 = vector.load %arg2[%c1_581, %c0_582, %c0_583] : memref<4x8x128xf32, #tpu.memory_space<vmem>>, vector<1x8x128xf32>
    %652 = vector.shape_cast %651 : vector<1x8x128xf32> to vector<8x128xf32>
    %c2_584 = arith.constant 2 : index
    %c0_585 = arith.constant 0 : index
    %c0_586 = arith.constant 0 : index
    %653 = vector.load %arg2[%c2_584, %c0_585, %c0_586] : memref<4x8x128xf32, #tpu.memory_space<vmem>>, vector<1x8x128xf32>
    %654 = vector.shape_cast %653 : vector<1x8x128xf32> to vector<8x128xf32>
    %c3_587 = arith.constant 3 : index
    %c0_588 = arith.constant 0 : index
    %c0_589 = arith.constant 0 : index
    %655 = vector.load %arg2[%c3_587, %c0_588, %c0_589] : memref<4x8x128xf32, #tpu.memory_space<vmem>>, vector<1x8x128xf32>
    %656 = vector.shape_cast %655 : vector<1x8x128xf32> to vector<8x128xf32>
    %c0_590 = arith.constant 0 : index
    %c0_591 = arith.constant 0 : index
    %c0_592 = arith.constant 0 : index
    %657 = vector.load %arg3[%c0_590, %c0_591, %c0_592] : memref<4x8x128xf32, #tpu.memory_space<vmem>>, vector<1x8x128xf32>
    %658 = vector.shape_cast %657 : vector<1x8x128xf32> to vector<8x128xf32>
    %c1_593 = arith.constant 1 : index
    %c0_594 = arith.constant 0 : index
    %c0_595 = arith.constant 0 : index
    %659 = vector.load %arg3[%c1_593, %c0_594, %c0_595] : memref<4x8x128xf32, #tpu.memory_space<vmem>>, vector<1x8x128xf32>
    %660 = vector.shape_cast %659 : vector<1x8x128xf32> to vector<8x128xf32>
    %c2_596 = arith.constant 2 : index
    %c0_597 = arith.constant 0 : index
    %c0_598 = arith.constant 0 : index
    %661 = vector.load %arg3[%c2_596, %c0_597, %c0_598] : memref<4x8x128xf32, #tpu.memory_space<vmem>>, vector<1x8x128xf32>
    %662 = vector.shape_cast %661 : vector<1x8x128xf32> to vector<8x128xf32>
    %c3_599 = arith.constant 3 : index
    %c0_600 = arith.constant 0 : index
    %c0_601 = arith.constant 0 : index
    %663 = vector.load %arg3[%c3_599, %c0_600, %c0_601] : memref<4x8x128xf32, #tpu.memory_space<vmem>>, vector<1x8x128xf32>
    %664 = vector.shape_cast %663 : vector<1x8x128xf32> to vector<8x128xf32>
    %cst = arith.constant 0.000000e+00 : f32
    %665 = vector.broadcast %cst : f32 to vector<8x128xf32>
    %666 = vector.extract_strided_slice %0 {offsets = [0, 0], sizes = [1, 128], strides = [1, 1]} : vector<8x128xf32> to vector<1x128xf32>
    %667 = vector.broadcast %666 : vector<1x128xf32> to vector<8x128xf32>
    %668 = arith.mulf %0, %667 : vector<8x128xf32>
    %669 = vector.broadcast %666 : vector<1x128xf32> to vector<8x128xf32>
    %670 = arith.addf %0, %669 : vector<8x128xf32>
    %671 = vector.broadcast %641 : f32 to vector<8x128xf32>
    %672 = arith.mulf %671, %668 : vector<8x128xf32>
    %673 = arith.mulf %650, %670 : vector<8x128xf32>
    %674 = arith.addf %672, %673 : vector<8x128xf32>
    %675 = arith.addf %674, %658 : vector<8x128xf32>
    %cst_602 = arith.constant 0.000000e+00 : f32
    %676 = vector.broadcast %cst_602 : f32 to vector<8x128xf32>
    %677 = arith.maximumf %675, %676 : vector<8x128xf32>
    %678 = vector.broadcast %645 : f32 to vector<8x128xf32>
    %679 = arith.mulf %678, %677 : vector<8x128xf32>
    %680 = arith.addf %665, %679 : vector<8x128xf32>
    %681 = vector.broadcast %642 : f32 to vector<8x128xf32>
    %682 = arith.mulf %681, %668 : vector<8x128xf32>
    %683 = arith.mulf %652, %670 : vector<8x128xf32>
    %684 = arith.addf %682, %683 : vector<8x128xf32>
    %685 = arith.addf %684, %660 : vector<8x128xf32>
    %cst_603 = arith.constant 0.000000e+00 : f32
    %686 = vector.broadcast %cst_603 : f32 to vector<8x128xf32>
    %687 = arith.maximumf %685, %686 : vector<8x128xf32>
    %688 = vector.broadcast %646 : f32 to vector<8x128xf32>
    %689 = arith.mulf %688, %687 : vector<8x128xf32>
    %690 = arith.addf %680, %689 : vector<8x128xf32>
    %691 = vector.broadcast %643 : f32 to vector<8x128xf32>
    %692 = arith.mulf %691, %668 : vector<8x128xf32>
    %693 = arith.mulf %654, %670 : vector<8x128xf32>
    %694 = arith.addf %692, %693 : vector<8x128xf32>
    %695 = arith.addf %694, %662 : vector<8x128xf32>
    %cst_604 = arith.constant 0.000000e+00 : f32
    %696 = vector.broadcast %cst_604 : f32 to vector<8x128xf32>
    %697 = arith.maximumf %695, %696 : vector<8x128xf32>
    %698 = vector.broadcast %647 : f32 to vector<8x128xf32>
    %699 = arith.mulf %698, %697 : vector<8x128xf32>
    %700 = arith.addf %690, %699 : vector<8x128xf32>
    %701 = vector.broadcast %644 : f32 to vector<8x128xf32>
    %702 = arith.mulf %701, %668 : vector<8x128xf32>
    %703 = arith.mulf %656, %670 : vector<8x128xf32>
    %704 = arith.addf %702, %703 : vector<8x128xf32>
    %705 = arith.addf %704, %664 : vector<8x128xf32>
    %cst_605 = arith.constant 0.000000e+00 : f32
    %706 = vector.broadcast %cst_605 : f32 to vector<8x128xf32>
    %707 = arith.maximumf %705, %706 : vector<8x128xf32>
    %708 = vector.broadcast %648 : f32 to vector<8x128xf32>
    %709 = arith.mulf %708, %707 : vector<8x128xf32>
    %710 = arith.addf %700, %709 : vector<8x128xf32>
    %711 = vector.extract_strided_slice %0 {offsets = [1, 0], sizes = [1, 128], strides = [1, 1]} : vector<8x128xf32> to vector<1x128xf32>
    %712 = vector.broadcast %711 : vector<1x128xf32> to vector<8x128xf32>
    %713 = arith.mulf %0, %712 : vector<8x128xf32>
    %714 = vector.broadcast %711 : vector<1x128xf32> to vector<8x128xf32>
    %715 = arith.addf %0, %714 : vector<8x128xf32>
    %716 = vector.broadcast %641 : f32 to vector<8x128xf32>
    %717 = arith.mulf %716, %713 : vector<8x128xf32>
    %718 = arith.mulf %650, %715 : vector<8x128xf32>
    %719 = arith.addf %717, %718 : vector<8x128xf32>
    %720 = arith.addf %719, %658 : vector<8x128xf32>
    %cst_606 = arith.constant 0.000000e+00 : f32
    %721 = vector.broadcast %cst_606 : f32 to vector<8x128xf32>
    %722 = arith.maximumf %720, %721 : vector<8x128xf32>
    %723 = vector.broadcast %645 : f32 to vector<8x128xf32>
    %724 = arith.mulf %723, %722 : vector<8x128xf32>
    %725 = arith.addf %710, %724 : vector<8x128xf32>
    %726 = vector.broadcast %642 : f32 to vector<8x128xf32>
    %727 = arith.mulf %726, %713 : vector<8x128xf32>
    %728 = arith.mulf %652, %715 : vector<8x128xf32>
    %729 = arith.addf %727, %728 : vector<8x128xf32>
    %730 = arith.addf %729, %660 : vector<8x128xf32>
    %cst_607 = arith.constant 0.000000e+00 : f32
    %731 = vector.broadcast %cst_607 : f32 to vector<8x128xf32>
    %732 = arith.maximumf %730, %731 : vector<8x128xf32>
    %733 = vector.broadcast %646 : f32 to vector<8x128xf32>
    %734 = arith.mulf %733, %732 : vector<8x128xf32>
    %735 = arith.addf %725, %734 : vector<8x128xf32>
    %736 = vector.broadcast %643 : f32 to vector<8x128xf32>
    %737 = arith.mulf %736, %713 : vector<8x128xf32>
    %738 = arith.mulf %654, %715 : vector<8x128xf32>
    %739 = arith.addf %737, %738 : vector<8x128xf32>
    %740 = arith.addf %739, %662 : vector<8x128xf32>
    %cst_608 = arith.constant 0.000000e+00 : f32
    %741 = vector.broadcast %cst_608 : f32 to vector<8x128xf32>
    %742 = arith.maximumf %740, %741 : vector<8x128xf32>
    %743 = vector.broadcast %647 : f32 to vector<8x128xf32>
    %744 = arith.mulf %743, %742 : vector<8x128xf32>
    %745 = arith.addf %735, %744 : vector<8x128xf32>
    %746 = vector.broadcast %644 : f32 to vector<8x128xf32>
    %747 = arith.mulf %746, %713 : vector<8x128xf32>
    %748 = arith.mulf %656, %715 : vector<8x128xf32>
    %749 = arith.addf %747, %748 : vector<8x128xf32>
    %750 = arith.addf %749, %664 : vector<8x128xf32>
    %cst_609 = arith.constant 0.000000e+00 : f32
    %751 = vector.broadcast %cst_609 : f32 to vector<8x128xf32>
    %752 = arith.maximumf %750, %751 : vector<8x128xf32>
    %753 = vector.broadcast %648 : f32 to vector<8x128xf32>
    %754 = arith.mulf %753, %752 : vector<8x128xf32>
    %755 = arith.addf %745, %754 : vector<8x128xf32>
    %756 = vector.extract_strided_slice %0 {offsets = [2, 0], sizes = [1, 128], strides = [1, 1]} : vector<8x128xf32> to vector<1x128xf32>
    %757 = vector.broadcast %756 : vector<1x128xf32> to vector<8x128xf32>
    %758 = arith.mulf %0, %757 : vector<8x128xf32>
    %759 = vector.broadcast %756 : vector<1x128xf32> to vector<8x128xf32>
    %760 = arith.addf %0, %759 : vector<8x128xf32>
    %761 = vector.broadcast %641 : f32 to vector<8x128xf32>
    %762 = arith.mulf %761, %758 : vector<8x128xf32>
    %763 = arith.mulf %650, %760 : vector<8x128xf32>
    %764 = arith.addf %762, %763 : vector<8x128xf32>
    %765 = arith.addf %764, %658 : vector<8x128xf32>
    %cst_610 = arith.constant 0.000000e+00 : f32
    %766 = vector.broadcast %cst_610 : f32 to vector<8x128xf32>
    %767 = arith.maximumf %765, %766 : vector<8x128xf32>
    %768 = vector.broadcast %645 : f32 to vector<8x128xf32>
    %769 = arith.mulf %768, %767 : vector<8x128xf32>
    %770 = arith.addf %755, %769 : vector<8x128xf32>
    %771 = vector.broadcast %642 : f32 to vector<8x128xf32>
    %772 = arith.mulf %771, %758 : vector<8x128xf32>
    %773 = arith.mulf %652, %760 : vector<8x128xf32>
    %774 = arith.addf %772, %773 : vector<8x128xf32>
    %775 = arith.addf %774, %660 : vector<8x128xf32>
    %cst_611 = arith.constant 0.000000e+00 : f32
    %776 = vector.broadcast %cst_611 : f32 to vector<8x128xf32>
    %777 = arith.maximumf %775, %776 : vector<8x128xf32>
    %778 = vector.broadcast %646 : f32 to vector<8x128xf32>
    %779 = arith.mulf %778, %777 : vector<8x128xf32>
    %780 = arith.addf %770, %779 : vector<8x128xf32>
    %781 = vector.broadcast %643 : f32 to vector<8x128xf32>
    %782 = arith.mulf %781, %758 : vector<8x128xf32>
    %783 = arith.mulf %654, %760 : vector<8x128xf32>
    %784 = arith.addf %782, %783 : vector<8x128xf32>
    %785 = arith.addf %784, %662 : vector<8x128xf32>
    %cst_612 = arith.constant 0.000000e+00 : f32
    %786 = vector.broadcast %cst_612 : f32 to vector<8x128xf32>
    %787 = arith.maximumf %785, %786 : vector<8x128xf32>
    %788 = vector.broadcast %647 : f32 to vector<8x128xf32>
    %789 = arith.mulf %788, %787 : vector<8x128xf32>
    %790 = arith.addf %780, %789 : vector<8x128xf32>
    %791 = vector.broadcast %644 : f32 to vector<8x128xf32>
    %792 = arith.mulf %791, %758 : vector<8x128xf32>
    %793 = arith.mulf %656, %760 : vector<8x128xf32>
    %794 = arith.addf %792, %793 : vector<8x128xf32>
    %795 = arith.addf %794, %664 : vector<8x128xf32>
    %cst_613 = arith.constant 0.000000e+00 : f32
    %796 = vector.broadcast %cst_613 : f32 to vector<8x128xf32>
    %797 = arith.maximumf %795, %796 : vector<8x128xf32>
    %798 = vector.broadcast %648 : f32 to vector<8x128xf32>
    %799 = arith.mulf %798, %797 : vector<8x128xf32>
    %800 = arith.addf %790, %799 : vector<8x128xf32>
    %801 = vector.extract_strided_slice %0 {offsets = [3, 0], sizes = [1, 128], strides = [1, 1]} : vector<8x128xf32> to vector<1x128xf32>
    %802 = vector.broadcast %801 : vector<1x128xf32> to vector<8x128xf32>
    %803 = arith.mulf %0, %802 : vector<8x128xf32>
    %804 = vector.broadcast %801 : vector<1x128xf32> to vector<8x128xf32>
    %805 = arith.addf %0, %804 : vector<8x128xf32>
    %806 = vector.broadcast %641 : f32 to vector<8x128xf32>
    %807 = arith.mulf %806, %803 : vector<8x128xf32>
    %808 = arith.mulf %650, %805 : vector<8x128xf32>
    %809 = arith.addf %807, %808 : vector<8x128xf32>
    %810 = arith.addf %809, %658 : vector<8x128xf32>
    %cst_614 = arith.constant 0.000000e+00 : f32
    %811 = vector.broadcast %cst_614 : f32 to vector<8x128xf32>
    %812 = arith.maximumf %810, %811 : vector<8x128xf32>
    %813 = vector.broadcast %645 : f32 to vector<8x128xf32>
    %814 = arith.mulf %813, %812 : vector<8x128xf32>
    %815 = arith.addf %800, %814 : vector<8x128xf32>
    %816 = vector.broadcast %642 : f32 to vector<8x128xf32>
    %817 = arith.mulf %816, %803 : vector<8x128xf32>
    %818 = arith.mulf %652, %805 : vector<8x128xf32>
    %819 = arith.addf %817, %818 : vector<8x128xf32>
    %820 = arith.addf %819, %660 : vector<8x128xf32>
    %cst_615 = arith.constant 0.000000e+00 : f32
    %821 = vector.broadcast %cst_615 : f32 to vector<8x128xf32>
    %822 = arith.maximumf %820, %821 : vector<8x128xf32>
    %823 = vector.broadcast %646 : f32 to vector<8x128xf32>
    %824 = arith.mulf %823, %822 : vector<8x128xf32>
    %825 = arith.addf %815, %824 : vector<8x128xf32>
    %826 = vector.broadcast %643 : f32 to vector<8x128xf32>
    %827 = arith.mulf %826, %803 : vector<8x128xf32>
    %828 = arith.mulf %654, %805 : vector<8x128xf32>
    %829 = arith.addf %827, %828 : vector<8x128xf32>
    %830 = arith.addf %829, %662 : vector<8x128xf32>
    %cst_616 = arith.constant 0.000000e+00 : f32
    %831 = vector.broadcast %cst_616 : f32 to vector<8x128xf32>
    %832 = arith.maximumf %830, %831 : vector<8x128xf32>
    %833 = vector.broadcast %647 : f32 to vector<8x128xf32>
    %834 = arith.mulf %833, %832 : vector<8x128xf32>
    %835 = arith.addf %825, %834 : vector<8x128xf32>
    %836 = vector.broadcast %644 : f32 to vector<8x128xf32>
    %837 = arith.mulf %836, %803 : vector<8x128xf32>
    %838 = arith.mulf %656, %805 : vector<8x128xf32>
    %839 = arith.addf %837, %838 : vector<8x128xf32>
    %840 = arith.addf %839, %664 : vector<8x128xf32>
    %cst_617 = arith.constant 0.000000e+00 : f32
    %841 = vector.broadcast %cst_617 : f32 to vector<8x128xf32>
    %842 = arith.maximumf %840, %841 : vector<8x128xf32>
    %843 = vector.broadcast %648 : f32 to vector<8x128xf32>
    %844 = arith.mulf %843, %842 : vector<8x128xf32>
    %845 = arith.addf %835, %844 : vector<8x128xf32>
    %846 = vector.extract_strided_slice %0 {offsets = [4, 0], sizes = [1, 128], strides = [1, 1]} : vector<8x128xf32> to vector<1x128xf32>
    %847 = vector.broadcast %846 : vector<1x128xf32> to vector<8x128xf32>
    %848 = arith.mulf %0, %847 : vector<8x128xf32>
    %849 = vector.broadcast %846 : vector<1x128xf32> to vector<8x128xf32>
    %850 = arith.addf %0, %849 : vector<8x128xf32>
    %851 = vector.broadcast %641 : f32 to vector<8x128xf32>
    %852 = arith.mulf %851, %848 : vector<8x128xf32>
    %853 = arith.mulf %650, %850 : vector<8x128xf32>
    %854 = arith.addf %852, %853 : vector<8x128xf32>
    %855 = arith.addf %854, %658 : vector<8x128xf32>
    %cst_618 = arith.constant 0.000000e+00 : f32
    %856 = vector.broadcast %cst_618 : f32 to vector<8x128xf32>
    %857 = arith.maximumf %855, %856 : vector<8x128xf32>
    %858 = vector.broadcast %645 : f32 to vector<8x128xf32>
    %859 = arith.mulf %858, %857 : vector<8x128xf32>
    %860 = arith.addf %845, %859 : vector<8x128xf32>
    %861 = vector.broadcast %642 : f32 to vector<8x128xf32>
    %862 = arith.mulf %861, %848 : vector<8x128xf32>
    %863 = arith.mulf %652, %850 : vector<8x128xf32>
    %864 = arith.addf %862, %863 : vector<8x128xf32>
    %865 = arith.addf %864, %660 : vector<8x128xf32>
    %cst_619 = arith.constant 0.000000e+00 : f32
    %866 = vector.broadcast %cst_619 : f32 to vector<8x128xf32>
    %867 = arith.maximumf %865, %866 : vector<8x128xf32>
    %868 = vector.broadcast %646 : f32 to vector<8x128xf32>
    %869 = arith.mulf %868, %867 : vector<8x128xf32>
    %870 = arith.addf %860, %869 : vector<8x128xf32>
    %871 = vector.broadcast %643 : f32 to vector<8x128xf32>
    %872 = arith.mulf %871, %848 : vector<8x128xf32>
    %873 = arith.mulf %654, %850 : vector<8x128xf32>
    %874 = arith.addf %872, %873 : vector<8x128xf32>
    %875 = arith.addf %874, %662 : vector<8x128xf32>
    %cst_620 = arith.constant 0.000000e+00 : f32
    %876 = vector.broadcast %cst_620 : f32 to vector<8x128xf32>
    %877 = arith.maximumf %875, %876 : vector<8x128xf32>
    %878 = vector.broadcast %647 : f32 to vector<8x128xf32>
    %879 = arith.mulf %878, %877 : vector<8x128xf32>
    %880 = arith.addf %870, %879 : vector<8x128xf32>
    %881 = vector.broadcast %644 : f32 to vector<8x128xf32>
    %882 = arith.mulf %881, %848 : vector<8x128xf32>
    %883 = arith.mulf %656, %850 : vector<8x128xf32>
    %884 = arith.addf %882, %883 : vector<8x128xf32>
    %885 = arith.addf %884, %664 : vector<8x128xf32>
    %cst_621 = arith.constant 0.000000e+00 : f32
    %886 = vector.broadcast %cst_621 : f32 to vector<8x128xf32>
    %887 = arith.maximumf %885, %886 : vector<8x128xf32>
    %888 = vector.broadcast %648 : f32 to vector<8x128xf32>
    %889 = arith.mulf %888, %887 : vector<8x128xf32>
    %890 = arith.addf %880, %889 : vector<8x128xf32>
    %891 = vector.extract_strided_slice %0 {offsets = [5, 0], sizes = [1, 128], strides = [1, 1]} : vector<8x128xf32> to vector<1x128xf32>
    %892 = vector.broadcast %891 : vector<1x128xf32> to vector<8x128xf32>
    %893 = arith.mulf %0, %892 : vector<8x128xf32>
    %894 = vector.broadcast %891 : vector<1x128xf32> to vector<8x128xf32>
    %895 = arith.addf %0, %894 : vector<8x128xf32>
    %896 = vector.broadcast %641 : f32 to vector<8x128xf32>
    %897 = arith.mulf %896, %893 : vector<8x128xf32>
    %898 = arith.mulf %650, %895 : vector<8x128xf32>
    %899 = arith.addf %897, %898 : vector<8x128xf32>
    %900 = arith.addf %899, %658 : vector<8x128xf32>
    %cst_622 = arith.constant 0.000000e+00 : f32
    %901 = vector.broadcast %cst_622 : f32 to vector<8x128xf32>
    %902 = arith.maximumf %900, %901 : vector<8x128xf32>
    %903 = vector.broadcast %645 : f32 to vector<8x128xf32>
    %904 = arith.mulf %903, %902 : vector<8x128xf32>
    %905 = arith.addf %890, %904 : vector<8x128xf32>
    %906 = vector.broadcast %642 : f32 to vector<8x128xf32>
    %907 = arith.mulf %906, %893 : vector<8x128xf32>
    %908 = arith.mulf %652, %895 : vector<8x128xf32>
    %909 = arith.addf %907, %908 : vector<8x128xf32>
    %910 = arith.addf %909, %660 : vector<8x128xf32>
    %cst_623 = arith.constant 0.000000e+00 : f32
    %911 = vector.broadcast %cst_623 : f32 to vector<8x128xf32>
    %912 = arith.maximumf %910, %911 : vector<8x128xf32>
    %913 = vector.broadcast %646 : f32 to vector<8x128xf32>
    %914 = arith.mulf %913, %912 : vector<8x128xf32>
    %915 = arith.addf %905, %914 : vector<8x128xf32>
    %916 = vector.broadcast %643 : f32 to vector<8x128xf32>
    %917 = arith.mulf %916, %893 : vector<8x128xf32>
    %918 = arith.mulf %654, %895 : vector<8x128xf32>
    %919 = arith.addf %917, %918 : vector<8x128xf32>
    %920 = arith.addf %919, %662 : vector<8x128xf32>
    %cst_624 = arith.constant 0.000000e+00 : f32
    %921 = vector.broadcast %cst_624 : f32 to vector<8x128xf32>
    %922 = arith.maximumf %920, %921 : vector<8x128xf32>
    %923 = vector.broadcast %647 : f32 to vector<8x128xf32>
    %924 = arith.mulf %923, %922 : vector<8x128xf32>
    %925 = arith.addf %915, %924 : vector<8x128xf32>
    %926 = vector.broadcast %644 : f32 to vector<8x128xf32>
    %927 = arith.mulf %926, %893 : vector<8x128xf32>
    %928 = arith.mulf %656, %895 : vector<8x128xf32>
    %929 = arith.addf %927, %928 : vector<8x128xf32>
    %930 = arith.addf %929, %664 : vector<8x128xf32>
    %cst_625 = arith.constant 0.000000e+00 : f32
    %931 = vector.broadcast %cst_625 : f32 to vector<8x128xf32>
    %932 = arith.maximumf %930, %931 : vector<8x128xf32>
    %933 = vector.broadcast %648 : f32 to vector<8x128xf32>
    %934 = arith.mulf %933, %932 : vector<8x128xf32>
    %935 = arith.addf %925, %934 : vector<8x128xf32>
    %936 = vector.extract_strided_slice %0 {offsets = [6, 0], sizes = [1, 128], strides = [1, 1]} : vector<8x128xf32> to vector<1x128xf32>
    %937 = vector.broadcast %936 : vector<1x128xf32> to vector<8x128xf32>
    %938 = arith.mulf %0, %937 : vector<8x128xf32>
    %939 = vector.broadcast %936 : vector<1x128xf32> to vector<8x128xf32>
    %940 = arith.addf %0, %939 : vector<8x128xf32>
    %941 = vector.broadcast %641 : f32 to vector<8x128xf32>
    %942 = arith.mulf %941, %938 : vector<8x128xf32>
    %943 = arith.mulf %650, %940 : vector<8x128xf32>
    %944 = arith.addf %942, %943 : vector<8x128xf32>
    %945 = arith.addf %944, %658 : vector<8x128xf32>
    %cst_626 = arith.constant 0.000000e+00 : f32
    %946 = vector.broadcast %cst_626 : f32 to vector<8x128xf32>
    %947 = arith.maximumf %945, %946 : vector<8x128xf32>
    %948 = vector.broadcast %645 : f32 to vector<8x128xf32>
    %949 = arith.mulf %948, %947 : vector<8x128xf32>
    %950 = arith.addf %935, %949 : vector<8x128xf32>
    %951 = vector.broadcast %642 : f32 to vector<8x128xf32>
    %952 = arith.mulf %951, %938 : vector<8x128xf32>
    %953 = arith.mulf %652, %940 : vector<8x128xf32>
    %954 = arith.addf %952, %953 : vector<8x128xf32>
    %955 = arith.addf %954, %660 : vector<8x128xf32>
    %cst_627 = arith.constant 0.000000e+00 : f32
    %956 = vector.broadcast %cst_627 : f32 to vector<8x128xf32>
    %957 = arith.maximumf %955, %956 : vector<8x128xf32>
    %958 = vector.broadcast %646 : f32 to vector<8x128xf32>
    %959 = arith.mulf %958, %957 : vector<8x128xf32>
    %960 = arith.addf %950, %959 : vector<8x128xf32>
    %961 = vector.broadcast %643 : f32 to vector<8x128xf32>
    %962 = arith.mulf %961, %938 : vector<8x128xf32>
    %963 = arith.mulf %654, %940 : vector<8x128xf32>
    %964 = arith.addf %962, %963 : vector<8x128xf32>
    %965 = arith.addf %964, %662 : vector<8x128xf32>
    %cst_628 = arith.constant 0.000000e+00 : f32
    %966 = vector.broadcast %cst_628 : f32 to vector<8x128xf32>
    %967 = arith.maximumf %965, %966 : vector<8x128xf32>
    %968 = vector.broadcast %647 : f32 to vector<8x128xf32>
    %969 = arith.mulf %968, %967 : vector<8x128xf32>
    %970 = arith.addf %960, %969 : vector<8x128xf32>
    %971 = vector.broadcast %644 : f32 to vector<8x128xf32>
    %972 = arith.mulf %971, %938 : vector<8x128xf32>
    %973 = arith.mulf %656, %940 : vector<8x128xf32>
    %974 = arith.addf %972, %973 : vector<8x128xf32>
    %975 = arith.addf %974, %664 : vector<8x128xf32>
    %cst_629 = arith.constant 0.000000e+00 : f32
    %976 = vector.broadcast %cst_629 : f32 to vector<8x128xf32>
    %977 = arith.maximumf %975, %976 : vector<8x128xf32>
    %978 = vector.broadcast %648 : f32 to vector<8x128xf32>
    %979 = arith.mulf %978, %977 : vector<8x128xf32>
    %980 = arith.addf %970, %979 : vector<8x128xf32>
    %981 = vector.extract_strided_slice %0 {offsets = [7, 0], sizes = [1, 128], strides = [1, 1]} : vector<8x128xf32> to vector<1x128xf32>
    %982 = vector.broadcast %981 : vector<1x128xf32> to vector<8x128xf32>
    %983 = arith.mulf %0, %982 : vector<8x128xf32>
    %984 = vector.broadcast %981 : vector<1x128xf32> to vector<8x128xf32>
    %985 = arith.addf %0, %984 : vector<8x128xf32>
    %986 = vector.broadcast %641 : f32 to vector<8x128xf32>
    %987 = arith.mulf %986, %983 : vector<8x128xf32>
    %988 = arith.mulf %650, %985 : vector<8x128xf32>
    %989 = arith.addf %987, %988 : vector<8x128xf32>
    %990 = arith.addf %989, %658 : vector<8x128xf32>
    %cst_630 = arith.constant 0.000000e+00 : f32
    %991 = vector.broadcast %cst_630 : f32 to vector<8x128xf32>
    %992 = arith.maximumf %990, %991 : vector<8x128xf32>
    %993 = vector.broadcast %645 : f32 to vector<8x128xf32>
    %994 = arith.mulf %993, %992 : vector<8x128xf32>
    %995 = arith.addf %980, %994 : vector<8x128xf32>
    %996 = vector.broadcast %642 : f32 to vector<8x128xf32>
    %997 = arith.mulf %996, %983 : vector<8x128xf32>
    %998 = arith.mulf %652, %985 : vector<8x128xf32>
    %999 = arith.addf %997, %998 : vector<8x128xf32>
    %1000 = arith.addf %999, %660 : vector<8x128xf32>
    %cst_631 = arith.constant 0.000000e+00 : f32
    %1001 = vector.broadcast %cst_631 : f32 to vector<8x128xf32>
    %1002 = arith.maximumf %1000, %1001 : vector<8x128xf32>
    %1003 = vector.broadcast %646 : f32 to vector<8x128xf32>
    %1004 = arith.mulf %1003, %1002 : vector<8x128xf32>
    %1005 = arith.addf %995, %1004 : vector<8x128xf32>
    %1006 = vector.broadcast %643 : f32 to vector<8x128xf32>
    %1007 = arith.mulf %1006, %983 : vector<8x128xf32>
    %1008 = arith.mulf %654, %985 : vector<8x128xf32>
    %1009 = arith.addf %1007, %1008 : vector<8x128xf32>
    %1010 = arith.addf %1009, %662 : vector<8x128xf32>
    %cst_632 = arith.constant 0.000000e+00 : f32
    %1011 = vector.broadcast %cst_632 : f32 to vector<8x128xf32>
    %1012 = arith.maximumf %1010, %1011 : vector<8x128xf32>
    %1013 = vector.broadcast %647 : f32 to vector<8x128xf32>
    %1014 = arith.mulf %1013, %1012 : vector<8x128xf32>
    %1015 = arith.addf %1005, %1014 : vector<8x128xf32>
    %1016 = vector.broadcast %644 : f32 to vector<8x128xf32>
    %1017 = arith.mulf %1016, %983 : vector<8x128xf32>
    %1018 = arith.mulf %656, %985 : vector<8x128xf32>
    %1019 = arith.addf %1017, %1018 : vector<8x128xf32>
    %1020 = arith.addf %1019, %664 : vector<8x128xf32>
    %cst_633 = arith.constant 0.000000e+00 : f32
    %1021 = vector.broadcast %cst_633 : f32 to vector<8x128xf32>
    %1022 = arith.maximumf %1020, %1021 : vector<8x128xf32>
    %1023 = vector.broadcast %648 : f32 to vector<8x128xf32>
    %1024 = arith.mulf %1023, %1022 : vector<8x128xf32>
    %1025 = arith.addf %1015, %1024 : vector<8x128xf32>
    %c0_634 = arith.constant 0 : index
    %c0_635 = arith.constant 0 : index
    %1026 = vector.load %arg4[%c0_634, %c0_635] : memref<128x16xf32, #tpu.memory_space<vmem>>, vector<128x16xf32>
    %cst_636 = arith.constant dense<0.000000e+00> : vector<8x16xf32>
    %1027 = tpu.matmul %1025, %1026, %cst_636 {dimension_numbers = #tpu.dot_dimension_numbers<[1], [0], [0], [1], [0, 0, 1, 1], [], []>} : vector<8x128xf32>, vector<128x16xf32>, vector<8x16xf32> -> vector<8x16xf32>
    %c0_637 = arith.constant 0 : index
    %1028 = memref.load %arg13[%c0_637] : memref<1xf32, #tpu.memory_space<smem>>
    %cst_638 = arith.constant 6.400000e+01 : f32
    %1029 = arith.mulf %cst_638, %1028 : f32
    %1030 = vector.broadcast %1029 : f32 to vector<8x16xf32>
    %1031 = arith.addf %1027, %1030 : vector<8x16xf32>
    %c0_639 = arith.constant 0 : index
    %c0_640 = arith.constant 0 : index
    %1032 = vector.load %arg15[%c0_639, %c0_640] : memref<8x16xf32, #tpu.memory_space<vmem>>, vector<8x16xf32>
    tpu.vector_store %arg15[%c0_639, %c0_640], %1031 {strides = array<i32>} : memref<8x16xf32, #tpu.memory_space<vmem>>, vector<8x16xf32>,
    %cst_641 = arith.constant 0.000000e+00 : f32
    %1033 = vector.broadcast %cst_641 : f32 to vector<16x160xf32>
    %c0_642 = arith.constant 0 : index
    %c0_643 = arith.constant 0 : index
    %1034 = vector.load %arg17[%c0_642, %c0_643] : memref<16x160xf32, #tpu.memory_space<vmem>>, vector<16x160xf32>
    tpu.vector_store %arg17[%c0_642, %c0_643], %1033 {strides = array<i32>} : memref<16x160xf32, #tpu.memory_space<vmem>>, vector<16x160xf32>,
    %c0_644 = arith.constant 0 : index
    %c0_645 = arith.constant 0 : index
    %1035 = vector.load %arg0[%c0_644, %c0_645] : memref<16x128xf32, #tpu.memory_space<vmem>>, vector<16x128xf32>
    %c0_646 = arith.constant 0 : index
    %c16 = arith.constant 16 : index
    %1036 = vector.load %arg17[%c0_646, %c16] : memref<16x160xf32, #tpu.memory_space<vmem>>, vector<16x128xf32>
    tpu.vector_store %arg17[%c0_646, %c16], %1035 {strides = array<i32>} : memref<16x160xf32, #tpu.memory_space<vmem>>, vector<16x128xf32>,
    %c0_647 = arith.constant 0 : index
    %c7_648 = arith.constant 7 : index
    %1037 = vector.load %arg17[%c0_647, %c7_648] : memref<16x160xf32, #tpu.memory_space<vmem>>, vector<16x128xf32>
    %c0_649 = arith.constant 0 : index
    %c0_650 = arith.constant 0 : index
    %1038 = vector.load %arg5[%c0_649, %c0_650] : memref<9x128xf32, #tpu.memory_space<vmem>>, vector<1x128xf32>
    %1039 = vector.broadcast %1038 : vector<1x128xf32> to vector<16x128xf32>
    %1040 = arith.mulf %1037, %1039 : vector<16x128xf32>
    %c0_651 = arith.constant 0 : index
    %c0_652 = arith.constant 0 : index
    %1041 = vector.load %arg18[%c0_651, %c0_652] : memref<144x128xf32, #tpu.memory_space<vmem>>, vector<16x128xf32>
    tpu.vector_store %arg18[%c0_651, %c0_652], %1040 {strides = array<i32>} : memref<144x128xf32, #tpu.memory_space<vmem>>, vector<16x128xf32>,
    %c0_653 = arith.constant 0 : index
    %c8 = arith.constant 8 : index
    %1042 = vector.load %arg17[%c0_653, %c8] : memref<16x160xf32, #tpu.memory_space<vmem>>, vector<16x128xf32>
    %c1_654 = arith.constant 1 : index
    %c0_655 = arith.constant 0 : index
    %1043 = vector.load %arg5[%c1_654, %c0_655] : memref<9x128xf32, #tpu.memory_space<vmem>>, vector<1x128xf32>
    %1044 = vector.broadcast %1043 : vector<1x128xf32> to vector<16x128xf32>
    %1045 = arith.mulf %1042, %1044 : vector<16x128xf32>
    %c16_656 = arith.constant 16 : index
    %c0_657 = arith.constant 0 : index
    %1046 = vector.load %arg18[%c16_656, %c0_657] : memref<144x128xf32, #tpu.memory_space<vmem>>, vector<16x128xf32>
    tpu.vector_store %arg18[%c16_656, %c0_657], %1045 {strides = array<i32>} : memref<144x128xf32, #tpu.memory_space<vmem>>, vector<16x128xf32>,
    %c0_658 = arith.constant 0 : index
    %c9 = arith.constant 9 : index
    %1047 = vector.load %arg17[%c0_658, %c9] : memref<16x160xf32, #tpu.memory_space<vmem>>, vector<16x128xf32>
    %c2_659 = arith.constant 2 : index
    %c0_660 = arith.constant 0 : index
    %1048 = vector.load %arg5[%c2_659, %c0_660] : memref<9x128xf32, #tpu.memory_space<vmem>>, vector<1x128xf32>
    %1049 = vector.broadcast %1048 : vector<1x128xf32> to vector<16x128xf32>
    %1050 = arith.mulf %1047, %1049 : vector<16x128xf32>
    %c32 = arith.constant 32 : index
    %c0_661 = arith.constant 0 : index
    %1051 = vector.load %arg18[%c32, %c0_661] : memref<144x128xf32, #tpu.memory_space<vmem>>, vector<16x128xf32>
    tpu.vector_store %arg18[%c32, %c0_661], %1050 {strides = array<i32>} : memref<144x128xf32, #tpu.memory_space<vmem>>, vector<16x128xf32>,
    %c0_662 = arith.constant 0 : index
    %c15 = arith.constant 15 : index
    %1052 = vector.load %arg17[%c0_662, %c15] : memref<16x160xf32, #tpu.memory_space<vmem>>, vector<16x128xf32>
    %c3_663 = arith.constant 3 : index
    %c0_664 = arith.constant 0 : index
    %1053 = vector.load %arg5[%c3_663, %c0_664] : memref<9x128xf32, #tpu.memory_space<vmem>>, vector<1x128xf32>
    %1054 = vector.broadcast %1053 : vector<1x128xf32> to vector<16x128xf32>
    %1055 = arith.mulf %1052, %1054 : vector<16x128xf32>
    %c48 = arith.constant 48 : index
    %c0_665 = arith.constant 0 : index
    %1056 = vector.load %arg18[%c48, %c0_665] : memref<144x128xf32, #tpu.memory_space<vmem>>, vector<16x128xf32>
    tpu.vector_store %arg18[%c48, %c0_665], %1055 {strides = array<i32>} : memref<144x128xf32, #tpu.memory_space<vmem>>, vector<16x128xf32>,
    %c0_666 = arith.constant 0 : index
    %c16_667 = arith.constant 16 : index
    %1057 = vector.load %arg17[%c0_666, %c16_667] : memref<16x160xf32, #tpu.memory_space<vmem>>, vector<16x128xf32>
    %c64 = arith.constant 64 : index
    %c0_668 = arith.constant 0 : index
    %1058 = vector.load %arg18[%c64, %c0_668] : memref<144x128xf32, #tpu.memory_space<vmem>>, vector<16x128xf32>
    tpu.vector_store %arg18[%c64, %c0_668], %1057 {strides = array<i32>} : memref<144x128xf32, #tpu.memory_space<vmem>>, vector<16x128xf32>,
    %c0_669 = arith.constant 0 : index
    %c17 = arith.constant 17 : index
    %1059 = vector.load %arg17[%c0_669, %c17] : memref<16x160xf32, #tpu.memory_space<vmem>>, vector<16x128xf32>
    %c5_670 = arith.constant 5 : index
    %c0_671 = arith.constant 0 : index
    %1060 = vector.load %arg5[%c5_670, %c0_671] : memref<9x128xf32, #tpu.memory_space<vmem>>, vector<1x128xf32>
    %1061 = vector.broadcast %1060 : vector<1x128xf32> to vector<16x128xf32>
    %1062 = arith.mulf %1059, %1061 : vector<16x128xf32>
    %c80 = arith.constant 80 : index
    %c0_672 = arith.constant 0 : index
    %1063 = vector.load %arg18[%c80, %c0_672] : memref<144x128xf32, #tpu.memory_space<vmem>>, vector<16x128xf32>
    tpu.vector_store %arg18[%c80, %c0_672], %1062 {strides = array<i32>} : memref<144x128xf32, #tpu.memory_space<vmem>>, vector<16x128xf32>,
    %c0_673 = arith.constant 0 : index
    %c23 = arith.constant 23 : index
    %1064 = vector.load %arg17[%c0_673, %c23] : memref<16x160xf32, #tpu.memory_space<vmem>>, vector<16x128xf32>
    %c6_674 = arith.constant 6 : index
    %c0_675 = arith.constant 0 : index
    %1065 = vector.load %arg5[%c6_674, %c0_675] : memref<9x128xf32, #tpu.memory_space<vmem>>, vector<1x128xf32>
    %1066 = vector.broadcast %1065 : vector<1x128xf32> to vector<16x128xf32>
    %1067 = arith.mulf %1064, %1066 : vector<16x128xf32>
    %c96 = arith.constant 96 : index
    %c0_676 = arith.constant 0 : index
    %1068 = vector.load %arg18[%c96, %c0_676] : memref<144x128xf32, #tpu.memory_space<vmem>>, vector<16x128xf32>
    tpu.vector_store %arg18[%c96, %c0_676], %1067 {strides = array<i32>} : memref<144x128xf32, #tpu.memory_space<vmem>>, vector<16x128xf32>,
    %c0_677 = arith.constant 0 : index
    %c24 = arith.constant 24 : index
    %1069 = vector.load %arg17[%c0_677, %c24] : memref<16x160xf32, #tpu.memory_space<vmem>>, vector<16x128xf32>
    %c7_678 = arith.constant 7 : index
    %c0_679 = arith.constant 0 : index
    %1070 = vector.load %arg5[%c7_678, %c0_679] : memref<9x128xf32, #tpu.memory_space<vmem>>, vector<1x128xf32>
    %1071 = vector.broadcast %1070 : vector<1x128xf32> to vector<16x128xf32>
    %1072 = arith.mulf %1069, %1071 : vector<16x128xf32>
    %c112 = arith.constant 112 : index
    %c0_680 = arith.constant 0 : index
    %1073 = vector.load %arg18[%c112, %c0_680] : memref<144x128xf32, #tpu.memory_space<vmem>>, vector<16x128xf32>
    tpu.vector_store %arg18[%c112, %c0_680], %1072 {strides = array<i32>} : memref<144x128xf32, #tpu.memory_space<vmem>>, vector<16x128xf32>,
    %c0_681 = arith.constant 0 : index
    %c25 = arith.constant 25 : index
    %1074 = vector.load %arg17[%c0_681, %c25] : memref<16x160xf32, #tpu.memory_space<vmem>>, vector<16x128xf32>
    %c8_682 = arith.constant 8 : index
    %c0_683 = arith.constant 0 : index
    %1075 = vector.load %arg5[%c8_682, %c0_683] : memref<9x128xf32, #tpu.memory_space<vmem>>, vector<1x128xf32>
    %1076 = vector.broadcast %1075 : vector<1x128xf32> to vector<16x128xf32>
    %1077 = arith.mulf %1074, %1076 : vector<16x128xf32>
    %c128 = arith.constant 128 : index
    %c0_684 = arith.constant 0 : index
    %1078 = vector.load %arg18[%c128, %c0_684] : memref<144x128xf32, #tpu.memory_space<vmem>>, vector<16x128xf32>
    tpu.vector_store %arg18[%c128, %c0_684], %1077 {strides = array<i32>} : memref<144x128xf32, #tpu.memory_space<vmem>>, vector<16x128xf32>,
    %c0_685 = arith.constant 0 : index
    %c0_686 = arith.constant 0 : index
    %1079 = vector.load %arg6[%c0_685, %c0_686] : memref<16x144xf32, #tpu.memory_space<vmem>>, vector<16x144xf32>
    %c0_687 = arith.constant 0 : index
    %c0_688 = arith.constant 0 : index
    %1080 = vector.load %arg18[%c0_687, %c0_688] : memref<144x128xf32, #tpu.memory_space<vmem>>, vector<144x128xf32>
    %cst_689 = arith.constant dense<0.000000e+00> : vector<16x128xf32>
    %1081 = tpu.matmul %1079, %1080, %cst_689 {dimension_numbers = #tpu.dot_dimension_numbers<[1], [0], [0], [1], [0, 0, 1, 1], [], []>} : vector<16x144xf32>, vector<144x128xf32>, vector<16x128xf32> -> vector<16x128xf32>
    %c0_690 = arith.constant 0 : index
    %c0_691 = arith.constant 0 : index
    %1082 = vector.load %arg7[%c0_690, %c0_691] : memref<16x1xf32, #tpu.memory_space<vmem>>, vector<16x1xf32>
    %1083 = vector.broadcast %1082 : vector<16x1xf32> to vector<16x128xf32>
    %1084 = arith.addf %1081, %1083 : vector<16x128xf32>
    %cst_692 = arith.constant 0.000000e+00 : f32
    %1085 = vector.broadcast %cst_692 : f32 to vector<16x128xf32>
    %1086 = arith.maximumf %1084, %1085 : vector<16x128xf32>
    %c0_693 = arith.constant 0 : index
    %c16_694 = arith.constant 16 : index
    %1087 = vector.load %arg17[%c0_693, %c16_694] : memref<16x160xf32, #tpu.memory_space<vmem>>, vector<16x128xf32>
    tpu.vector_store %arg17[%c0_693, %c16_694], %1086 {strides = array<i32>} : memref<16x160xf32, #tpu.memory_space<vmem>>, vector<16x128xf32>,
    %c0_695 = arith.constant 0 : index
    %c7_696 = arith.constant 7 : index
    %1088 = vector.load %arg17[%c0_695, %c7_696] : memref<16x160xf32, #tpu.memory_space<vmem>>, vector<16x128xf32>
    %c0_697 = arith.constant 0 : index
    %c0_698 = arith.constant 0 : index
    %1089 = vector.load %arg5[%c0_697, %c0_698] : memref<9x128xf32, #tpu.memory_space<vmem>>, vector<1x128xf32>
    %1090 = vector.broadcast %1089 : vector<1x128xf32> to vector<16x128xf32>
    %1091 = arith.mulf %1088, %1090 : vector<16x128xf32>
    %c0_699 = arith.constant 0 : index
    %c0_700 = arith.constant 0 : index
    %1092 = vector.load %arg18[%c0_699, %c0_700] : memref<144x128xf32, #tpu.memory_space<vmem>>, vector<16x128xf32>
    tpu.vector_store %arg18[%c0_699, %c0_700], %1091 {strides = array<i32>} : memref<144x128xf32, #tpu.memory_space<vmem>>, vector<16x128xf32>,
    %c0_701 = arith.constant 0 : index
    %c8_702 = arith.constant 8 : index
    %1093 = vector.load %arg17[%c0_701, %c8_702] : memref<16x160xf32, #tpu.memory_space<vmem>>, vector<16x128xf32>
    %c1_703 = arith.constant 1 : index
    %c0_704 = arith.constant 0 : index
    %1094 = vector.load %arg5[%c1_703, %c0_704] : memref<9x128xf32, #tpu.memory_space<vmem>>, vector<1x128xf32>
    %1095 = vector.broadcast %1094 : vector<1x128xf32> to vector<16x128xf32>
    %1096 = arith.mulf %1093, %1095 : vector<16x128xf32>
    %c16_705 = arith.constant 16 : index
    %c0_706 = arith.constant 0 : index
    %1097 = vector.load %arg18[%c16_705, %c0_706] : memref<144x128xf32, #tpu.memory_space<vmem>>, vector<16x128xf32>
    tpu.vector_store %arg18[%c16_705, %c0_706], %1096 {strides = array<i32>} : memref<144x128xf32, #tpu.memory_space<vmem>>, vector<16x128xf32>,
    %c0_707 = arith.constant 0 : index
    %c9_708 = arith.constant 9 : index
    %1098 = vector.load %arg17[%c0_707, %c9_708] : memref<16x160xf32, #tpu.memory_space<vmem>>, vector<16x128xf32>
    %c2_709 = arith.constant 2 : index
    %c0_710 = arith.constant 0 : index
    %1099 = vector.load %arg5[%c2_709, %c0_710] : memref<9x128xf32, #tpu.memory_space<vmem>>, vector<1x128xf32>
    %1100 = vector.broadcast %1099 : vector<1x128xf32> to vector<16x128xf32>
    %1101 = arith.mulf %1098, %1100 : vector<16x128xf32>
    %c32_711 = arith.constant 32 : index
    %c0_712 = arith.constant 0 : index
    %1102 = vector.load %arg18[%c32_711, %c0_712] : memref<144x128xf32, #tpu.memory_space<vmem>>, vector<16x128xf32>
    tpu.vector_store %arg18[%c32_711, %c0_712], %1101 {strides = array<i32>} : memref<144x128xf32, #tpu.memory_space<vmem>>, vector<16x128xf32>,
    %c0_713 = arith.constant 0 : index
    %c15_714 = arith.constant 15 : index
    %1103 = vector.load %arg17[%c0_713, %c15_714] : memref<16x160xf32, #tpu.memory_space<vmem>>, vector<16x128xf32>
    %c3_715 = arith.constant 3 : index
    %c0_716 = arith.constant 0 : index
    %1104 = vector.load %arg5[%c3_715, %c0_716] : memref<9x128xf32, #tpu.memory_space<vmem>>, vector<1x128xf32>
    %1105 = vector.broadcast %1104 : vector<1x128xf32> to vector<16x128xf32>
    %1106 = arith.mulf %1103, %1105 : vector<16x128xf32>
    %c48_717 = arith.constant 48 : index
    %c0_718 = arith.constant 0 : index
    %1107 = vector.load %arg18[%c48_717, %c0_718] : memref<144x128xf32, #tpu.memory_space<vmem>>, vector<16x128xf32>
    tpu.vector_store %arg18[%c48_717, %c0_718], %1106 {strides = array<i32>} : memref<144x128xf32, #tpu.memory_space<vmem>>, vector<16x128xf32>,
    %c0_719 = arith.constant 0 : index
    %c16_720 = arith.constant 16 : index
    %1108 = vector.load %arg17[%c0_719, %c16_720] : memref<16x160xf32, #tpu.memory_space<vmem>>, vector<16x128xf32>
    %c64_721 = arith.constant 64 : index
    %c0_722 = arith.constant 0 : index
    %1109 = vector.load %arg18[%c64_721, %c0_722] : memref<144x128xf32, #tpu.memory_space<vmem>>, vector<16x128xf32>
    tpu.vector_store %arg18[%c64_721, %c0_722], %1108 {strides = array<i32>} : memref<144x128xf32, #tpu.memory_space<vmem>>, vector<16x128xf32>,
    %c0_723 = arith.constant 0 : index
    %c17_724 = arith.constant 17 : index
    %1110 = vector.load %arg17[%c0_723, %c17_724] : memref<16x160xf32, #tpu.memory_space<vmem>>, vector<16x128xf32>
    %c5_725 = arith.constant 5 : index
    %c0_726 = arith.constant 0 : index
    %1111 = vector.load %arg5[%c5_725, %c0_726] : memref<9x128xf32, #tpu.memory_space<vmem>>, vector<1x128xf32>
    %1112 = vector.broadcast %1111 : vector<1x128xf32> to vector<16x128xf32>
    %1113 = arith.mulf %1110, %1112 : vector<16x128xf32>
    %c80_727 = arith.constant 80 : index
    %c0_728 = arith.constant 0 : index
    %1114 = vector.load %arg18[%c80_727, %c0_728] : memref<144x128xf32, #tpu.memory_space<vmem>>, vector<16x128xf32>
    tpu.vector_store %arg18[%c80_727, %c0_728], %1113 {strides = array<i32>} : memref<144x128xf32, #tpu.memory_space<vmem>>, vector<16x128xf32>,
    %c0_729 = arith.constant 0 : index
    %c23_730 = arith.constant 23 : index
    %1115 = vector.load %arg17[%c0_729, %c23_730] : memref<16x160xf32, #tpu.memory_space<vmem>>, vector<16x128xf32>
    %c6_731 = arith.constant 6 : index
    %c0_732 = arith.constant 0 : index
    %1116 = vector.load %arg5[%c6_731, %c0_732] : memref<9x128xf32, #tpu.memory_space<vmem>>, vector<1x128xf32>
    %1117 = vector.broadcast %1116 : vector<1x128xf32> to vector<16x128xf32>
    %1118 = arith.mulf %1115, %1117 : vector<16x128xf32>
    %c96_733 = arith.constant 96 : index
    %c0_734 = arith.constant 0 : index
    %1119 = vector.load %arg18[%c96_733, %c0_734] : memref<144x128xf32, #tpu.memory_space<vmem>>, vector<16x128xf32>
    tpu.vector_store %arg18[%c96_733, %c0_734], %1118 {strides = array<i32>} : memref<144x128xf32, #tpu.memory_space<vmem>>, vector<16x128xf32>,
    %c0_735 = arith.constant 0 : index
    %c24_736 = arith.constant 24 : index
    %1120 = vector.load %arg17[%c0_735, %c24_736] : memref<16x160xf32, #tpu.memory_space<vmem>>, vector<16x128xf32>
    %c7_737 = arith.constant 7 : index
    %c0_738 = arith.constant 0 : index
    %1121 = vector.load %arg5[%c7_737, %c0_738] : memref<9x128xf32, #tpu.memory_space<vmem>>, vector<1x128xf32>
    %1122 = vector.broadcast %1121 : vector<1x128xf32> to vector<16x128xf32>
    %1123 = arith.mulf %1120, %1122 : vector<16x128xf32>
    %c112_739 = arith.constant 112 : index
    %c0_740 = arith.constant 0 : index
    %1124 = vector.load %arg18[%c112_739, %c0_740] : memref<144x128xf32, #tpu.memory_space<vmem>>, vector<16x128xf32>
    tpu.vector_store %arg18[%c112_739, %c0_740], %1123 {strides = array<i32>} : memref<144x128xf32, #tpu.memory_space<vmem>>, vector<16x128xf32>,
    %c0_741 = arith.constant 0 : index
    %c25_742 = arith.constant 25 : index
    %1125 = vector.load %arg17[%c0_741, %c25_742] : memref<16x160xf32, #tpu.memory_space<vmem>>, vector<16x128xf32>
    %c8_743 = arith.constant 8 : index
    %c0_744 = arith.constant 0 : index
    %1126 = vector.load %arg5[%c8_743, %c0_744] : memref<9x128xf32, #tpu.memory_space<vmem>>, vector<1x128xf32>
    %1127 = vector.broadcast %1126 : vector<1x128xf32> to vector<16x128xf32>
    %1128 = arith.mulf %1125, %1127 : vector<16x128xf32>
    %c128_745 = arith.constant 128 : index
    %c0_746 = arith.constant 0 : index
    %1129 = vector.load %arg18[%c128_745, %c0_746] : memref<144x128xf32, #tpu.memory_space<vmem>>, vector<16x128xf32>
    tpu.vector_store %arg18[%c128_745, %c0_746], %1128 {strides = array<i32>} : memref<144x128xf32, #tpu.memory_space<vmem>>, vector<16x128xf32>,
    %c0_747 = arith.constant 0 : index
    %c0_748 = arith.constant 0 : index
    %1130 = vector.load %arg8[%c0_747, %c0_748] : memref<16x144xf32, #tpu.memory_space<vmem>>, vector<16x144xf32>
    %c0_749 = arith.constant 0 : index
    %c0_750 = arith.constant 0 : index
    %1131 = vector.load %arg18[%c0_749, %c0_750] : memref<144x128xf32, #tpu.memory_space<vmem>>, vector<144x128xf32>
    %cst_751 = arith.constant dense<0.000000e+00> : vector<16x128xf32>
    %1132 = tpu.matmul %1130, %1131, %cst_751 {dimension_numbers = #tpu.dot_dimension_numbers<[1], [0], [0], [1], [0, 0, 1, 1], [], []>} : vector<16x144xf32>, vector<144x128xf32>, vector<16x128xf32> -> vector<16x128xf32>
    %c0_752 = arith.constant 0 : index
    %c0_753 = arith.constant 0 : index
    %1133 = vector.load %arg9[%c0_752, %c0_753] : memref<16x1xf32, #tpu.memory_space<vmem>>, vector<16x1xf32>
    %1134 = vector.broadcast %1133 : vector<16x1xf32> to vector<16x128xf32>
    %1135 = arith.addf %1132, %1134 : vector<16x128xf32>
    %c0_754 = arith.constant 0 : index
    %c0_755 = arith.constant 0 : index
    %1136 = vector.load %arg16[%c0_754, %c0_755] : memref<16x128xf32, #tpu.memory_space<vmem>>, vector<16x128xf32>
    tpu.vector_store %arg16[%c0_754, %c0_755], %1135 {strides = array<i32>} : memref<16x128xf32, #tpu.memory_space<vmem>>, vector<16x128xf32>,
    return
  }
}

</mosaic_0001>

<bundles_post_ra>
// kernel: chess_ssea_forward.1
= control target key start
LH: loop header
LB: loop body
LE: loop exit
PB: predicated region body
PF: predicated region fallthrough
CT: control target
= control target key end

     0   :  { %s3924_s0 = inlined_call_operand.vmem [shape: f32[16,128], index: 0, kind: input, shape index: {}]   ;;  %s3925_s1 = inlined_call_operand.vmem [shape: f32[8,8,128], index: 1, kind: input, shape index: {}]   ;;  %s3926_s2 = inlined_call_operand.vmem [shape: f32[4,8,128], index: 2, kind: input, shape index: {}]   ;;  %s3927_s3 = inlined_call_operand.vmem [shape: f32[4,8,128], index: 3, kind: input, shape index: {}]   ;;  %s3928_s4 = inlined_call_operand.vmem [shape: f32[128,16], index: 4, kind: input, shape index: {}]   ;;  %s3929_s5 = inlined_call_operand.vmem [shape: f32[9,128], index: 5, kind: input, shape index: {}]   ;;  %s3930_s6 = inlined_call_operand.vmem [shape: f32[16,144], index: 6, kind: input, shape index: {}]   ;;  %s3931_s7 = inlined_call_operand.vmem [shape: f32[16,1], index: 7, kind: input, shape index: {}]   ;;  %s3932_s8 = inlined_call_operand.vmem [shape: f32[16,144], index: 8, kind: input, shape index: {}]   ;;  %s3933_s9 = inlined_call_operand.vmem [shape: f32[16,1], index: 9, kind: input, shape index: {}]   ;;  %s3934_s10 = inlined_call_operand.hbm [shape: f32[8,8], index: 10, kind: input, shape index: {}]   ;;  %s3935_s11 = inlined_call_operand.vmem [shape: f32[4], index: 11, kind: input, shape index: {}]   ;;  %s3936_s12 = inlined_call_operand.hbm [shape: f32[4], index: 12, kind: input, shape index: {}]   ;;  %s3937_s13 = inlined_call_operand.<no memory space> [shape: f32[1], index: 13, kind: input, shape index: {}]   ;;  %s3938_s14 = inlined_call_operand.vmem [shape: f32[8,8,8,128], index: 14, kind: output, shape index: {0}]   ;;  %s3939_s15 = inlined_call_operand.vmem [shape: f32[8,16], index: 15, kind: output, shape index: {1}]   ;;  %s3940_s16 = inlined_call_operand.vmem [shape: f32[16,128], index: 16, kind: output, shape index: {2}]  }
   0x1   :  { %4018 = sst [smem:[#allocation57_spill]] %s3924_s0 }
   0x2   :  { %4019 = sst [smem:[#allocation58_spill]] %s3925_s1 }
   0x3   :  { %4020 = sst [smem:[#allocation59_spill]] %s3926_s2 }
   0x4   :  { %4021 = sst [smem:[#allocation60_spill]] %s3927_s3 }
   0x5   :  { %4022 = sst [smem:[#allocation61_spill]] %s3928_s4 }
   0x6   :  { %4023 = sst [smem:[#allocation62_spill]] %s3932_s8 }
   0x7   :  { %4024 = sst [smem:[#allocation63_spill]] %s3937_s13 }
   0x8   :  { %4025 = sst [smem:[#allocation64_spill]] %s3938_s14 }
   0x9   :  { %4026 = sst [smem:[#allocation65_spill]] %s3939_s15 }
   0xa   :  { %4027 = sst [smem:[#allocation66_spill]] %s3940_s16 }
   0xb   :  { %23 = vsyncpa [#allocation6], 0 }
   0xc   :  { %24 = vsyncpa [#allocation7], 0  ;;  %s51_s23 = sshll.u32 %s3934_s10, 4  ;;  %s52_s23 = int_to_ptr.hbm [resolvable:$true] %s51_s23 }
   0xd   :  { %25 = vsyncpa [#allocation10], 0  ;;  %s60_s26 = sshll.u32 %s3935_s11, 4  ;;  %s2249_s27 = smov [#allocation5]   ;;  %s61_s26 = int_to_ptr.vmem [resolvable:$true] %s60_s26 }
   0xe   :  { %54 = dma.hbm_to_smem %s52_s23, 128, %s2249_s27, [#allocation6]  }
   0xf   :  { %s2250_s28 = smov [#allocation8]   ;;  %s69_s0 = sshll.u32 %s3936_s12, 4  ;;  %s70_s0 = int_to_ptr.hbm [resolvable:$true] %s69_s0 }
  0x10   :  { %63 = dma.vmem_to_smem %s61_s26, 16, %s2250_s28, [#allocation7]  }
  0x11   :  { %s2251_s17 = smov [#allocation9]  }
  0x12   :  { %72 = dma.hbm_to_smem %s70_s0, 16, %s2251_s17, [#allocation10]  }
  0x13   :  { %2243 = dma.done.wait [#allocation6], 128  }
  0x14   :  { %2244 = vsyncadd [#allocation6], 4294967168 }
  0x15   :  { %2245 = dma.done.wait [#allocation7], 16  }
  0x16   :  { %2246 = vsyncadd [#allocation7], 4294967280 }
  0x17   :  { %2247 = dma.done.wait [#allocation10], 16  }
  0x18   :  { %2248 = vsyncadd [#allocation10], 4294967280 }
  0x19   :  { %87 = sfence }
  0x1a   :  { %s4028_s18 = sld [smem:[#allocation57_spill]]  ;;  %v2118_v1 = vld [vmem:[%s3929_s5 + $0x7] ss:$0 sm:$0xff]  ;;  %s2252_s21 = smov 16   ;;  %v2120_v2 = vld [vmem:[%s3929_s5 + $0x5] ss:$0 sm:$0xff] }
  0x1b   :  { %s2253_s12 = smov 24   ;;  %s2254_s24 = smov 17   ;;  %v2119_v4 = vld [vmem:[%s3929_s5 + $0x6] ss:$0 sm:$0xff]  ;;  %v2123_v5 = vld [vmem:[%s3929_s5 + $0x3] ss:$0 sm:$0xff] }
  0x1c   :  { %1174 = vrot.lane.b32.xlu1 %v2118_v1, %s2253_s12  ;;  %1108 = vrot.lane.b32.xlu2 %v2120_v2, %s2254_s24  ;;  %s2255_s0 = smov 23   ;;  %v2121_v6 = vld [vmem:[%s3929_s5 + $0x2] ss:$0 sm:$0xff]  ;;  %v2122_v7 = vld [vmem:[%s3929_s5 + $0x1] ss:$0 sm:$0xff]  ;;  %s2256_s20 = smov 15  }
  0x1d   :  { %v2125_v8 = vld [vmem:[%s3929_s5 + $0x8] ss:$0 sm:$0xff]  ;;  %s2257_s25 = smov 9   ;;  %s2258_s26 = smov 8   ;;  %v2124_v9 = vld [vmem:[%s3929_s5] ss:$0 sm:$0xff] }
  0x1e   :  { %s2259_s29 = smov 25   ;;  %s2260_s30 = smov 7   ;;  %vm927_vm0 = vcmask 261120   ;;  %v2261_v10 = vmov 0.0   ;;  %vm941_vm1 = vcmask 1047680   ;;  %vm924_vm2 = vcmask 130048  }
  0x1f   :  { %929 = vst [vmem:[#allocation2 + $0x10] sm:$0xff] %v2261_v10  ;;  %s3952_s17 = smov 112   ;;  %s3954_s10 = smov 105   ;;  %vm1193_vm3 = vcmask 850944   ;;  %vm1160_vm4 = vcmask 859136   ;;  %vm1226_vm5 = vcmask 842752  }
  0x20   :  { %v932_v0 = vld [vmem:[%s4028_s18 + $0x8] sm:$0xff]  ;;  %v931_v3 = vld [vmem:[%s4028_s18] sm:$0xff]  ;;  %930 = vst.msk [vmem:[#allocation2 + $0x18] sm:$0xff] %vm927_vm0, %v2261_v10  ;;  %s2264_s11 = smov 104   ;;  %s3956_s19 = smov 111   ;;  %vm1127_vm6 = vcmask 908288  }
  0x21   :  { %937 = vrot.lane.b32.xlu0 %v932_v0, %s2252_s21  ;;  %926 = vst [vmem:[#allocation2] sm:$0xff] %v2261_v10  ;;  %s3942_s22 = smov 113   ;;  %s3950_s23 = smov 119   ;;  %vm1094_vm7 = vcmask 916480   ;;  %vm1071_vm8 = vcmask 924672   ;;  %vm1038_vm9 = vcmask 973824  }
  0x22   :  { %928 = vst.msk [vmem:[#allocation2 + $0x8] sm:$0xff] %vm927_vm0, %v2261_v10  ;;  %s3946_s27 = smov 120   ;;  %s3944_s28 = smov 103   ;;  %vm1005_vm10 = vcmask 982016   ;;  %vm972_vm11 = vcmask 990208  }
  0x23   :  { %s2757_s15 = sld [smem:[#allocation5 + $0x282]] }
  0x24   :  { %1141 = vrot.lane.b32.xlu1 %v2119_v4, %s2255_s0  ;;  %1052 = vrot.lane.b32.xlu2 %v2123_v5, %s2256_s20  ;;  %s2760_s13 = sld [smem:[#allocation5 + $0x302]] }
  0x25   :  { %s2764_s16 = sld [smem:[#allocation5 + $0x382]] }
  0x26   :  { %s2777_s8 = sld [smem:[#allocation5 + $0x183]] }
  0x27   :  { %s2781_s14 = sld [smem:[#allocation5 + $0x203]] }
  0x28   :  { %s2786_s4 = sld [smem:[#allocation5 + $0x283]] }
  0x29   :  { %935 = vrot.lane.b32.xlu0 %v931_v3, %s2252_s21  ;;  %4055 = sst [smem:[#allocation32_spill]] %s2757_s15 }
  0x2a   :  { %4056 = sst [smem:[#allocation33_spill]] %s2760_s13 }
  0x2b   :  { %4057 = sst [smem:[#allocation34_spill]] %s2764_s16 }
  0x2c   :  { %986 = vrot.lane.b32.xlu1 %v2122_v7, %s2258_s26  ;;  %1207 = vrot.lane.b32.xlu2 %v2125_v8, %s2259_s29  ;;  %s2791_s1 = sld [smem:[#allocation5 + $0x303]] }
  0x2d   :  { %4059 = sst [smem:[#allocation36_spill]] %s2781_s14 }
  0x2e   :  { %4060 = sst [smem:[#allocation37_spill]] %s2786_s4 }
  0x2f   :  { %s2794_s14 = sld [smem:[#allocation5 + $0x383]] }
  0x30   :  { %s2798_s4 = sld [smem:[#allocation5 + $0x4]] }
  0x31   :  { %1019 = vrot.lane.b32.xlu0 %v2121_v6, %s2257_s25 }
  0x32   :  { %4061 = sst [smem:[#allocation38_spill]] %s2791_s1 }
  0x33   :  { %s2802_s1 = sld [smem:[#allocation5 + $0x84]] }
  0x35   :  { %4062 = sst [smem:[#allocation39_spill]] %s2794_s14 }
  0x36   :  { %4063 = sst [smem:[#allocation40_spill]] %s2798_s4 }
  0x37   :  { %s2817_s4 = sld [smem:[#allocation5 + $0x104]] }
  0x38   :  { %s2827_s14 = sld [smem:[#allocation5 + $0x204]] }
  0x39   :  { %953 = vrot.lane.b32.xlu0 %v2124_v9, %s2260_s30  ;;  %4064 = sst [smem:[#allocation41_spill]] %s2802_s1 }
  0x3a   :  { %s2819_s1 = sld [smem:[#allocation5 + $0x184]] }
  0x3d   :  { %4065 = sst [smem:[#allocation42_spill]] %s2817_s4 }
  0x3e   :  { %4067 = sst [smem:[#allocation44_spill]] %s2827_s14 }
  0x3f   :  { %s2843_s14 = sld [smem:[#allocation5 + $0x384]] }
  0x40   :  { %4066 = sst [smem:[#allocation43_spill]] %s2819_s1 }
  0x41   :  { %s2832_s1 = sld [smem:[#allocation5 + $0x284]] }
  0x42   :  { %s3033_s4 = sld [smem:[#allocation5 + $0x87]] }
  0x45   :  { %4068 = sst [smem:[#allocation45_spill]] %s2843_s14 }
  0x76   :  { %v1109_v21 = vpop.permute.xlu2 %1108 }
  0x7e   :  { %v1053_v35 = vpop.permute.xlu2 %1052 }
  0x86   :  { %v1208_v60 = vpop.permute.xlu2 %1207 }
  0x8e   :  { %v1175_v12 = vpop.permute.xlu1 %1174 }
  0x93   :  { %v938_v11 = vpop.permute.xlu0 %937 }
  0x94   :  { %944 = vst.msk [vmem:[#allocation2 + $0x10] sm:$0xff] %vm941_vm1, %v938_v11 }
  0x95   :  { %945 = vst.msk [vmem:[#allocation2 + $0x18] sm:$0xff] %vm924_vm2, %v938_v11 }
  0x96   :  { %v1142_v16 = vpop.permute.xlu1 %1141 }
  0x9b   :  { %v2408_v13 = vld [vmem:[#allocation2 + $0x10] sm:$0xff]  ;;  %v936_v14 = vpop.permute.xlu0 %935 }
  0x9c   :  { %v2410_v15 = vld [vmem:[#allocation2 + $0x18] sm:$0xff]  ;;  %942 = vst.msk [vmem:[#allocation2] sm:$0xff] %vm941_vm1, %v936_v14  ;;  %v1146_v17 = vmul.f32 %v2408_v13, %v1142_v16  ;;  %v1179_v22 = vmul.f32 %v1175_v12, %v2408_v13  ;;  %v1057_v36 = vmul.f32 %v2408_v13, %v1053_v35  ;;  %v1113_v41 = vmul.f32 %v2408_v13, %v1109_v21 }
  0x9d   :  { %943 = vst.msk [vmem:[#allocation2 + $0x8] sm:$0xff] %vm924_vm2, %v936_v14  ;;  %v1147_v18 = vmul.f32 %v2410_v15, %v1142_v16  ;;  %v1935_v19 = vpack.i.bf16 %v2410_v15, %v2408_v13  ;;  %v1180_v23 = vmul.f32 %v1175_v12, %v2410_v15  ;;  %v1058_v37 = vmul.f32 %v2410_v15, %v1053_v35 }
  0x9e   :  { %v1114_v42 = vmul.f32 %v2410_v15, %v1109_v21  ;;  %v987_v50 = vpop.permute.xlu1 %986  ;;  %v1212_v62 = vmul.f32 %v1208_v60, %v2408_v13  ;;  %v1213_v63 = vmul.f32 %v1208_v60, %v2410_v15 }
  0x9f   :  { %v1955_v20 = vpack.i.bf16 %v1147_v18, %v1146_v17  ;;  %1936 = vrot.lane.b32.xlu1 %v1935_v19, %s3952_s17  ;;  %v1945_v26 = vpack.i.bf16 %v1180_v23, %v1179_v22  ;;  %v1975_v40 = vpack.i.bf16 %v1058_v37, %v1057_v36  ;;  %v991_v54 = vmul.f32 %v2408_v13, %v987_v50 }
  0xa0   :  { %v1965_v48 = vpack.i.bf16 %v1114_v42, %v1113_v41  ;;  %v992_v55 = vmul.f32 %v2410_v15, %v987_v50  ;;  %v2000_v5 = vpack.i.bf16 %v1213_v63, %v1212_v62 }
  0xa1   :  { %1956 = vrot.lane.b32.xlu0 %v1955_v20, %s3954_s10 }
  0xa2   :  { %v1995_v59 = vpack.i.bf16 %v992_v55, %v991_v54 }
  0xa3   :  { %v1134_v24 = vld [vmem:[#allocation2] sm:$0xff]  ;;  %v1020_v45 = vpop.permute.xlu0 %1019 }
  0xa4   :  { %v1135_v25 = vld [vmem:[#allocation2 + $0x8] sm:$0xff]  ;;  %v1111_v28 = vmul.f32 %v1134_v24, %v1109_v21  ;;  %v1144_v31 = vmul.f32 %v1142_v16, %v1134_v24  ;;  %v1177_v33 = vmul.f32 %v1175_v12, %v1134_v24  ;;  %v1055_v43 = vmul.f32 %v1134_v24, %v1053_v35 }
  0xa5   :  { %v1940_v27 = vpack.i.bf16 %v1135_v25, %v1134_v24  ;;  %v1112_v29 = vmul.f32 %v1135_v25, %v1109_v21  ;;  %v1145_v32 = vmul.f32 %v1142_v16, %v1135_v25  ;;  %v1178_v34 = vmul.f32 %v1175_v12, %v1135_v25 }
  0xa6   :  { %v1056_v44 = vmul.f32 %v1135_v25, %v1053_v35  ;;  %v1022_v46 = vmul.f32 %v1134_v24, %v1020_v45  ;;  %v1023_v47 = vmul.f32 %v1135_v25, %v1020_v45  ;;  %v1024_v52 = vmul.f32 %v2408_v13, %v1020_v45 }
  0xa7   :  { %1946 = vrot.lane.b32.xlu1 %v1945_v26, %s2264_s11  ;;  %1941 = vrot.lane.b32.xlu2 %v1940_v27, %s3952_s17  ;;  %v1970_v30 = vpack.i.bf16 %v1112_v29, %v1111_v28  ;;  %v1960_v38 = vpack.i.bf16 %v1145_v32, %v1144_v31  ;;  %v1950_v39 = vpack.i.bf16 %v1178_v34, %v1177_v33  ;;  %s2719_s17 = sld [smem:[#allocation5 + $0x201]] }
  0xa8   :  { %v1980_v49 = vpack.i.bf16 %v1056_v44, %v1055_v43  ;;  %v1990_v51 = vpack.i.bf16 %v1023_v47, %v1022_v46  ;;  %v1025_v53 = vmul.f32 %v2410_v15, %v1020_v45  ;;  %v989_v56 = vmul.f32 %v1134_v24, %v987_v50 }
  0xa9   :  { %1971 = vrot.lane.b32.xlu0 %v1970_v30, %s3956_s19  ;;  %v990_v57 = vmul.f32 %v1135_v25, %v987_v50  ;;  %v1210_v1 = vmul.f32 %v1208_v60, %v1134_v24  ;;  %v1211_v2 = vmul.f32 %v1208_v60, %v1135_v25 }
  0xaa   :  { %v1985_v58 = vpack.i.bf16 %v1025_v53, %v1024_v52  ;;  %v2271_v53 = vmov 0  }
  0xab   :  { %v2005_v61 = vpack.i.bf16 %v990_v57, %v989_v56  ;;  %v954_v0 = vpop.permute.xlu0 %953  ;;  %v2010_v6 = vpack.i.bf16 %v1211_v2, %v1210_v1  ;;  %2025 = vset.pattern.permute.xlu1 %v2271_v53  ;;  %2026 = vset.pattern.permute.xlu2 %v2271_v53 }
  0xac   :  { %v956_v3 = vmul.f32 %v1134_v24, %v954_v0  ;;  %v957_v4 = vmul.f32 %v1135_v25, %v954_v0  ;;  %v958_v8 = vmul.f32 %v2408_v13, %v954_v0  ;;  %v959_v9 = vmul.f32 %v2410_v15, %v954_v0  ;;  %2117 = vset.pattern.permute.xlu0 %v2271_v53 }
  0xad   :  { %4046 = sst [smem:[#allocation23_spill]] %s2719_s17 }
  0xae   :  { %v2020_v7 = vpack.i.bf16 %v957_v4, %v956_v3  ;;  %v2015_v10 = vpack.i.bf16 %v959_v9, %v958_v8 }
  0xaf   :  { %1961 = vrot.lane.b32.xlu1 %v1960_v38, %s3954_s10  ;;  %1951 = vrot.lane.b32.xlu2 %v1950_v39, %s2264_s11  ;;  %s1897_s10 = sld [smem:[#allocation8 + $0x2]] }
  0xb1   :  { %1976 = vrot.lane.b32.xlu0 %v1975_v40, %s3942_s22 }
  0xb7   :  { %1966 = vrot.lane.b32.xlu2 %v1965_v48, %s3956_s19  ;;  %1981 = vrot.lane.b32.xlu1 %v1980_v49, %s3942_s22  ;;  %s3948_s22 = smov 121   ;;  %v1256_v48 = vld [vmem:[%s3931_s7 + $0x8] sm:$0xff]  ;;  %v1255_v49 = vld [vmem:[%s3931_s7] sm:$0xff]  ;;  %s2652_s19 = sld [smem:[#allocation5]] }
  0xb8   :  { %s2655_s7 = sld [smem:[#allocation5 + $0x80]] }
  0xb9   :  { %1991 = vrot.lane.b32.xlu0 %v1990_v51, %s3950_s23 }
  0xbd   :  { %4037 = sst [smem:[#allocation14_spill]] %s2652_s19 }
  0xbf   :  { %1986 = vrot.lane.b32.xlu2 %v1985_v58, %s3950_s23  ;;  %1996 = vrot.lane.b32.xlu1 %v1995_v59, %s3946_s27  ;;  %s4035_s23 = smov 120  }
  0xc1   :  { %2006 = vrot.lane.b32.xlu0 %v2005_v61, %s3946_s27  ;;  %s4036_s27 = smov 103  }
  0xc7   :  { %2001 = vrot.lane.b32.xlu2 %v2000_v5, %s3944_s28  ;;  %2011 = vrot.lane.b32.xlu1 %v2010_v6, %s3944_s28  ;;  %s2723_s28 = sld [smem:[#allocation5 + $0x281]] }
  0xc9   :  { %2021 = vrot.lane.b32.xlu0 %v2020_v7, %s3948_s22 }
  0xcd   :  { %4047 = sst [smem:[#allocation24_spill]] %s2723_s28 }
  0xcf   :  { %2016 = vrot.lane.b32.xlu2 %v2015_v10, %s3948_s22  ;;  %1264 = vperm.xlu1 %2025, %v1256_v48   ;;  %s1898_s22 = sld [smem:[#allocation8 + $0x3]] }
  0xd7   :  { %1259 = vperm.xlu2 %2026, %v1255_v49  }
 0x101   :  { %v2450_v11 = vpop.permute.xlu2 %1941 }
 0x102   :  { %v1944_v44 = vunpack.i.h.bf16 %v2450_v11  ;;  %v1943_v45 = vunpack.i.l.bf16 %v2450_v11 }
 0x104   :  { %v1095_v56 = vsel %vm1094_vm7, %v1943_v45, %v1944_v44  ;;  %v2131_v44 = vld [vmem:[%s3929_s5 + $0x2] ss:$0 sm:$0xff]  ;;  %v2133_v45 = vld [vmem:[%s3929_s5 + $0x8] ss:$0 sm:$0xff] }
 0x109   :  { %v1952_v12 = vpop.permute.xlu2 %1951 }
 0x10a   :  { %v1954_v20 = vunpack.i.h.bf16 %v1952_v12  ;;  %v1953_v21 = vunpack.i.l.bf16 %v1952_v12 }
 0x10c   :  { %v1194_v26 = vsel %vm1193_vm3, %v1953_v21, %v1954_v20 }
 0x111   :  { %v1937_v14 = vpop.permute.xlu1 %1936  ;;  %v1967_v16 = vpop.permute.xlu2 %1966 }
 0x112   :  { %v1969_v28 = vunpack.i.h.bf16 %v1967_v16  ;;  %v1968_v29 = vunpack.i.l.bf16 %v1967_v16  ;;  %v1939_v41 = vunpack.i.h.bf16 %v1937_v14  ;;  %v1938_v42 = vunpack.i.l.bf16 %v1937_v14 }
 0x113   :  { %v1957_v17 = vpop.permute.xlu0 %1956 }
 0x114   :  { %v1959_v15 = vunpack.i.h.bf16 %v1957_v17  ;;  %v1958_v23 = vunpack.i.l.bf16 %v1957_v17  ;;  %v1129_v43 = vsel %vm1127_vm6, %v1968_v29, %v1969_v28  ;;  %v1096_v52 = vsel %vm1094_vm7, %v1938_v42, %v1939_v41  ;;  %v2128_v42 = vld [vmem:[%s3929_s5 + $0x6] ss:$0 sm:$0xff] }
 0x116   :  { %v1162_v27 = vsel %vm1160_vm4, %v1958_v23, %v1959_v15  ;;  %v1233_v15 = vld [vmem:[%s3930_s6] sm:$0xff] }
 0x119   :  { %v1947_v18 = vpop.permute.xlu1 %1946  ;;  %v2452_v19 = vpop.permute.xlu2 %1986 }
 0x11a   :  { %v1949_v13 = vunpack.i.h.bf16 %v1947_v18  ;;  %v1948_v22 = vunpack.i.l.bf16 %v1947_v18  ;;  %v1989_v58 = vunpack.i.h.bf16 %v2452_v19  ;;  %v1988_v59 = vunpack.i.l.bf16 %v2452_v19  ;;  %v1234_v19 = vld [vmem:[%s3930_s6 + $0x8] sm:$0xff] }
 0x11b   :  { %v1972_v25 = vpop.permute.xlu0 %1971 }
 0x11c   :  { %v1195_v24 = vsel %vm1193_vm3, %v1948_v22, %v1949_v13  ;;  %v1974_v36 = vunpack.i.h.bf16 %v1972_v25  ;;  %v1973_v37 = vunpack.i.l.bf16 %v1972_v25  ;;  %v1040_v3 = vsel %vm1038_vm9, %v1988_v59, %v1989_v58  ;;  %v1235_v25 = vld [vmem:[%s3930_s6 + $0x10] sm:$0xff] }
 0x11d   :  { %1273 = vmatpush.msra.mxu1 %v1195_v24  ;;  %v1236_v24 = vld [vmem:[%s3930_s6 + $0x18] sm:$0xff]  ;;  %s2727_s6 = sld [smem:[#allocation5 + $0x301]] }
 0x11e   :  { %v1128_v46 = vsel %vm1127_vm6, %v1973_v37, %v1974_v36 }
 0x11f   :  { %1274 = vmatpush.msra.mxu1 %v1194_v26  ;;  %v2127_v26 = vld [vmem:[%s3929_s5 + $0x7] ss:$0 sm:$0xff] }
 0x120   :  { %1554 = vrot.lane.b32.xlu2 %v2127_v26, %s2253_s12  ;;  %s2732_s12 = sld [smem:[#allocation5 + $0x381]] }
 0x121   :  { %v1962_v30 = vpop.permute.xlu1 %1961  ;;  %v2002_v31 = vpop.permute.xlu2 %2001  ;;  %1275 = vmatpush.msra.mxu1 %v1162_v27  ;;  %v2130_v27 = vld [vmem:[%s3929_s5 + $0x3] ss:$0 sm:$0xff] }
 0x122   :  { %v1964_v32 = vunpack.i.h.bf16 %v1962_v30  ;;  %v1963_v33 = vunpack.i.l.bf16 %v1962_v30  ;;  %v2004_v34 = vunpack.i.h.bf16 %v2002_v31  ;;  %v2003_v35 = vunpack.i.l.bf16 %v2002_v31  ;;  %v2132_v30 = vld [vmem:[%s3929_s5] ss:$0 sm:$0xff] }
 0x123   :  { %v1977_v38 = vpop.permute.xlu0 %1976  ;;  %4048 = sst [smem:[#allocation25_spill]] %s2727_s6 }
 0x124   :  { %v1161_v39 = vsel %vm1160_vm4, %v1963_v33, %v1964_v32  ;;  %v1228_v40 = vsel %vm1226_vm5, %v2003_v35, %v2004_v34  ;;  %v1979_v50 = vunpack.i.h.bf16 %v1977_v38  ;;  %v1978_v51 = vunpack.i.l.bf16 %v1977_v38 }
 0x125   :  { %1276 = vmatpush.msra.mxu1 %v1161_v39  ;;  %1310 = vmatpush.msra.mxu2 %v1228_v40  ;;  %v2126_v40 = vld [vmem:[%s3929_s5 + $0x5] ss:$0 sm:$0xff] }
 0x126   :  { %v1073_v60 = vsel %vm1071_vm8, %v1978_v51, %v1979_v50  ;;  %4049 = sst [smem:[#allocation26_spill]] %s2732_s12 }
 0x127   :  { %1277 = vmatpush.msra.mxu1 %v1129_v43  ;;  %v2129_v43 = vld [vmem:[%s3929_s5 + $0x1] ss:$0 sm:$0xff]  ;;  %s4029_s5 = smov 111  }
 0x128   :  { %1436 = vrot.lane.b32.xlu2 %v2130_v27, %s2256_s20  ;;  %s607_s20 = sld [smem:[#allocation8]] }
 0x129   :  { %1278 = vmatpush.msra.mxu1 %v1128_v46  ;;  %v1982_v47 = vpop.permute.xlu1 %1981  ;;  %v2017_v4 = vpop.permute.xlu2 %2016 }
 0x12a   :  { %v1984_v54 = vunpack.i.h.bf16 %v1982_v47  ;;  %v1983_v55 = vunpack.i.l.bf16 %v1982_v47  ;;  %v2019_v9 = vunpack.i.h.bf16 %v2017_v4  ;;  %v2018_v10 = vunpack.i.l.bf16 %v2017_v4 }
 0x12b   :  { %1279 = vmatpush.msra.mxu1 %v1096_v52  ;;  %v1992_v57 = vpop.permute.xlu0 %1991 }
 0x12c   :  { %v1994_v61 = vunpack.i.h.bf16 %v1992_v57  ;;  %v1993_v62 = vunpack.i.l.bf16 %v1992_v57  ;;  %v1072_v63 = vsel %vm1071_vm8, %v1983_v55, %v1984_v54  ;;  %v974_v18 = vsel %vm972_vm11, %v2018_v10, %v2019_v9 }
 0x12d   :  { %1280 = vmatpush.msra.mxu1 %v1095_v56 }
 0x12e   :  { %v1039_v5 = vsel %vm1038_vm9, %v1993_v62, %v1994_v61 }
 0x12f   :  { %1281 = vmatpush.msra.mxu1 %v1073_v60 }
 0x130   :  { %1340 = vrot.lane.b32.xlu2 %v2132_v30, %s2260_s30  ;;  %s1896_s30 = sld [smem:[#allocation8 + $0x1]] }
 0x131   :  { %v1997_v0 = vpop.permute.xlu1 %1996  ;;  %1282 = vmatpush.msra.mxu1 %v1072_v63  ;;  %v1260_v28 = vpop.permute.xlu2 %1259 }
 0x132   :  { %v1999_v1 = vunpack.i.h.bf16 %v1997_v0  ;;  %v1998_v2 = vunpack.i.l.bf16 %v1997_v0 }
 0x133   :  { %1283 = vmatpush.msra.mxu1 %v1040_v3  ;;  %v2007_v6 = vpop.permute.xlu0 %2006 }
 0x134   :  { %v2009_v7 = vunpack.i.h.bf16 %v2007_v6  ;;  %v2008_v8 = vunpack.i.l.bf16 %v2007_v6  ;;  %v1007_v11 = vsel %vm1005_vm10, %v1998_v2, %v1999_v1 }
 0x135   :  { %1284 = vmatpush.msra.mxu1 %v1039_v5 }
 0x136   :  { %v1006_v12 = vsel %vm1005_vm10, %v2008_v8, %v2009_v7 }
 0x137   :  { %1285 = vmatpush.msra.mxu1 %v1007_v11 }
 0x139   :  { %v2012_v14 = vpop.permute.xlu1 %2011  ;;  %1286 = vmatpush.msra.mxu1 %v1006_v12 }
 0x13a   :  { %v2014_v16 = vunpack.i.h.bf16 %v2012_v14  ;;  %v2013_v17 = vunpack.i.l.bf16 %v2012_v14 }
 0x13b   :  { %1287 = vmatpush.msra.mxu1 %v974_v18  ;;  %v2022_v21 = vpop.permute.xlu0 %2021 }
 0x13c   :  { %v1227_v20 = vsel %vm1226_vm5, %v2013_v17, %v2014_v16  ;;  %v2024_v13 = vunpack.i.h.bf16 %v2022_v21  ;;  %v2023_v22 = vunpack.i.l.bf16 %v2022_v21 }
 0x13d   :  { %1311 = vmatpush.msra.mxu2 %v1227_v20 }
 0x13e   :  { %1908 = vmatmul.msk.f32.vlgmr.msra.gmra.mxu2 %vm924_vm2, %v1234_v19  ;;  %v973_v23 = vsel %vm972_vm11, %v2023_v22, %v2024_v13 }
 0x13f   :  { %1288 = vmatpush.msra.mxu1 %v973_v23 }
 0x140   :  { %1289 = vmatmul.f32.vlgmr.msra.gmra.mxu1 %v1233_v15 }
 0x141   :  { %v1265_v35 = vpop.permute.xlu1 %1264 }
 0x146   :  { %1909 = vmatmul.msk.f32.gmra.mxu2 %vm924_vm2, %v1236_v24 }
 0x148   :  { %1292 = vmatmul.f32.gmra.mxu1 %v1235_v25 }
 0x17a   :  { %v1555_v47 = vpop.permute.xlu2 %1554 }
 0x182   :  { %v1437_v16 = vpop.permute.xlu2 %1436 }
 0x18a   :  { %v1341_v23 = vpop.permute.xlu2 %1340 }
 0x1bd   :  { %v1290_v29 = vpop.f32.mrf.mxu1 }
 0x1be   :  { %v1291_v31 = vadd.f32 %v1290_v29, %v1260_v28 }
 0x1c1   :  { %v1313_v32 = vpop.f32.mrf.mxu2 }
 0x1c2   :  { %v1314_v33 = vadd.f32 %v1313_v32, %v1291_v31 }
 0x1c4   :  { %v1319_v34 = vmax.f32 %v1314_v33, 0.0 }
 0x1c5   :  { %v1293_v36 = vpop.f32.mrf.mxu1 }
 0x1c6   :  { %1323 = vrot.lane.b32.xlu1 %v1319_v34, %s2252_s21  ;;  %v1294_v37 = vadd.f32 %v1293_v36, %v1265_v35 }
 0x1c9   :  { %v1316_v38 = vpop.f32.mrf.mxu2 }
 0x1ca   :  { %v1317_v39 = vadd.f32 %v1316_v38, %v1294_v37 }
 0x1cc   :  { %v1320_v41 = vmax.f32 %v1317_v39, 0.0 }
 0x1ce   :  { %1325 = vrot.lane.b32.xlu0 %v1320_v41, %s2252_s21  ;;  %1490 = vrot.lane.b32.xlu1 %v2126_v40, %s2254_s24  ;;  %s2586_s21 = sld [smem:[#allocation9]] }
 0x1cf   :  { %s2590_s24 = sld [smem:[#allocation9 + $0x1]] }
 0x1d6   :  { %1522 = vrot.lane.b32.xlu0 %v2128_v42, %s2255_s0  ;;  %1372 = vrot.lane.b32.xlu1 %v2129_v43, %s2258_s26  ;;  %s4030_s0 = smov 105   ;;  %s4032_s26 = smov 119  }
 0x1de   :  { %1404 = vrot.lane.b32.xlu0 %v2131_v44, %s2257_s25  ;;  %s4031_s25 = smov 112  }
 0x1e6   :  { %1586 = vrot.lane.b32.xlu0 %v2133_v45, %s2259_s29  ;;  %s4033_s29 = smov 113  }
 0x238   :  { %v1324_v46 = vpop.permute.xlu1 %1323 }
 0x239   :  { %1329 = vst.msk [vmem:[#allocation2] sm:$0xff] %vm941_vm1, %v1324_v46 }
 0x23a   :  { %1330 = vst.msk [vmem:[#allocation2 + $0x8] sm:$0xff] %vm924_vm2, %v1324_v46  ;;  %v1634_v46 = vld [vmem:[%s3933_s9 + $0x8] sm:$0xff] }
 0x240   :  { %v2532_v48 = vld [vmem:[#allocation2] sm:$0xff]  ;;  %v1326_v49 = vpop.permute.xlu0 %1325  ;;  %v1491_v50 = vpop.permute.xlu1 %1490 }
 0x241   :  { %v2534_v51 = vld [vmem:[#allocation2 + $0x8] sm:$0xff]  ;;  %1331 = vst.msk [vmem:[#allocation2 + $0x10] sm:$0xff] %vm941_vm1, %v1326_v49  ;;  %v1493_v52 = vmul.f32 %v1491_v50, %v2532_v48  ;;  %v1557_v53 = vmul.f32 %v1555_v47, %v2532_v48  ;;  %v1439_v24 = vmul.f32 %v1437_v16, %v2532_v48  ;;  %v1343_v43 = vmul.f32 %v1341_v23, %v2532_v48 }
 0x242   :  { %1332 = vst.msk [vmem:[#allocation2 + $0x18] sm:$0xff] %vm924_vm2, %v1326_v49  ;;  %v1494_v54 = vmul.f32 %v1491_v50, %v2534_v51  ;;  %v1558_v55 = vmul.f32 %v1555_v47, %v2534_v51  ;;  %v2052_v2 = vpack.i.bf16 %v2534_v51, %v2532_v48  ;;  %v1440_v25 = vmul.f32 %v1437_v16, %v2534_v51 }
 0x243   :  { %v1344_v44 = vmul.f32 %v1341_v23, %v2534_v51 }
 0x244   :  { %v2027_v56 = vpack.i.bf16 %v1558_v55, %v1557_v53  ;;  %v2037_v57 = vpack.i.bf16 %v1494_v54, %v1493_v52  ;;  %v2057_v30 = vpack.i.bf16 %v1440_v25, %v1439_v24  ;;  %v2595_v52 = vld [vmem:[%s3926_s2] sm:$0xff]  ;;  %v2600_v53 = vld [vmem:[%s3926_s2 + $0x8] sm:$0xff]  ;;  %v2602_v54 = vstv %s607_s20  ;;  %s2737_s20 = sld [smem:[#allocation5 + $0x2]] }
 0x245   :  { %v2097_v45 = vpack.i.bf16 %v1344_v44, %v1343_v43  ;;  %v2604_v55 = vstv %s1896_s30  ;;  %s2742_s30 = sld [smem:[#allocation5 + $0x82]] }
 0x246   :  { %2028 = vrot.lane.b32.xlu2 %v2027_v56, %s2264_s11  ;;  %2038 = vrot.lane.b32.xlu0 %v2037_v57, %s4029_s5 }
 0x248   :  { %v1485_v58 = vld [vmem:[#allocation2 + $0x10] sm:$0xff]  ;;  %v1523_v59 = vpop.permute.xlu0 %1522  ;;  %v1373_v15 = vpop.permute.xlu1 %1372 }
 0x249   :  { %v1486_v60 = vld [vmem:[#allocation2 + $0x18] sm:$0xff]  ;;  %v1525_v61 = vmul.f32 %v1523_v59, %v2532_v48  ;;  %v1526_v62 = vmul.f32 %v1523_v59, %v2534_v51  ;;  %v1527_v63 = vmul.f32 %v1523_v59, %v1485_v58  ;;  %v1559_v4 = vmul.f32 %v1555_v47, %v1485_v58 }
 0x24a   :  { %v1528_v0 = vmul.f32 %v1523_v59, %v1486_v60  ;;  %v1560_v5 = vmul.f32 %v1555_v47, %v1486_v60  ;;  %v1495_v6 = vmul.f32 %v1491_v50, %v1485_v58  ;;  %v1496_v7 = vmul.f32 %v1491_v50, %v1486_v60  ;;  %v1633_v47 = vld [vmem:[%s3933_s9] sm:$0xff]  ;;  %4050 = sst [smem:[#allocation27_spill]] %s2737_s20 }
 0x24b   :  { %v2032_v1 = vpack.i.bf16 %v1526_v62, %v1525_v61  ;;  %v1441_v19 = vmul.f32 %v1485_v58, %v1437_v16  ;;  %v1442_v20 = vmul.f32 %v1486_v60, %v1437_v16  ;;  %v2047_v21 = vpack.i.bf16 %v1486_v60, %v1485_v58  ;;  %4051 = sst [smem:[#allocation28_spill]] %s2742_s30 }
 0x24c   :  { %v2062_v3 = vpack.i.bf16 %v1528_v0, %v1527_v63  ;;  %v2042_v11 = vpack.i.bf16 %v1560_v5, %v1559_v4  ;;  %v2072_v14 = vpack.i.bf16 %v1496_v7, %v1495_v6  ;;  %v1375_v26 = vmul.f32 %v1373_v15, %v2532_v48  ;;  %v2636_v4 = vld [vmem:[%s3927_s3 + $0x8] sm:$0xff]  ;;  %s2753_s9 = sld [smem:[#allocation5 + $0x202]] }
 0x24d   :  { %2033 = vrot.lane.b32.xlu1 %v2032_v1, %s4030_s0  ;;  %v2077_v22 = vpack.i.bf16 %v1442_v20, %v1441_v19  ;;  %v1376_v27 = vmul.f32 %v1373_v15, %v2534_v51  ;;  %v1345_v28 = vmul.f32 %v1485_v58, %v1341_v23  ;;  %v1346_v29 = vmul.f32 %v1486_v60, %v1341_v23  ;;  %v2660_v20 = vld [vmem:[%s3927_s3 + $0x18] sm:$0xff] }
 0x24e   :  { %2053 = vrot.lane.b32.xlu2 %v2052_v2, %s4031_s25  ;;  %2063 = vrot.lane.b32.xlu0 %v2062_v3, %s4030_s0  ;;  %v1377_v34 = vmul.f32 %v1485_v58, %v1373_v15  ;;  %v1378_v35 = vmul.f32 %v1486_v60, %v1373_v15  ;;  %v2617_v61 = vstv %s1897_s10  ;;  %v2626_v2 = vld [vmem:[%s3926_s2 + $0x18] sm:$0xff]  ;;  %s2676_s0 = sld [smem:[#allocation5 + $0x180]] }
 0x24f   :  { %v2102_v31 = vpack.i.bf16 %v1346_v29, %v1345_v28  ;;  %v2087_v32 = vpack.i.bf16 %v1376_v27, %v1375_v26  ;;  %v2631_v3 = vld [vmem:[%s3927_s3] sm:$0xff]  ;;  %v2638_v5 = vstv %s1898_s22  ;;  %s2746_s10 = sld [smem:[#allocation5 + $0x102]] }
 0x250   :  { %v1405_v8 = vpop.permute.xlu0 %1404  ;;  %v2092_v40 = vpack.i.bf16 %v1378_v35, %v1377_v34  ;;  %s2750_s22 = sld [smem:[#allocation5 + $0x182]] }
 0x251   :  { %v1407_v9 = vmul.f32 %v1405_v8, %v2532_v48  ;;  %v1408_v10 = vmul.f32 %v1405_v8, %v2534_v51  ;;  %v1409_v17 = vmul.f32 %v1485_v58, %v1405_v8  ;;  %v1410_v18 = vmul.f32 %v1486_v60, %v1405_v8 }
 0x252   :  { %4054 = sst [smem:[#allocation31_spill]] %s2753_s9 }
 0x253   :  { %v2067_v12 = vpack.i.bf16 %v1408_v10, %v1407_v9  ;;  %v2082_v13 = vpack.i.bf16 %v1410_v18, %v1409_v17 }
 0x254   :  { %4038 = sst [smem:[#allocation15_spill]] %s2676_s0 }
 0x255   :  { %2043 = vrot.lane.b32.xlu1 %v2042_v11, %s2264_s11  ;;  %s4034_s11 = smov 121   ;;  %v2647_v11 = vld [vmem:[%s3927_s3 + $0x10] sm:$0xff]  ;;  %4052 = sst [smem:[#allocation29_spill]] %s2746_s10 }
 0x256   :  { %2073 = vrot.lane.b32.xlu2 %v2072_v14, %s4029_s5  ;;  %2068 = vrot.lane.b32.xlu0 %v2067_v12, %s4032_s26  ;;  %s2671_s5 = sld [smem:[#allocation5 + $0x100]] }
 0x257   :  { %4053 = sst [smem:[#allocation30_spill]] %s2750_s22 }
 0x258   :  { %v1587_v33 = vpop.permute.xlu0 %1586  ;;  %s2769_s3 = sld [smem:[#allocation5 + $0x3]] }
 0x259   :  { %v1589_v36 = vmul.f32 %v1587_v33, %v2532_v48  ;;  %v1590_v37 = vmul.f32 %v1587_v33, %v2534_v51  ;;  %v1591_v38 = vmul.f32 %v1587_v33, %v1485_v58  ;;  %v1592_v39 = vmul.f32 %v1587_v33, %v1486_v60  ;;  %v2583_v48 = vld [vmem:[%s4028_s18] sm:$0xff]  ;;  %v2615_v60 = vld [vmem:[%s3926_s2 + $0x10] sm:$0xff]  ;;  %s2773_s2 = sld [smem:[#allocation5 + $0x83]] }
 0x25a   :  { %v629_v49 = vperm.slane %v2583_v48, 0  ;;  %v668_v6 = vperm.slane %v2583_v48, 1  ;;  %s2775_s18 = sld [smem:[#allocation5 + $0x103]] }
 0x25b   :  { %v2112_v41 = vpack.i.bf16 %v1590_v37, %v1589_v36  ;;  %v2107_v42 = vpack.i.bf16 %v1592_v39, %v1591_v38 }
 0x25c   :  { %v630_v50 = vmul.f32 %v629_v49, %v2583_v48  ;;  %v631_v51 = vadd.f32 %v629_v49, %v2583_v48  ;;  %v669_v14 = vmul.f32 %v668_v6, %v2583_v48  ;;  %v670_v16 = vadd.f32 %v668_v6, %v2583_v48 }
 0x25d   :  { %2048 = vrot.lane.b32.xlu1 %v2047_v21, %s4031_s25  ;;  %v2663_v21 = vstv %s2586_s21  ;;  %s2682_s21 = sld [smem:[#allocation5 + $0x200]] }
 0x25e   :  { %2083 = vrot.lane.b32.xlu2 %v2082_v13, %s4032_s26  ;;  %2078 = vrot.lane.b32.xlu0 %v2077_v22, %s4033_s29  ;;  %v633_v56 = vmul.f32 %v2602_v54, %v630_v50  ;;  %v634_v57 = vmul.f32 %v631_v51, %v2595_v52  ;;  %v642_v58 = vmul.f32 %v2604_v55, %v630_v50  ;;  %s2610_s26 = sld [smem:[#allocation9 + $0x2]]  ;;  %v2666_v13 = vstv %s2590_s24 }
 0x25f   :  { %v643_v59 = vmul.f32 %v2600_v53, %v631_v51  ;;  %v651_v0 = vmul.f32 %v2617_v61, %v630_v50  ;;  %v652_v1 = vmul.f32 %v2615_v60, %v631_v51  ;;  %v660_v10 = vmul.f32 %v2638_v5, %v630_v50  ;;  %s2686_s24 = sld [smem:[#allocation5 + $0x280]] }
 0x260   :  { %v635_v62 = vadd.f32 %v634_v57, %v633_v56  ;;  %v661_v12 = vmul.f32 %v2626_v2, %v631_v51  ;;  %v671_v15 = vmul.f32 %v669_v14, %v2602_v54  ;;  %v672_v27 = vmul.f32 %v670_v16, %v2595_v52  ;;  %s2692_s25 = sld [smem:[#allocation5 + $0x300]] }
 0x261   :  { %v644_v63 = vadd.f32 %v643_v59, %v642_v58  ;;  %v653_v9 = vadd.f32 %v652_v1, %v651_v0  ;;  %v678_v33 = vmul.f32 %v669_v14, %v2604_v55  ;;  %v679_v36 = vmul.f32 %v2600_v53, %v670_v16  ;;  %4058 = sst [smem:[#allocation35_spill]] %s2775_s18 }
 0x262   :  { %v636_v7 = vadd.f32 %v635_v62, %v2631_v3  ;;  %v662_v22 = vadd.f32 %v661_v12, %v660_v10  ;;  %v685_v39 = vmul.f32 %v669_v14, %v2617_v61  ;;  %v692_v43 = vmul.f32 %v669_v14, %v2638_v5 }
 0x263   :  { %v645_v8 = vadd.f32 %v2636_v4, %v644_v63  ;;  %v654_v19 = vadd.f32 %v2647_v11, %v653_v9  ;;  %v693_v44 = vmul.f32 %v2626_v2, %v670_v16 }
 0x264   :  { %v637_v17 = vmax.f32 %v636_v7, 0.0  ;;  %v2679_v28 = vstv %s2610_s26  ;;  %v663_v29 = vadd.f32 %v2660_v20, %v662_v22  ;;  %s2697_s26 = sld [smem:[#allocation5 + $0x380]] }
 0x265   :  { %2058 = vrot.lane.b32.xlu1 %v2057_v30, %s4033_s29  ;;  %v646_v18 = vmax.f32 %v645_v8, 0.0  ;;  %v655_v26 = vmax.f32 %v654_v19, 0.0  ;;  %4039 = sst [smem:[#allocation16_spill]] %s2686_s24  ;;  %v694_v51 = vadd.f32 %v693_v44, %v692_v43 }
 0x266   :  { %2103 = vrot.lane.b32.xlu0 %v2102_v31, %s4034_s11  ;;  %2088 = vrot.lane.b32.xlu2 %v2087_v32, %s4035_s23  ;;  %v639_v24 = vmul.f32 %v2663_v21, %v637_v17  ;;  %v673_v32 = vadd.f32 %v672_v27, %v671_v15  ;;  %v664_v34 = vmax.f32 %v663_v29, 0.0  ;;  %4040 = sst [smem:[#allocation17_spill]] %s2692_s25  ;;  %v730_v29 = vperm.slane %v2583_v48, 3 }
 0x267   :  { %v648_v25 = vmul.f32 %v2666_v13, %v646_v18  ;;  %v657_v31 = vmul.f32 %v2679_v28, %v655_v26  ;;  %s2702_s29 = sld [smem:[#allocation5 + $0x1]]  ;;  %v695_v0 = vadd.f32 %v2660_v20, %v694_v51 }
 0x268   :  { %v674_v38 = vadd.f32 %v673_v32, %v2631_v3  ;;  %4102 = sst [smem:[#allocation16_spill]] %s3033_s4 }
 0x269   :  { %v649_v30 = vadd.f32 %v648_v25, %v639_v24  ;;  %v696_v10 = vmax.f32 %v695_v0, 0.0 }
 0x26a   :  { %4041 = sst [smem:[#allocation18_spill]] %s2697_s26 }
 0x26b   :  { %v658_v37 = vadd.f32 %v657_v31, %v649_v30 }
 0x26d   :  { %2093 = vrot.lane.b32.xlu1 %v2092_v40, %s4035_s23  ;;  %s2621_s23 = sld [smem:[#allocation9 + $0x3]]  ;;  %v686_v40 = vmul.f32 %v2615_v60, %v670_v16 }
 0x26e   :  { %2113 = vrot.lane.b32.xlu0 %v2112_v41, %s4036_s27  ;;  %2108 = vrot.lane.b32.xlu2 %v2107_v42, %s4036_s27  ;;  %v680_v42 = vadd.f32 %v679_v36, %v678_v33  ;;  %4042 = sst [smem:[#allocation19_spill]] %s2702_s29 }
 0x26f   :  { %s2716_s27 = sld [smem:[#allocation5 + $0x181]] }
 0x270   :  { %v681_v50 = vadd.f32 %v2636_v4, %v680_v42  ;;  %v732_v42 = vadd.f32 %v730_v29, %v2583_v48 }
 0x272   :  { %v682_v63 = vmax.f32 %v681_v50, 0.0  ;;  %v741_v51 = vmul.f32 %v2600_v53, %v732_v42 }
 0x273   :  { %v2689_v35 = vstv %s2621_s23  ;;  %s2710_s23 = sld [smem:[#allocation5 + $0x101]] }
 0x274   :  { %v666_v41 = vmul.f32 %v2689_v35, %v664_v34  ;;  %v683_v9 = vmul.f32 %v682_v63, %v2666_v13  ;;  %v697_v22 = vmul.f32 %v696_v10, %v2689_v35 }
 0x275   :  { %2098 = vrot.lane.b32.xlu1 %v2097_v45, %s4034_s11  ;;  %v675_v45 = vmax.f32 %v674_v38, 0.0  ;;  %s2705_s11 = sld [smem:[#allocation5 + $0x81]] }
 0x276   :  { %1642 = vperm.xlu2 %2026, %v1634_v46   ;;  %v687_v46 = vadd.f32 %v686_v40, %v685_v39  ;;  %v667_v49 = vadd.f32 %v666_v41, %v658_v37  ;;  %4045 = sst [smem:[#allocation22_spill]] %s2716_s27  ;;  %v731_v37 = vmul.f32 %v730_v29, %v2583_v48 }
 0x277   :  { %v676_v57 = vmul.f32 %v675_v45, %v2663_v21 }
 0x278   :  { %v688_v58 = vadd.f32 %v2647_v11, %v687_v46  ;;  %v733_v43 = vmul.f32 %v731_v37, %v2602_v54  ;;  %v734_v46 = vmul.f32 %v732_v42, %v2595_v52  ;;  %v740_v50 = vmul.f32 %v731_v37, %v2604_v55 }
 0x279   :  { %4044 = sst [smem:[#allocation21_spill]] %s2710_s23  ;;  %v677_v1 = vadd.f32 %v676_v57, %v667_v49 }
 0x27a   :  { %v689_v6 = vmax.f32 %v688_v58, 0.0  ;;  %v735_v57 = vadd.f32 %v734_v46, %v733_v43  ;;  %v747_v58 = vmul.f32 %v731_v37, %v2617_v61  ;;  %v113_v43 = vstv %s2676_s0  ;;  %s2848_s0 = sld [smem:[#allocation5 + $0x5]] }
 0x27b   :  { %4043 = sst [smem:[#allocation20_spill]] %s2705_s11  ;;  %v684_v19 = vadd.f32 %v683_v9, %v677_v1  ;;  %v129_v46 = vstv %s2686_s24 }
 0x27c   :  { %v690_v14 = vmul.f32 %v689_v6, %v2679_v28  ;;  %s4088_s24 = sld [smem:[#allocation44_spill]] }
 0x27d   :  { %1637 = vperm.xlu1 %2025, %v1633_v47   ;;  %v699_v47 = vperm.slane %v2583_v48, 2 }
 0x27e   :  { %v691_v30 = vadd.f32 %v690_v14, %v684_v19 }
 0x27f   :  { %v700_v59 = vmul.f32 %v699_v47, %v2583_v48  ;;  %v701_v62 = vadd.f32 %v699_v47, %v2583_v48 }
 0x280   :  { %v698_v38 = vadd.f32 %v697_v22, %v691_v30  ;;  %v754_v22 = vmul.f32 %v731_v37, %v2638_v5  ;;  %4069 = sst [smem:[#allocation46_spill]] %s2848_s0 }
 0x281   :  { %v702_v7 = vmul.f32 %v700_v59, %v2602_v54  ;;  %v703_v8 = vmul.f32 %v701_v62, %v2595_v52  ;;  %v709_v12 = vmul.f32 %v700_v59, %v2604_v55  ;;  %v710_v17 = vmul.f32 %v2600_v53, %v701_v62  ;;  %s4097_s0 = sld [smem:[#allocation61_spill]] }
 0x282   :  { %v716_v18 = vmul.f32 %v700_v59, %v2617_v61  ;;  %v717_v15 = vmul.f32 %v2615_v60, %v701_v62  ;;  %v723_v24 = vmul.f32 %v700_v59, %v2638_v5  ;;  %v724_v27 = vmul.f32 %v2626_v2, %v701_v62 }
 0x283   :  { %v704_v16 = vadd.f32 %v703_v8, %v702_v7  ;;  %v711_v26 = vadd.f32 %v710_v17, %v709_v12  ;;  %v748_v59 = vmul.f32 %v2615_v60, %v732_v42  ;;  %v736_v53 = vadd.f32 %v735_v57, %v2631_v3 }
 0x284   :  { %v718_v31 = vadd.f32 %v717_v15, %v716_v18  ;;  %v725_v36 = vadd.f32 %v724_v27, %v723_v24  ;;  %v742_v7 = vadd.f32 %v741_v51, %v740_v50 }
 0x285   :  { %v705_v25 = vadd.f32 %v704_v16, %v2631_v3  ;;  %v712_v34 = vadd.f32 %v2636_v4, %v711_v26  ;;  %v749_v8 = vadd.f32 %v748_v59, %v747_v58  ;;  %v737_v19 = vmax.f32 %v736_v53, 0.0 }
 0x286   :  { %v719_v39 = vadd.f32 %v2647_v11, %v718_v31  ;;  %v726_v45 = vadd.f32 %v2660_v20, %v725_v36  ;;  %v761_v36 = vperm.slane %v2583_v48, 4  ;;  %v153_v59 = vstv %s2702_s29  ;;  %s2892_s29 = sld [smem:[#allocation5 + $0x385]] }
 0x287   :  { %v706_v33 = vmax.f32 %v705_v25, 0.0  ;;  %v713_v41 = vmax.f32 %v712_v34, 0.0  ;;  %v755_v25 = vmul.f32 %v2626_v2, %v732_v42  ;;  %v105_v42 = vstv %s2671_s5  ;;  %s3216_s5 = sld [smem:[#allocation5 + $0x387]] }
 0x288   :  { %v720_v44 = vmax.f32 %v719_v39, 0.0  ;;  %v727_v0 = vmax.f32 %v726_v45, 0.0  ;;  %v121_v45 = vstv %s2682_s21 }
 0x289   :  { %v707_v40 = vmul.f32 %v706_v33, %v2663_v21  ;;  %v714_v49 = vmul.f32 %v713_v41, %v2666_v13  ;;  %v738_v33 = vmul.f32 %v737_v19, %v2663_v21  ;;  %v97_v41 = vstv %s2655_s7  ;;  %s3015_s7 = sld [smem:[#allocation5 + $0x7]] }
 0x28a   :  { %v721_v6 = vmul.f32 %v720_v44, %v2679_v28  ;;  %v728_v17 = vmul.f32 %v727_v0, %v2689_v35  ;;  %v186_v19 = vstv %s2719_s17  ;;  %s2886_s17 = sld [smem:[#allocation5 + $0x305]] }
 0x28b   :  { %v708_v47 = vadd.f32 %v707_v40, %v698_v38  ;;  %v90_v38 = vstv %s2652_s19  ;;  %v756_v40 = vadd.f32 %v755_v25, %v754_v22  ;;  %s2841_s19 = sld [smem:[#allocation5 + $0x304]]  ;;  %v194_v22 = vstv %s2723_s28 }
 0x28c   :  { %s2881_s28 = sld [smem:[#allocation5 + $0x285]] }
 0x28d   :  { %v715_v1 = vadd.f32 %v714_v49, %v708_v47  ;;  %v137_v47 = vstv %s2692_s25  ;;  %v145_v49 = vstv %s2697_s26  ;;  %v757_v0 = vadd.f32 %v2660_v20, %v756_v40  ;;  %s2856_s26 = sld [smem:[#allocation5 + $0x85]] }
 0x28e   :  { %4076 = sst [smem:[#allocation53_spill]] %s2892_s29  ;;  %v259_v40 = vstv %s2757_s15 }
 0x28f   :  { %v722_v18 = vadd.f32 %v721_v6, %v715_v1  ;;  %s4082_s15 = sld [smem:[#allocation39_spill]] }
 0x290   :  { %4075 = sst [smem:[#allocation52_spill]] %s2886_s17 }
 0x291   :  { %s2920_s25 = sld [smem:[#allocation5 + $0x186]] }
 0x292   :  { %4074 = sst [smem:[#allocation51_spill]] %s2881_s28 }
 0x293   :  { %4070 = sst [smem:[#allocation47_spill]] %s2856_s26 }
 0x294   :  { %s2988_s26 = sld [smem:[#allocation5 + $0x386]] }
 0x295   :  { %4100 = sst [smem:[#allocation15_spill]] %s3015_s7 }
 0x296   :  { %s3102_s17 = sld [smem:[#allocation5 + $0x207]] }
 0x297   :  { %4087 = sst [smem:[#allocation39_spill]] %s2920_s25 }
 0x298   :  { %s4103_s25 = sld [smem:[#allocation64_spill]] }
 0x299   :  { %s3168_s29 = sld [smem:[#allocation5 + $0x307]] }
 0x29a   :  { %4096 = sst [smem:[#allocation14_spill]] %s2988_s26 }
 0x29b   :  { %s4127_s28 = sld [smem:[#allocation43_spill]] }
 0x2a0   :  { %v2669_v23 = vpop.permute.xlu2 %2028 }
 0x2a1   :  { %v2031_v60 = vunpack.i.h.bf16 %v2669_v23  ;;  %v2030_v9 = vunpack.i.l.bf16 %v2669_v23  ;;  %v743_v23 = vadd.f32 %v2636_v4, %v742_v7  ;;  %v170_v7 = vstv %s2710_s23  ;;  %s2870_s23 = sld [smem:[#allocation5 + $0x205]] }
 0x2a3   :  { %v2809_v31 = vsel %vm1193_vm3, %v2030_v9, %v2031_v60  ;;  %v744_v34 = vmax.f32 %v743_v23, 0.0 }
 0x2a5   :  { %v745_v58 = vmul.f32 %v744_v34, %v2666_v13  ;;  %v243_v34 = vstv %s2750_s22  ;;  %s4079_s22 = sld [smem:[#allocation37_spill]] }
 0x2a7   :  { %4073 = sst [smem:[#allocation50_spill]] %s2870_s23 }
 0x2a8   :  { %v2708_v56 = vpop.permute.xlu2 %2053  ;;  %s3045_s23 = sld [smem:[#allocation5 + $0x107]] }
 0x2a9   :  { %v2056_v10 = vunpack.i.h.bf16 %v2708_v56  ;;  %v2055_v12 = vunpack.i.l.bf16 %v2708_v56  ;;  %v750_v56 = vadd.f32 %v2647_v11, %v749_v8  ;;  %v178_v8 = vstv %s2716_s27  ;;  %s2866_s27 = sld [smem:[#allocation5 + $0x185]] }
 0x2aa   :  { %s4146_s14 = sld [smem:[#allocation50_spill]] }
 0x2ab   :  { %v2815_v2 = vsel %vm1094_vm7, %v2055_v12, %v2056_v10  ;;  %v751_v39 = vmax.f32 %v750_v56, 0.0 }
 0x2af   :  { %4072 = sst [smem:[#allocation49_spill]] %s2866_s27 }
 0x2b0   :  { %v2744_v32 = vpop.permute.xlu2 %2073 }
 0x2b1   :  { %v2076_v14 = vunpack.i.h.bf16 %v2744_v32  ;;  %v2075_v16 = vunpack.i.l.bf16 %v2744_v32  ;;  %v729_v32 = vadd.f32 %v728_v17, %v722_v18 }
 0x2b3   :  { %v2812_v11 = vsel %vm1127_vm6, %v2075_v16, %v2076_v14  ;;  %v739_v57 = vadd.f32 %v738_v33, %v729_v32  ;;  %v758_v32 = vmax.f32 %v757_v0, 0.0  ;;  %v235_v33 = vstv %s2746_s10  ;;  %s2929_s10 = sld [smem:[#allocation5 + $0x286]] }
 0x2b8   :  { %v2084_v62 = vpop.permute.xlu2 %2083  ;;  %v2039_v63 = vpop.permute.xlu0 %2038 }
 0x2b9   :  { %v2041_v15 = vunpack.i.h.bf16 %v2039_v63  ;;  %v2040_v24 = vunpack.i.l.bf16 %v2039_v63  ;;  %v2086_v26 = vunpack.i.h.bf16 %v2084_v62  ;;  %v2085_v27 = vunpack.i.l.bf16 %v2084_v62  ;;  %4090 = sst [smem:[#allocation55_spill]] %s2929_s10 }
 0x2ba   :  { %v162_v62 = vstv %s2705_s11  ;;  %v752_v63 = vmul.f32 %v751_v39, %v2679_v28  ;;  %s2862_s11 = sld [smem:[#allocation5 + $0x105]] }
 0x2bb   :  { %v2824_v37 = vsel %vm1127_vm6, %v2040_v24, %v2041_v15  ;;  %v2835_v44 = vsel %vm1038_vm9, %v2085_v27, %v2086_v26  ;;  %v2873_v15 = vmul.f32 %v761_v36, %v2583_v48  ;;  %v2876_v24 = vadd.f32 %v761_v36, %v2583_v48  ;;  %s4128_s10 = sld [smem:[#allocation57_spill]] }
 0x2bc   :  { %v202_v26 = vstv %s2727_s6  ;;  %v746_v27 = vadd.f32 %v745_v58, %v739_v57  ;;  %v251_v36 = vstv %s2753_s9  ;;  %s4078_s9 = sld [smem:[#allocation36_spill]] }
 0x2bd   :  { %s2913_s6 = sld [smem:[#allocation5 + $0x106]] }
 0x2bf   :  { %v2034_v29 = vpop.permute.xlu1 %2033 }
 0x2c0   :  { %v2804_v30 = vpop.permute.xlu0 %2063  ;;  %v2806_v4 = vpop.permute.xlu2 %2088  ;;  %v2036_v50 = vunpack.i.h.bf16 %v2034_v29  ;;  %v2035_v51 = vunpack.i.l.bf16 %v2034_v29  ;;  %4071 = sst [smem:[#allocation48_spill]] %s2862_s11  ;;  %v210_v29 = vstv %s2732_s12 }
 0x2c1   :  { %v2066_v1 = vunpack.i.h.bf16 %v2804_v30  ;;  %v2065_v6 = vunpack.i.l.bf16 %v2804_v30  ;;  %v2091_v60 = vunpack.i.h.bf16 %v2806_v4  ;;  %v2090_v9 = vunpack.i.l.bf16 %v2806_v4  ;;  %s3117_s11 = sld [smem:[#allocation5 + $0x287]] }
 0x2c2   :  { %v1541_v18 = vsel %vm1160_vm4, %v2035_v51, %v2036_v50  ;;  %v218_v30 = vstv %s2737_s20  ;;  %v227_v4 = vstv %s2742_s30  ;;  %v267_v50 = vstv %s2760_s13  ;;  %s2899_s30 = sld [smem:[#allocation5 + $0x6]] }
 0x2c3   :  { %v1542_v25 = vsel %vm1160_vm4, %v2065_v6, %v2066_v1  ;;  %v2895_v39 = vsel %vm1005_vm10, %v2090_v9, %v2091_v60  ;;  %v764_v51 = vmul.f32 %v2873_v15, %v2602_v54  ;;  %v275_v1 = vstv %s2764_s16  ;;  %s2908_s13 = sld [smem:[#allocation5 + $0x86]] }
 0x2c4   :  { %v753_v6 = vadd.f32 %v752_v63, %v746_v27  ;;  %v283_v60 = vstv %s2769_s3  ;;  %v292_v9 = vstv %s2773_s2  ;;  %s4083_s20 = sld [smem:[#allocation40_spill]] }
 0x2c5   :  { %4085 = sst [smem:[#allocation37_spill]] %s2913_s6 }
 0x2c6   :  { %s2948_s16 = sld [smem:[#allocation5 + $0x306]] }
 0x2c7   :  { %v2044_v53 = vpop.permute.xlu1 %2043  ;;  %s4108_s6 = sld [smem:[#allocation62_spill]] }
 0x2c8   :  { %v2860_v10 = vpop.permute.xlu0 %2068  ;;  %v2109_v12 = vpop.permute.xlu2 %2108  ;;  %v2046_v14 = vunpack.i.h.bf16 %v2044_v53  ;;  %v2045_v20 = vunpack.i.l.bf16 %v2044_v53  ;;  %4077 = sst [smem:[#allocation54_spill]] %s2899_s30 }
 0x2c9   :  { %v2111_v16 = vunpack.i.h.bf16 %v2109_v12  ;;  %v2110_v17 = vunpack.i.l.bf16 %v2109_v12  ;;  %v2071_v57 = vunpack.i.h.bf16 %v2860_v10  ;;  %v2070_v58 = vunpack.i.l.bf16 %v2860_v10  ;;  %4081 = sst [smem:[#allocation36_spill]] %s2908_s13 }
 0x2ca   :  { %v1574_v23 = vsel %vm1193_vm3, %v2045_v20, %v2046_v14  ;;  %v300_v12 = vstv %s2775_s18  ;;  %v308_v10 = vstv %s2777_s8  ;;  %v316_v14 = vstv %s4078_s9  ;;  %s2923_s18 = sld [smem:[#allocation5 + $0x206]] }
 0x2cb   :  { %1651 = vmatpush.msra.mxu3 %v1574_v23  ;;  %v1606_v56 = vsel %vm1226_vm5, %v2110_v17, %v2111_v16  ;;  %s3057_s30 = sld [smem:[#allocation5 + $0x187]] }
 0x2cc   :  { %1688 = vmatpush.msrb.mxu2 %v1606_v56  ;;  %4092 = sst [smem:[#allocation56_spill]] %s2948_s16 }
 0x2cd   :  { %1652 = vmatpush.msra.mxu3 %v2809_v31  ;;  %v765_v31 = vmul.f32 %v2876_v24, %v2595_v52  ;;  %v759_v52 = vmul.f32 %v758_v32, %v2689_v35  ;;  %v2932_v32 = vsel %vm1038_vm9, %v2070_v58, %v2071_v57  ;;  %s4122_s12 = sld [smem:[#allocation38_spill]] }
 0x2ce   :  { %s4137_s13 = sld [smem:[#allocation48_spill]] }
 0x2cf   :  { %v2049_v0 = vpop.permute.xlu1 %2048  ;;  %1653 = vmatpush.msra.mxu3 %v1542_v25  ;;  %v766_v56 = vadd.f32 %v765_v31, %v764_v51  ;;  %v2935_v20 = vadd.f32 %v759_v52, %v753_v6 }
 0x2d0   :  { %v2079_v53 = vpop.permute.xlu0 %2078  ;;  %v2051_v63 = vunpack.i.h.bf16 %v2049_v0  ;;  %v2050_v17 = vunpack.i.l.bf16 %v2049_v0  ;;  %4089 = sst [smem:[#allocation44_spill]] %s2923_s18 }
 0x2d1   :  { %1654 = vmatpush.msra.mxu3 %v1541_v18  ;;  %v348_v18 = vstv %s4083_s20  ;;  %v2081_v0 = vunpack.i.h.bf16 %v2079_v53  ;;  %v2080_v16 = vunpack.i.l.bf16 %v2079_v53  ;;  %s4091_s20 = sld [smem:[#allocation58_spill]]  ;;  %v767_v6 = vadd.f32 %v766_v56, %v2631_v3 }
 0x2d2   :  { %v1478_v25 = vsel %vm1094_vm7, %v2050_v17, %v2051_v63  ;;  %v900_v63 = vld [vmem:[%s4097_s0 + $0x78] sm:$0xff]  ;;  %s4160_s9 = sld [smem:[#allocation44_spill]] }
 0x2d3   :  { %1655 = vmatpush.msra.mxu3 %v2812_v11  ;;  %v1456_v51 = vsel %vm1071_vm8, %v2080_v16, %v2081_v0  ;;  %904 = vmatpush.msra.mxu0 %v900_v63  ;;  %v114_v11 = vmul.f32 %v113_v43, %v2583_v48  ;;  %v138_v43 = vmul.f32 %v137_v47, %v2583_v48  ;;  %s4170_s18 = sld [smem:[#allocation59_spill]] }
 0x2d5   :  { %1656 = vmatpush.msra.mxu3 %v2824_v37 }
 0x2d7   :  { %v2134_v57 = vld [vmem:[%s4091_s20] ss:$0 sm:$0xff]  ;;  %v2059_v37 = vpop.permute.xlu1 %2058  ;;  %1657 = vmatpush.msra.mxu3 %v1478_v25  ;;  %v2135_v3 = vld [vmem:[%s4091_s20 + $0x1] ss:$0 sm:$0xff]  ;;  %v2136_v56 = vld [vmem:[%s4091_s20 + $0x2] ss:$0 sm:$0xff] }
 0x2d8   :  { %v2955_v31 = vpop.permute.xlu0 %2103  ;;  %v2061_v53 = vunpack.i.h.bf16 %v2059_v37  ;;  %v2060_v58 = vunpack.i.l.bf16 %v2059_v37  ;;  %v2137_v25 = vld [vmem:[%s4091_s20 + $0x3] ss:$0 sm:$0xff]  ;;  %v2138_v27 = vld [vmem:[%s4091_s20 + $0x4] ss:$0 sm:$0xff]  ;;  %v2139_v52 = vld [vmem:[%s4091_s20 + $0x5] ss:$0 sm:$0xff] }
 0x2d9   :  { %1658 = vmatpush.msra.mxu3 %v2815_v2  ;;  %v91_v2 = vmul.f32 %v90_v38, %v2583_v48  ;;  %v768_v37 = vmax.f32 %v767_v6, 0.0  ;;  %v2140_v0 = vld [vmem:[%s4091_s20 + $0x6] ss:$0 sm:$0xff]  ;;  %v899_v38 = vld [vmem:[%s4097_s0 + $0x70] sm:$0xff]  ;;  %v106_v6 = vmul.f32 %v105_v42, %v2583_v48  ;;  %v2141_v23 = vld [vmem:[%s4091_s20 + $0x7] ss:$0 sm:$0xff]  ;;  %v117_v47 = vadd.f32 %v2137_v25, %v114_v11 }
 0x2da   :  { %v1455_v17 = vsel %vm1071_vm8, %v2060_v58, %v2061_v53  ;;  %v122_v58 = vmul.f32 %v121_v45, %v2583_v48  ;;  %v130_v53 = vmul.f32 %v129_v46, %v2583_v48  ;;  %v146_v45 = vmul.f32 %v145_v49, %v2583_v48  ;;  %v2142_v46 = vld [vmem:[%s4091_s20 + $0x8] ss:$0 sm:$0xff]  ;;  %v2143_v63 = vld [vmem:[%s4091_s20 + $0x9] ss:$0 sm:$0xff]  ;;  %905 = vmatpush.msra.mxu0 %v899_v38 }
 0x2db   :  { %1659 = vmatpush.msra.mxu3 %v1456_v51  ;;  %v98_v51 = vmul.f32 %v97_v41, %v2583_v48  ;;  %v94_v16 = vadd.f32 %v2134_v57, %v91_v2  ;;  %v898_v41 = vld [vmem:[%s4097_s0 + $0x68] sm:$0xff]  ;;  %v109_v57 = vadd.f32 %v2136_v56, %v106_v6  ;;  %v3039_v49 = vmul.f32 %v768_v37, %v2663_v21 }
 0x2dc   :  { %v2106_v56 = vunpack.i.h.bf16 %v2955_v31  ;;  %v2144_v2 = vld [vmem:[%s4091_s20 + $0xa] ss:$0 sm:$0xff]  ;;  %v133_v11 = vadd.f32 %v2139_v52, %v130_v53  ;;  %v141_v25 = vadd.f32 %v2140_v0, %v138_v43  ;;  %v154_v37 = vmul.f32 %v153_v59, %v2583_v48  ;;  %906 = vmatpush.msra.mxu0 %v898_v41  ;;  %v2145_v59 = vld [vmem:[%s4091_s20 + $0xb] ss:$0 sm:$0xff]  ;;  %v2146_v0 = vld [vmem:[%s4091_s20 + $0xc] ss:$0 sm:$0xff] }
 0x2dd   :  { %1660 = vmatpush.msra.mxu3 %v1455_v17  ;;  %v101_v42 = vadd.f32 %v2135_v3, %v98_v51  ;;  %v527_v17 = vstv %s2948_s16  ;;  %95 = vst [vmem:[%s4103_s25] sm:$0xff] %v94_v16  ;;  %v125_v3 = vadd.f32 %v2138_v27, %v122_v58  ;;  %v897_v27 = vld [vmem:[%s4097_s0 + $0x60] sm:$0xff]  ;;  %v171_v52 = vmul.f32 %v170_v7, %v2583_v48  ;;  %s4124_s16 = sld [smem:[#allocation41_spill]] }
 0x2de   :  { %1717 = vst [vmem:[%s4103_s25 + $0x10] sm:$0xff] %v109_v57  ;;  %v149_v7 = vadd.f32 %v2141_v23, %v146_v45  ;;  %v179_v41 = vmul.f32 %v178_v8, %v2583_v48  ;;  %v2147_v57 = vld [vmem:[%s4091_s20 + $0xd] ss:$0 sm:$0xff]  ;;  %907 = vmatpush.msra.mxu0 %v897_v27  ;;  %v158_v8 = vadd.f32 %v2142_v46, %v154_v37  ;;  %v2151_v37 = vld [vmem:[%s4091_s20 + $0x11] ss:$0 sm:$0xff] }
 0x2df   :  { %v2094_v38 = vpop.permute.xlu1 %2093  ;;  %1661 = vmatpush.msra.mxu3 %v2835_v44  ;;  %1715 = vst [vmem:[%s4103_s25 + $0x8] sm:$0xff] %v101_v42  ;;  %v163_v44 = vmul.f32 %v162_v62, %v2583_v48  ;;  %v896_v62 = vld [vmem:[%s4097_s0 + $0x58] sm:$0xff]  ;;  %v2105_v42 = vunpack.i.l.bf16 %v2955_v31  ;;  %v1612_v23 = vld [vmem:[%s4108_s6 + $0x8] sm:$0xff]  ;;  %v174_v46 = vadd.f32 %v2144_v2, %v171_v52  ;;  %v195_v2 = vmul.f32 %v194_v22, %v2583_v48  ;;  %v893_v31 = vld [vmem:[%s4097_s0 + $0x40] sm:$0xff] }
 0x2e0   :  { %v2114_v16 = vpop.permute.xlu0 %2113  ;;  %v2096_v51 = vunpack.i.h.bf16 %v2094_v38  ;;  %v2095_v6 = vunpack.i.l.bf16 %v2094_v38  ;;  %1719 = vst [vmem:[%s4103_s25 + $0x18] sm:$0xff] %v117_v47  ;;  %v2149_v47 = vld [vmem:[%s4091_s20 + $0xf] ss:$0 sm:$0xff]  ;;  %v535_v38 = vstv %s2988_s26  ;;  %908 = vmatpush.msra.mxu0 %v896_v62  ;;  %v236_v62 = vmul.f32 %v235_v33, %v2583_v48 }
 0x2e1   :  { %v2116_v58 = vunpack.i.h.bf16 %v2114_v16  ;;  %v2115_v53 = vunpack.i.l.bf16 %v2114_v16  ;;  %1662 = vmatpush.msra.mxu3 %v2932_v32  ;;  %v2148_v32 = vld [vmem:[%s4091_s20 + $0xe] ss:$0 sm:$0xff]  ;;  %1721 = vst [vmem:[%s4103_s25 + $0x20] sm:$0xff] %v125_v3  ;;  %v166_v45 = vadd.f32 %v2143_v63, %v163_v44  ;;  %v895_v16 = vld [vmem:[%s4097_s0 + $0x50] sm:$0xff]  ;;  %v187_v63 = vmul.f32 %v186_v19, %v2583_v48 }
 0x2e2   :  { %v1392_v43 = vsel %vm1005_vm10, %v2095_v6, %v2096_v51  ;;  %1723 = vst [vmem:[%s4103_s25 + $0x28] sm:$0xff] %v133_v11  ;;  %v2150_v3 = vld [vmem:[%s4091_s20 + $0x10] ss:$0 sm:$0xff]  ;;  %v203_v19 = vmul.f32 %v202_v26, %v2583_v48  ;;  %v211_v11 = vmul.f32 %v210_v29, %v2583_v48  ;;  %v2152_v51 = vld [vmem:[%s4091_s20 + $0x12] ss:$0 sm:$0xff]  ;;  %v894_v22 = vld [vmem:[%s4097_s0 + $0x48] sm:$0xff]  ;;  %v182_v26 = vadd.f32 %v2145_v59, %v179_v41 }
 0x2e3   :  { %1663 = vmatpush.msra.mxu3 %v1392_v43  ;;  %v1605_v27 = vsel %vm1226_vm5, %v2115_v53, %v2116_v58  ;;  %1725 = vst [vmem:[%s4103_s25 + $0x30] sm:$0xff] %v141_v25  ;;  %v219_v29 = vmul.f32 %v218_v30, %v2583_v48  ;;  %v228_v25 = vmul.f32 %v227_v4, %v2583_v48  ;;  %v2154_v6 = vld [vmem:[%s4091_s20 + $0x14] ss:$0 sm:$0xff]  ;;  %v543_v44 = vstv %s3015_s7  ;;  %v2155_v59 = vld [vmem:[%s4091_s20 + $0x15] ss:$0 sm:$0xff]  ;;  %s4126_s7 = sld [smem:[#allocation42_spill]] }
 0x2e4   :  { %1689 = vmatpush.msrb.mxu2 %v1605_v27  ;;  %1727 = vst [vmem:[%s4103_s25 + $0x38] sm:$0xff] %v149_v7  ;;  %909 = vmatpush.msra.mxu0 %v895_v16  ;;  %v1360_v52 = vsel %vm972_vm11, %v2105_v42, %v2106_v56  ;;  %v190_v30 = vadd.f32 %v2146_v0, %v187_v63  ;;  %v552_v58 = vstv %s3033_s4  ;;  %v2156_v7 = vld [vmem:[%s4091_s20 + $0x16] ss:$0 sm:$0xff]  ;;  %v2157_v41 = vld [vmem:[%s4091_s20 + $0x17] ss:$0 sm:$0xff]  ;;  %s4150_s4 = sld [smem:[#allocation54_spill]] }
 0x2e5   :  { %1664 = vmatpush.msra.mxu3 %v2895_v39  ;;  %1910 = vmatmul.msk.f32.vlgmr.msrb.gmra.mxu2 %vm924_vm2, %v1612_v23  ;;  %v2153_v39 = vld [vmem:[%s4091_s20 + $0x13] ss:$0 sm:$0xff]  ;;  %1730 = vst [vmem:[%s4103_s25 + $0x40] sm:$0xff] %v158_v8  ;;  %v198_v4 = vadd.f32 %v2147_v57, %v195_v2  ;;  %v206_v56 = vadd.f32 %v2148_v32, %v203_v19  ;;  %v2158_v42 = vld [vmem:[%s4091_s20 + $0x18] ss:$0 sm:$0xff]  ;;  %v1611_v8 = vld [vmem:[%s4108_s6] sm:$0xff] }
 0x2e6   :  { %1733 = vst [vmem:[%s4103_s25 + $0x48] sm:$0xff] %v166_v45  ;;  %v214_v0 = vadd.f32 %v2149_v47, %v211_v11  ;;  %910 = vmatpush.msra.mxu0 %v894_v22  ;;  %v244_v33 = vmul.f32 %v243_v34, %v2583_v48  ;;  %v252_v43 = vmul.f32 %v251_v36, %v2583_v48  ;;  %v2159_v23 = vld [vmem:[%s4091_s20 + $0x19] ss:$0 sm:$0xff]  ;;  %v2160_v16 = vld [vmem:[%s4091_s20 + $0x1a] ss:$0 sm:$0xff]  ;;  %v568_v11 = vstv %s3057_s30 }
 0x2e7   :  { %v2099_v53 = vpop.permute.xlu1 %2098  ;;  %1665 = vmatpush.msra.mxu3 %v1360_v52  ;;  %1736 = vst [vmem:[%s4103_s25 + $0x50] sm:$0xff] %v174_v46  ;;  %v892_v45 = vld [vmem:[%s4097_s0 + $0x38] sm:$0xff]  ;;  %v223_v34 = vadd.f32 %v2150_v3, %v219_v29  ;;  %v231_v36 = vadd.f32 %v2151_v37, %v228_v25  ;;  %v239_v47 = vadd.f32 %v2152_v51, %v236_v62  ;;  %v560_v46 = vstv %s3045_s23  ;;  %v891_v37 = vld [vmem:[%s4097_s0 + $0x30] sm:$0xff] }
 0x2e8   :  { %v2101_v57 = vunpack.i.h.bf16 %v2099_v53  ;;  %v2100_v32 = vunpack.i.l.bf16 %v2099_v53  ;;  %1739 = vst [vmem:[%s4103_s25 + $0x58] sm:$0xff] %v182_v26  ;;  %v260_v27 = vmul.f32 %v259_v40, %v2583_v48  ;;  %911 = vmatpush.msra.mxu0 %v893_v31  ;;  %v1614_v2 = vld [vmem:[%s4108_s6 + $0x18] sm:$0xff]  ;;  %v268_v40 = vmul.f32 %v267_v50, %v2583_v48  ;;  %v2166_v53 = vld [vmem:[%s4091_s20 + $0x20] ss:$0 sm:$0xff]  ;;  %v2168_v62 = vld [vmem:[%s4091_s20 + $0x22] ss:$0 sm:$0xff] }
 0x2e9   :  { %1742 = vst [vmem:[%s4103_s25 + $0x60] sm:$0xff] %v190_v30  ;;  %v276_v3 = vmul.f32 %v275_v1, %v2583_v48  ;;  %v2161_v19 = vld [vmem:[%s4091_s20 + $0x1b] ss:$0 sm:$0xff]  ;;  %v247_v50 = vadd.f32 %v2153_v39, %v244_v33  ;;  %v255_v51 = vadd.f32 %v2154_v6, %v252_v43  ;;  %v2162_v22 = vld [vmem:[%s4091_s20 + $0x1c] ss:$0 sm:$0xff]  ;;  %v284_v29 = vmul.f32 %v283_v60, %v2583_v48  ;;  %v890_v30 = vld [vmem:[%s4097_s0 + $0x28] sm:$0xff] }
 0x2ea   :  { %v1359_v63 = vsel %vm972_vm11, %v2100_v32, %v2101_v57  ;;  %1745 = vst [vmem:[%s4103_s25 + $0x68] sm:$0xff] %v198_v4  ;;  %v263_v1 = vadd.f32 %v2155_v59, %v260_v27  ;;  %v2163_v26 = vld [vmem:[%s4091_s20 + $0x1d] ss:$0 sm:$0xff]  ;;  %912 = vmatpush.msra.mxu0 %v892_v45  ;;  %v293_v25 = vmul.f32 %v292_v9, %v2583_v48  ;;  %v2164_v6 = vld [vmem:[%s4091_s20 + $0x1e] ss:$0 sm:$0xff]  ;;  %v576_v52 = vstv %s3102_s17  ;;  %s4178_s17 = sld [smem:[#allocation65_spill]] }
 0x2eb   :  { %1666 = vmatpush.msra.mxu3 %v1359_v63  ;;  %1748 = vst [vmem:[%s4103_s25 + $0x70] sm:$0xff] %v206_v56  ;;  %v301_v39 = vmul.f32 %v300_v12, %v2583_v48  ;;  %v309_v60 = vmul.f32 %v308_v10, %v2583_v48  ;;  %v317_v9 = vmul.f32 %v316_v14, %v2583_v48  ;;  %v4121_v12 = vstv %s4079_s22  ;;  %v2165_v59 = vld [vmem:[%s4091_s20 + $0x1f] ss:$0 sm:$0xff]  ;;  %v889_v57 = vld [vmem:[%s4097_s0 + $0x20] sm:$0xff]  ;;  %s4174_s22 = sld [smem:[#allocation60_spill]] }
 0x2ec   :  { %1667 = vmatmul.f32.vlgmr.msra.gmra.mxu3 %v1611_v8  ;;  %1751 = vst [vmem:[%s4103_s25 + $0x78] sm:$0xff] %v214_v0  ;;  %v325_v4 = vmul.f32 %v4121_v12, %v2583_v48  ;;  %v584_v31 = vstv %s3117_s11  ;;  %913 = vmatpush.msra.mxu0 %v891_v37  ;;  %v271_v10 = vadd.f32 %v2156_v7, %v268_v40  ;;  %v2167_v0 = vld [vmem:[%s4091_s20 + $0x21] ss:$0 sm:$0xff]  ;;  %v4125_v32 = vstv %s4122_s12  ;;  %s4152_s12 = sld [smem:[#allocation36_spill]] }
 0x2ed   :  { %1911 = vmatmul.msk.f32.gmra.mxu2 %vm924_vm2, %v1614_v2  ;;  %1754 = vst [vmem:[%s4103_s25 + $0x80] sm:$0xff] %v223_v34  ;;  %v279_v14 = vadd.f32 %v2157_v41, %v276_v3  ;;  %v288_v56 = vadd.f32 %v2158_v42, %v284_v29  ;;  %v296_v7 = vadd.f32 %v2159_v23, %v293_v25  ;;  %v2169_v43 = vld [vmem:[%s4091_s20 + $0x23] ss:$0 sm:$0xff]  ;;  %v2170_v8 = vld [vmem:[%s4091_s20 + $0x24] ss:$0 sm:$0xff]  ;;  %v592_v45 = vstv %s3168_s29 }
 0x2ee   :  { %1757 = vst [vmem:[%s4103_s25 + $0x88] sm:$0xff] %v231_v36  ;;  %v3301_v41 = vadd.f32 %v2160_v16, %v301_v39  ;;  %v3303_v42 = vadd.f32 %v2161_v19, %v309_v60  ;;  %v333_v33 = vmul.f32 %v4125_v32, %v2583_v48  ;;  %914 = vmatpush.msra.mxu0 %v890_v30  ;;  %v3321_v48 = vld [vmem:[%s4128_s10] sm:$0xff]  ;;  %v4129_v23 = vstv %s4082_s15  ;;  %v888_v2 = vld [vmem:[%s4097_s0 + $0x18] sm:$0xff]  ;;  %s4139_s15 = sld [smem:[#allocation49_spill]] }
 0x2ef   :  { %1760 = vst [vmem:[%s4103_s25 + $0x90] sm:$0xff] %v239_v47  ;;  %v341_v34 = vmul.f32 %v3321_v48, %v4129_v23  ;;  %v349_v36 = vmul.f32 %v3321_v48, %v348_v18  ;;  %v4130_v27 = vstv %s4124_s16  ;;  %v2171_v63 = vld [vmem:[%s4091_s20 + $0x25] ss:$0 sm:$0xff]  ;;  %v1613_v47 = vld [vmem:[%s4108_s6 + $0x10] sm:$0xff]  ;;  %v3344_v18 = vadd.f32 %v2162_v22, %v317_v9 }
 0x2f0   :  { %v358_v16 = vmul.f32 %v3321_v48, %v4130_v27  ;;  %1763 = vst [vmem:[%s4103_s25 + $0x98] sm:$0xff] %v247_v50  ;;  %v3346_v40 = vadd.f32 %v2163_v26, %v325_v4  ;;  %v4131_v3 = vstv %s4126_s7  ;;  %v4132_v37 = vstv %s4127_s28  ;;  %v2172_v25 = vld [vmem:[%s4091_s20 + $0x26] ss:$0 sm:$0xff]  ;;  %915 = vmatpush.msra.mxu0 %v889_v57  ;;  %s4133_s7 = sld [smem:[#allocation45_spill]] }
 0x2f1   :  { %v366_v19 = vmul.f32 %v3321_v48, %v4131_v3  ;;  %v374_v29 = vmul.f32 %v3321_v48, %v4132_v37  ;;  %v2173_v39 = vld [vmem:[%s4091_s20 + $0x27] ss:$0 sm:$0xff]  ;;  %v600_v50 = vstv %s3216_s5  ;;  %1766 = vst [vmem:[%s4103_s25 + $0xa0] sm:$0xff] %v255_v51  ;;  %v3364_v22 = vadd.f32 %v2164_v6, %v333_v33  ;;  %s4135_s28 = sld [smem:[#allocation46_spill]]  ;;  %v2174_v9 = vld [vmem:[%s4091_s20 + $0x28] ss:$0 sm:$0xff] }
 0x2f2   :  { %v3366_v26 = vadd.f32 %v2165_v59, %v341_v34  ;;  %v4134_v30 = vstv %s4088_s24  ;;  %v2175_v12 = vld [vmem:[%s4091_s20 + $0x29] ss:$0 sm:$0xff]  ;;  %v887_v51 = vld [vmem:[%s4097_s0 + $0x10] sm:$0xff]  ;;  %1769 = vst [vmem:[%s4103_s25 + $0xa8] sm:$0xff] %v263_v1  ;;  %v3383_v6 = vadd.f32 %v2166_v53, %v349_v36  ;;  %s4136_s24 = sld [smem:[#allocation47_spill]]  ;;  %v3385_v4 = vadd.f32 %v2167_v0, %v358_v16  ;;  %916 = vmatpush.msra.mxu0 %v888_v2 }
 0x2f3   :  { %v382_v60 = vmul.f32 %v3321_v48, %v4134_v30  ;;  %v3387_v59 = vadd.f32 %v2168_v62, %v366_v19  ;;  %v4138_v57 = vstv %s2832_s1  ;;  %v2176_v33 = vld [vmem:[%s4091_s20 + $0x2a] ss:$0 sm:$0xff]  ;;  %1772 = vst [vmem:[%s4103_s25 + $0xb0] sm:$0xff] %v271_v10  ;;  %v4140_v1 = vstv %s2841_s19 }
 0x2f4   :  { %v390_v32 = vmul.f32 %v3321_v48, %v4138_v57  ;;  %1670 = vmatmul.f32.gmra.mxu3 %v1613_v47  ;;  %v398_v53 = vmul.f32 %v3321_v48, %v4140_v1  ;;  %v2177_v36 = vld [vmem:[%s4091_s20 + $0x2b] ss:$0 sm:$0xff]  ;;  %v2178_v27 = vld [vmem:[%s4091_s20 + $0x2c] ss:$0 sm:$0xff]  ;;  %1775 = vst [vmem:[%s4103_s25 + $0xb8] sm:$0xff] %v279_v14  ;;  %v3419_v16 = vadd.f32 %v2169_v43, %v374_v29  ;;  %v4144_v3 = vstv %s4137_s13  ;;  %s4148_s13 = sld [smem:[#allocation52_spill]] }
 0x2f5   :  { %v886_v10 = vld [vmem:[%s4097_s0 + $0x8] sm:$0xff]  ;;  %v431_v19 = vmul.f32 %v3321_v48, %v4144_v3  ;;  %v4145_v37 = vstv %s4139_s15  ;;  %917 = vmatpush.msra.mxu0 %v887_v51  ;;  %1778 = vst [vmem:[%s4103_s25 + $0xc0] sm:$0xff] %v288_v56  ;;  %v3439_v43 = vadd.f32 %v2170_v8, %v382_v60  ;;  %s4149_s15 = sld [smem:[#allocation53_spill]]  ;;  %v2182_v51 = vld [vmem:[%s4091_s20 + $0x30] ss:$0 sm:$0xff] }
 0x2f6   :  { %v4141_v0 = vstv %s4133_s7  ;;  %v439_v30 = vmul.f32 %v3321_v48, %v4145_v37  ;;  %v2179_v57 = vld [vmem:[%s4091_s20 + $0x2d] ss:$0 sm:$0xff]  ;;  %v2180_v14 = vld [vmem:[%s4091_s20 + $0x2e] ss:$0 sm:$0xff]  ;;  %v3441_v29 = vadd.f32 %v2171_v63, %v390_v32  ;;  %v3443_v1 = vadd.f32 %v2172_v25, %v398_v53  ;;  %v885_v56 = vld [vmem:[%s4097_s0] sm:$0xff]  ;;  %s4177_s7 = sld [smem:[#allocation63_spill]] }
 0x2f7   :  { %v406_v62 = vmul.f32 %v3321_v48, %v4141_v0  ;;  %v4142_v23 = vstv %s4135_s28  ;;  %1781 = vst [vmem:[%s4103_s25 + $0xc8] sm:$0xff] %v296_v7  ;;  %v4151_v60 = vstv %s4146_s14  ;;  %v2183_v53 = vld [vmem:[%s4091_s20 + $0x31] ss:$0 sm:$0xff]  ;;  %918 = vmatpush.msra.mxu0 %v886_v10  ;;  %s4156_s14 = sld [smem:[#allocation37_spill]]  ;;  %v3497_v3 = vadd.f32 %v2176_v33, %v431_v19 }
 0x2f8   :  { %v414_v34 = vmul.f32 %v3321_v48, %v4142_v23  ;;  %v4143_v47 = vstv %s4136_s24  ;;  %s4147_s24 = sld [smem:[#allocation51_spill]]  ;;  %v2181_v23 = vld [vmem:[%s4091_s20 + $0x2f] ss:$0 sm:$0xff]  ;;  %v447_v32 = vmul.f32 %v3321_v48, %v4151_v60  ;;  %1784 = vst [vmem:[%s4103_s25 + $0xd0] sm:$0xff] %v3301_v41  ;;  %v2185_v10 = vld [vmem:[%s4091_s20 + $0x33] ss:$0 sm:$0xff]  ;;  %v3499_v37 = vadd.f32 %v2177_v36, %v439_v30 }
 0x2f9   :  { %v423_v2 = vmul.f32 %v3321_v48, %v4143_v47  ;;  %v3458_v8 = vadd.f32 %v2173_v39, %v406_v62  ;;  %v2184_v47 = vld [vmem:[%s4091_s20 + $0x32] ss:$0 sm:$0xff]  ;;  %v2186_v41 = vld [vmem:[%s4091_s20 + $0x34] ss:$0 sm:$0xff]  ;;  %1787 = vst [vmem:[%s4103_s25 + $0xd8] sm:$0xff] %v3303_v42  ;;  %v4157_v60 = vstv %s4150_s4  ;;  %919 = vmatpush.msra.mxu0 %v885_v56  ;;  %s4161_s4 = sld [smem:[#allocation55_spill]] }
 0x2fa   :  { %v3460_v63 = vadd.f32 %v2174_v9, %v414_v34  ;;  %v4154_v9 = vstv %s4148_s13  ;;  %s4159_s13 = sld [smem:[#allocation39_spill]]  ;;  %v2188_v0 = vld [vmem:[%s4091_s20 + $0x36] ss:$0 sm:$0xff]  ;;  %1790 = vst [vmem:[%s4103_s25 + $0xe0] sm:$0xff] %v3344_v18  ;;  %v3517_v42 = vadd.f32 %v2178_v27, %v447_v32  ;;  %v854_v30 = vperm.slane %v3321_v48, 7 }
 0x2fb   :  { %v3462_v25 = vadd.f32 %v2175_v12, %v423_v2  ;;  %v463_v12 = vmul.f32 %v3321_v48, %v4154_v9  ;;  %v4155_v62 = vstv %s4149_s15  ;;  %v4158_v9 = vstv %s4152_s12  ;;  %v2187_v2 = vld [vmem:[%s4091_s20 + $0x35] ss:$0 sm:$0xff]  ;;  %v2189_v56 = vld [vmem:[%s4091_s20 + $0x37] ss:$0 sm:$0xff]  ;;  %s4176_s12 = sld [smem:[#allocation66_spill]] }
 0x2fc   :  { %v471_v34 = vmul.f32 %v3321_v48, %v4155_v62  ;;  %v488_v62 = vmul.f32 %v3321_v48, %v4158_v9  ;;  %v2190_v18 = vld [vmem:[%s4091_s20 + $0x38] ss:$0 sm:$0xff]  ;;  %1793 = vst [vmem:[%s4103_s25 + $0xe8] sm:$0xff] %v3346_v40  ;;  %v2191_v9 = vld [vmem:[%s4091_s20 + $0x39] ss:$0 sm:$0xff]  ;;  %v4168_v40 = vstv %s4160_s9  ;;  %s902_s28 = smul.f32 64.0, %s4177_s7 }
 0x2fd   :  { %v4163_v36 = vstv %s4156_s14  ;;  %v3535_v27 = vadd.f32 %v2180_v14, %v463_v12  ;;  %1796 = vst [vmem:[%s4103_s25 + $0xf0] sm:$0xff] %v3364_v22  ;;  %v512_v14 = vmul.f32 %v3321_v48, %v4168_v40  ;;  %v528_v12 = vmul.f32 %v3321_v48, %v527_v17  ;;  %v2194_v40 = vld [vmem:[%s4091_s20 + $0x3c] ss:$0 sm:$0xff] }
 0x2fe   :  { %v4153_v7 = vstv %s4147_s24  ;;  %v496_v19 = vmul.f32 %v3321_v48, %v4163_v36  ;;  %v2192_v36 = vld [vmem:[%s4091_s20 + $0x3a] ss:$0 sm:$0xff]  ;;  %1799 = vst [vmem:[%s4103_s25 + $0xf8] sm:$0xff] %v3366_v26  ;;  %v3573_v22 = vadd.f32 %v2183_v53, %v488_v62  ;;  %v553_v17 = vmul.f32 %v3321_v48, %v552_v58  ;;  %v2195_v26 = vld [vmem:[%s4091_s20 + $0x3d] ss:$0 sm:$0xff] }
 0x2ff   :  { %v455_v39 = vmul.f32 %v3321_v48, %v4153_v7  ;;  %v479_v7 = vmul.f32 %v3321_v48, %v4157_v60  ;;  %1802 = vst [vmem:[%s4103_s25 + $0x100] sm:$0xff] %v3383_v6  ;;  %v3606_v62 = vadd.f32 %v2188_v0, %v528_v12  ;;  %v585_v0 = vmul.f32 %v3321_v48, %v584_v31 }
 0x300   :  { %1805 = vst [vmem:[%s4103_s25 + $0x108] sm:$0xff] %v3385_v4  ;;  %v577_v4 = vmul.f32 %v3321_v48, %v576_v52  ;;  %v3648_v52 = vld [vmem:[%s4170_s18 + $0x8] sm:$0xff] }
 0x301   :  { %v3519_v33 = vadd.f32 %v2179_v57, %v455_v39  ;;  %v3537_v57 = vadd.f32 %v2181_v23, %v471_v34  ;;  %v3539_v32 = vadd.f32 %v2182_v51, %v479_v7  ;;  %v4167_v39 = vstv %s4159_s13  ;;  %v2193_v7 = vld [vmem:[%s4091_s20 + $0x3b] ss:$0 sm:$0xff]  ;;  %1808 = vst [vmem:[%s4103_s25 + $0x110] sm:$0xff] %v3387_v59 }
 0x302   :  { %v504_v60 = vmul.f32 %v3321_v48, %v4167_v39  ;;  %v4169_v23 = vstv %s4161_s4  ;;  %v536_v34 = vmul.f32 %v3321_v48, %v535_v38  ;;  %v544_v39 = vmul.f32 %v3321_v48, %v543_v44  ;;  %1811 = vst [vmem:[%s4103_s25 + $0x118] sm:$0xff] %v3419_v16 }
 0x303   :  { %v520_v51 = vmul.f32 %v3321_v48, %v4169_v23  ;;  %v561_v38 = vmul.f32 %v3321_v48, %v560_v46  ;;  %v3594_v44 = vadd.f32 %v2184_v47, %v496_v19  ;;  %v3598_v46 = vadd.f32 %v2186_v41, %v512_v14  ;;  %1814 = vst [vmem:[%s4103_s25 + $0x120] sm:$0xff] %v3439_v43  ;;  %v3673_v43 = vld [vmem:[%s4170_s18 + $0x10] sm:$0xff] }
 0x304   :  { %v3596_v58 = vadd.f32 %v2185_v10, %v504_v60  ;;  %v3608_v23 = vadd.f32 %v2189_v56, %v536_v34  ;;  %v3610_v6 = vadd.f32 %v2190_v18, %v544_v39  ;;  %v569_v47 = vmul.f32 %v3321_v48, %v568_v11  ;;  %1817 = vst [vmem:[%s4103_s25 + $0x128] sm:$0xff] %v3441_v29 }
 0x305   :  { %v3600_v53 = vadd.f32 %v2187_v2, %v520_v51  ;;  %v3619_v2 = vadd.f32 %v2191_v9, %v553_v17  ;;  %v3621_v10 = vadd.f32 %v2192_v36, %v561_v38  ;;  %v3636_v11 = vmul.f32 %v3321_v48, %v592_v45  ;;  %1820 = vst [vmem:[%s4103_s25 + $0x130] sm:$0xff] %v3443_v1 }
 0x306   :  { %v3641_v59 = vmul.f32 %v3321_v48, %v600_v50  ;;  %v771_v41 = vmul.f32 %v2873_v15, %v2604_v55  ;;  %v772_v31 = vmul.f32 %v3648_v52, %v2876_v24  ;;  %v3656_v45 = vadd.f32 %v2193_v7, %v569_v47  ;;  %1823 = vst [vmem:[%s4103_s25 + $0x138] sm:$0xff] %v3458_v8 }
 0x307   :  { %v3658_v50 = vadd.f32 %v2194_v40, %v577_v4  ;;  %v3660_v16 = vadd.f32 %v2195_v26, %v585_v0  ;;  %v770_v19 = vadd.f32 %v3039_v49, %v2935_v20  ;;  %v778_v18 = vmul.f32 %v2873_v15, %v2617_v61  ;;  %v3686_v49 = vld [vmem:[%s4170_s18 + $0x18] sm:$0xff]  ;;  %1826 = vst [vmem:[%s4103_s25 + $0x140] sm:$0xff] %v3460_v63  ;;  %v3729_v40 = vld [vmem:[%s4170_s18] sm:$0xff]  ;;  %v3740_v63 = vld [vmem:[%s4174_s22 + $0x10] sm:$0xff] }
 0x308   :  { %v773_v56 = vadd.f32 %v772_v31, %v771_v41  ;;  %v779_v60 = vmul.f32 %v3673_v43, %v2876_v24  ;;  %v785_v20 = vmul.f32 %v2873_v15, %v2638_v5  ;;  %v786_v29 = vmul.f32 %v3686_v49, %v2876_v24  ;;  %v3708_v24 = vld [vmem:[%s4174_s22 + $0x8] sm:$0xff]  ;;  %1829 = vst [vmem:[%s4103_s25 + $0x148] sm:$0xff] %v3462_v25  ;;  %v3752_v25 = vld [vmem:[%s4174_s22 + $0x18] sm:$0xff] }
 0x309   :  { %v4171_v9 = vperm.slane %v3321_v48, 5  ;;  %v4173_v51 = vperm.slane %v3321_v48, 6  ;;  %v3719_v17 = vmul.f32 %v3321_v48, %v854_v30  ;;  %1832 = vst [vmem:[%s4103_s25 + $0x150] sm:$0xff] %v3497_v3 }
 0x30a   :  { %v774_v12 = vadd.f32 %v3708_v24, %v773_v56  ;;  %v780_v34 = vadd.f32 %v779_v60, %v778_v18  ;;  %v787_v8 = vadd.f32 %v786_v29, %v785_v20  ;;  %1835 = vst [vmem:[%s4103_s25 + $0x158] sm:$0xff] %v3499_v37 }
 0x30b   :  { %v793_v36 = vmul.f32 %v3321_v48, %v4171_v9  ;;  %v4172_v14 = vmov %v4171_v9  ;;  %v3699_v1 = vmul.f32 %v3321_v48, %v4173_v51  ;;  %v4175_v7 = vmov %v4173_v51  ;;  %1838 = vst [vmem:[%s4103_s25 + $0x160] sm:$0xff] %v3517_v42 }
 0x30c   :  { %v794_v15 = vadd.f32 %v3321_v48, %v4172_v14  ;;  %v3714_v39 = vadd.f32 %v3321_v48, %v4175_v7  ;;  %v775_v4 = vmax.f32 %v774_v12, 0.0  ;;  %v781_v0 = vadd.f32 %v3740_v63, %v780_v34  ;;  %1841 = vst [vmem:[%s4103_s25 + $0x168] sm:$0xff] %v3519_v33 }
 0x30d   :  { %v795_v38 = vmul.f32 %v793_v36, %v2602_v54  ;;  %v802_v47 = vmul.f32 %v793_v36, %v2604_v55  ;;  %v809_v31 = vmul.f32 %v793_v36, %v2617_v61  ;;  %v788_v56 = vadd.f32 %v3752_v25, %v787_v8  ;;  %1844 = vst [vmem:[%s4103_s25 + $0x170] sm:$0xff] %v3535_v27 }
 0x30e   :  { %v796_v26 = vmul.f32 %v3729_v40, %v794_v15  ;;  %v803_v41 = vmul.f32 %v3648_v52, %v794_v15  ;;  %v810_v60 = vmul.f32 %v3673_v43, %v794_v15  ;;  %v816_v20 = vmul.f32 %v793_v36, %v2638_v5  ;;  %v3770_v36 = vld [vmem:[%s4174_s22] sm:$0xff]  ;;  %1847 = vst [vmem:[%s4103_s25 + $0x178] sm:$0xff] %v3537_v57 }
 0x30f   :  { %v776_v29 = vmul.f32 %v775_v4, %v2666_v13  ;;  %v782_v3 = vmax.f32 %v781_v0, 0.0  ;;  %v817_v14 = vmul.f32 %v3686_v49, %v794_v15  ;;  %v789_v51 = vmax.f32 %v788_v56, 0.0  ;;  %1850 = vst [vmem:[%s4103_s25 + $0x180] sm:$0xff] %v3539_v32 }
 0x310   :  { %v797_v18 = vadd.f32 %v796_v26, %v795_v38  ;;  %v804_v9 = vadd.f32 %v803_v41, %v802_v47  ;;  %v811_v37 = vadd.f32 %v810_v60, %v809_v31  ;;  %v826_v34 = vmul.f32 %v3699_v1, %v2602_v54  ;;  %1853 = vst [vmem:[%s4103_s25 + $0x188] sm:$0xff] %v3573_v22 }
 0x311   :  { %v777_v15 = vadd.f32 %v776_v29, %v770_v19  ;;  %v783_v42 = vmul.f32 %v782_v3, %v2679_v28  ;;  %v818_v8 = vadd.f32 %v817_v14, %v816_v20  ;;  %v790_v38 = vmul.f32 %v789_v51, %v2689_v35  ;;  %1856 = vst [vmem:[%s4103_s25 + $0x190] sm:$0xff] %v3594_v44 }
 0x312   :  { %v798_v12 = vadd.f32 %v3770_v36, %v797_v18  ;;  %v805_v7 = vadd.f32 %v3708_v24, %v804_v9  ;;  %v812_v47 = vadd.f32 %v3740_v63, %v811_v37  ;;  %v827_v4 = vmul.f32 %v3729_v40, %v3714_v39  ;;  %1859 = vst [vmem:[%s4103_s25 + $0x198] sm:$0xff] %v3596_v58 }
 0x313   :  { %v784_v33 = vadd.f32 %v783_v42, %v777_v15  ;;  %v819_v0 = vadd.f32 %v3752_v25, %v818_v8  ;;  %v833_v27 = vmul.f32 %v3699_v1, %v2604_v55  ;;  %v834_v18 = vmul.f32 %v3648_v52, %v3714_v39  ;;  %1862 = vst [vmem:[%s4103_s25 + $0x1a0] sm:$0xff] %v3598_v46 }
 0x314   :  { %v799_v26 = vmax.f32 %v798_v12, 0.0  ;;  %v806_v19 = vmax.f32 %v805_v7, 0.0  ;;  %v813_v31 = vmax.f32 %v812_v47, 0.0  ;;  %v828_v56 = vadd.f32 %v827_v4, %v826_v34  ;;  %1865 = vst [vmem:[%s4103_s25 + $0x1a8] sm:$0xff] %v3600_v53  ;;  %v2196_v7 = vld [vmem:[%s4091_s20 + $0x3e] ss:$0 sm:$0xff] }
 0x315   :  { %v791_v57 = vadd.f32 %v790_v38, %v784_v33  ;;  %v820_v20 = vmax.f32 %v819_v0, 0.0  ;;  %v840_v29 = vmul.f32 %v3699_v1, %v2617_v61  ;;  %v835_v9 = vadd.f32 %v834_v18, %v833_v27  ;;  %1868 = vst [vmem:[%s4103_s25 + $0x1b0] sm:$0xff] %v3606_v62 }
 0x316   :  { %v800_v41 = vmul.f32 %v799_v26, %v2663_v21  ;;  %v807_v60 = vmul.f32 %v806_v19, %v2666_v13  ;;  %v814_v32 = vmul.f32 %v813_v31, %v2679_v28  ;;  %v829_v3 = vadd.f32 %v3770_v36, %v828_v56  ;;  %1871 = vst [vmem:[%s4103_s25 + $0x1b8] sm:$0xff] %v3608_v23 }
 0x317   :  { %v841_v22 = vmul.f32 %v3673_v43, %v3714_v39  ;;  %v821_v51 = vmul.f32 %v820_v20, %v2689_v35  ;;  %v847_v12 = vmul.f32 %v3699_v1, %v2638_v5  ;;  %v848_v44 = vmul.f32 %v3686_v49, %v3714_v39  ;;  %1874 = vst [vmem:[%s4103_s25 + $0x1c0] sm:$0xff] %v3610_v6 }
 0x318   :  { %v801_v14 = vadd.f32 %v800_v41, %v791_v57  ;;  %v830_v37 = vmax.f32 %v829_v3, 0.0  ;;  %v836_v34 = vadd.f32 %v3708_v24, %v835_v9  ;;  %v856_v58 = vadd.f32 %v3321_v48, %v854_v30  ;;  %1877 = vst [vmem:[%s4103_s25 + $0x1c8] sm:$0xff] %v3619_v2  ;;  %v1638_v3 = vpop.permute.xlu1 %1637 }
 0x319   :  { %v842_v15 = vadd.f32 %v841_v22, %v840_v29  ;;  %v849_v39 = vadd.f32 %v848_v44, %v847_v12  ;;  %v857_v42 = vmul.f32 %v3719_v17, %v2602_v54  ;;  %v864_v46 = vmul.f32 %v3719_v17, %v2604_v55  ;;  %v2197_v54 = vld [vmem:[%s4091_s20 + $0x3f] ss:$0 sm:$0xff]  ;;  %1880 = vst [vmem:[%s4103_s25 + $0x1d0] sm:$0xff] %v3621_v10 }
 0x31a   :  { %v808_v1 = vadd.f32 %v807_v60, %v801_v14  ;;  %v831_v48 = vmul.f32 %v830_v37, %v2663_v21  ;;  %v837_v30 = vmax.f32 %v836_v34, 0.0  ;;  %v858_v8 = vmul.f32 %v3729_v40, %v856_v58  ;;  %1883 = vst [vmem:[%s4103_s25 + $0x1d8] sm:$0xff] %v3656_v45 }
 0x31b   :  { %v843_v53 = vadd.f32 %v3740_v63, %v842_v15  ;;  %v850_v38 = vadd.f32 %v3752_v25, %v849_v39  ;;  %v865_v62 = vmul.f32 %v3648_v52, %v856_v58  ;;  %v871_v26 = vmul.f32 %v3719_v17, %v2617_v61  ;;  %1886 = vst [vmem:[%s4103_s25 + $0x1e0] sm:$0xff] %v3658_v50 }
 0x31c   :  { %v815_v55 = vadd.f32 %v814_v32, %v808_v1  ;;  %v838_v40 = vmul.f32 %v837_v30, %v2666_v13  ;;  %v859_v4 = vadd.f32 %v858_v8, %v857_v42  ;;  %v872_v33 = vmul.f32 %v3673_v43, %v856_v58  ;;  %1889 = vst [vmem:[%s4103_s25 + $0x1e8] sm:$0xff] %v3660_v16 }
 0x31d   :  { %v844_v47 = vmax.f32 %v843_v53, 0.0  ;;  %v851_v52 = vmax.f32 %v850_v38, 0.0  ;;  %v866_v19 = vadd.f32 %v865_v62, %v864_v46  ;;  %v878_v61 = vmul.f32 %v3719_v17, %v2638_v5 }
 0x31e   :  { %v822_v23 = vadd.f32 %v821_v51, %v815_v55  ;;  %v596_v6 = vadd.f32 %v2196_v7, %v3636_v11  ;;  %v860_v43 = vadd.f32 %v3770_v36, %v859_v4  ;;  %v873_v0 = vadd.f32 %v872_v33, %v871_v26 }
 0x31f   :  { %v879_v27 = vmul.f32 %v3686_v49, %v856_v58  ;;  %v604_v2 = vadd.f32 %v2197_v54, %v3641_v59  ;;  %v845_v17 = vmul.f32 %v844_v47, %v2679_v28  ;;  %v867_v41 = vadd.f32 %v3708_v24, %v866_v19 }
 0x320   :  { %v832_v5 = vadd.f32 %v831_v48, %v822_v23  ;;  %v861_v10 = vmax.f32 %v860_v43, 0.0  ;;  %v874_v11 = vadd.f32 %v3740_v63, %v873_v0  ;;  %v852_v45 = vmul.f32 %v851_v52, %v2689_v35  ;;  %1892 = vst [vmem:[%s4103_s25 + $0x1f0] sm:$0xff] %v596_v6 }
 0x321   :  { %v880_v49 = vadd.f32 %v879_v27, %v878_v61  ;;  %v868_v36 = vmax.f32 %v867_v41, 0.0  ;;  %1895 = vst [vmem:[%s4103_s25 + $0x1f8] sm:$0xff] %v604_v2 }
 0x322   :  { %v839_v59 = vadd.f32 %v838_v40, %v832_v5  ;;  %v862_v63 = vmul.f32 %v861_v10, %v2663_v21  ;;  %v875_v31 = vmax.f32 %v874_v11, 0.0 }
 0x323   :  { %v881_v24 = vadd.f32 %v3752_v25, %v880_v49  ;;  %v869_v16 = vmul.f32 %v868_v36, %v2666_v13  ;;  %v1643_v13 = vpop.permute.xlu2 %1642 }
 0x324   :  { %v846_v50 = vadd.f32 %v845_v17, %v839_v59  ;;  %v876_v60 = vmul.f32 %v875_v31, %v2679_v28 }
 0x325   :  { %v882_v18 = vmax.f32 %v881_v24, 0.0 }
 0x326   :  { %v853_v56 = vadd.f32 %v852_v45, %v846_v50 }
 0x327   :  { %v883_v29 = vmul.f32 %v882_v18, %v2689_v35  ;;  %v903_v35 = vstv %s902_s28 }
 0x328   :  { %v863_v57 = vadd.f32 %v862_v63, %v853_v56 }
 0x32a   :  { %v870_v20 = vadd.f32 %v869_v16, %v863_v57 }
 0x32c   :  { %v877_v32 = vadd.f32 %v876_v60, %v870_v20 }
 0x32e   :  { %v884_v25 = vadd.f32 %v883_v29, %v877_v32 }
 0x330   :  { %920 = vmatmul.f32.vlgmr.msra.gmra.mxu0 %v884_v25 }
 0x368   :  { %v1691_v22 = vpop.f32.mrf.mxu2 }
 0x36f   :  { %v1668_v9 = vpop.f32.mrf.mxu3 }
 0x370   :  { %v1669_v14 = vadd.f32 %v1668_v9, %v1638_v3  ;;  %v1694_v44 = vpop.f32.mrf.mxu2 }
 0x372   :  { %v1692_v51 = vadd.f32 %v1691_v22, %v1669_v14 }
 0x374   :  { %1697 = vst [vmem:[%s4176_s12] sm:$0xff] %v1692_v51 }
 0x377   :  { %v1671_v21 = vpop.f32.mrf.mxu3 }
 0x378   :  { %v1672_v12 = vadd.f32 %v1671_v21, %v1643_v13 }
 0x37a   :  { %v1695_v28 = vadd.f32 %v1694_v44, %v1672_v12 }
 0x37c   :  { %1698 = vst [vmem:[%s4176_s12 + $0x8] sm:$0xff] %v1695_v28 }
 0x3ad   :  { %v921_v37 = vpop.f32.mrf.mxu0 }
 0x3ae   :  { %v922_v34 = vadd.f32 %v921_v37, %v903_v35 }
 0x3b0   :  { %925 = vst.msk [vmem:[%s4178_s17] sm:$0xff] %vm924_vm2, %v922_v34 }
 0x3b1   :  { %1711 = vsyncpa [#allocation6], 1 }
 0x3b2   :  { %1712 = vsyncpa [#allocation10], 1 }
 0x3b3   :  { %1713 = vsyncpa [#allocation7], 1 }

</bundles_post_ra>
